<compile_context>
chip_gen: v6e
topology: v6e:2x2x1
jax: 0.10.0
libtpu: 0.0.40
codegen_flags: <defaults>
</compile_context>

<pallas_src>
import jax
import jax.numpy as jnp
from jax.experimental import pallas as pl
from jax.experimental.pallas import tpu as pltpu

_EPS = 1e-5


def _vmem_limit_bytes():
    # v5e/v6e: 128 MiB physical VMEM -> ~96 MiB; v7x: 64 MiB -> ~48 MiB.
    try:
        cap = pltpu.get_tpu_info().vmem_capacity_bytes
    except Exception:
        cap = 128 * 1024 * 1024
    return int(min(100 * 1024 * 1024, max(32 * 1024 * 1024, cap * 3 // 4)))


def _conv3x3_stats(inp_f32, pad_ref, w_ref, y_ref, stats_ref):
    """Zero-pad -> 3x3 conv (9 accumulating MXU matmuls) -> raw f32 out + stats."""
    hp, wp, cin = pad_ref.shape
    h, w = hp - 2, wp - 2
    cout = w_ref.shape[-1]
    m = h * w

    # 1-wide zero border only (interior is fully rewritten below).
    pad_ref[0:1, :, :] = jnp.zeros((1, wp, cin), jnp.bfloat16)
    pad_ref[h + 1:h + 2, :, :] = jnp.zeros((1, wp, cin), jnp.bfloat16)
    pad_ref[1:h + 1, 0:1, :] = jnp.zeros((h, 1, cin), jnp.bfloat16)
    pad_ref[1:h + 1, w + 1:w + 2, :] = jnp.zeros((h, 1, cin), jnp.bfloat16)
    pad_ref[1:h + 1, 1:w + 1, :] = inp_f32.astype(jnp.bfloat16)  # MXU-operand cast

    # 9 accumulating matmuls -> no 9x im2col patches buffer in VMEM.
    acc = jnp.zeros((m, cout), jnp.float32)
    for t in range(9):
        ky, kx = divmod(t, 3)
        tap = pad_ref[ky:ky + h, kx:kx + w, :].reshape(m, cin)
        acc = acc + jnp.dot(tap, w_ref[t], preferred_element_type=jnp.float32)

    y_ref[0, :, :, :] = acc.reshape(h, w, cout)
    # Per-image partial BatchNorm statistics from the f32 accumulator.
    stats_ref[0, 0:1, :] = jnp.sum(acc, axis=0, keepdims=True)
    stats_ref[0, 1:2, :] = jnp.sum(acc * acc, axis=0, keepdims=True)


def _pool_conv_kernel(xp_ref, w_ref, y_ref, stats_ref, pad_ref):
    # MaxPool2d(2): max over the four phase slabs (f32 elementwise).
    pooled = jnp.maximum(jnp.maximum(xp_ref[0, 0], xp_ref[0, 1]),
                         jnp.maximum(xp_ref[0, 2], xp_ref[0, 3]))
    _conv3x3_stats(pooled, pad_ref, w_ref, y_ref, stats_ref)


def _bn_relu_conv_kernel(y_ref, sc_ref, sh_ref, w_ref, o_ref, stats_ref, pad_ref):
    h = jnp.maximum(y_ref[0] * sc_ref[...] + sh_ref[...], 0.0)   # f32 BN1 + ReLU
    _conv3x3_stats(h, pad_ref, w_ref, o_ref, stats_ref)


def _bn_relu_kernel(y_ref, sc_ref, sh_ref, o_ref):
    o_ref[0, :, :, :] = jnp.maximum(y_ref[0] * sc_ref[...] + sh_ref[...], 0.0)


def _bn_affine(stats, gamma, beta, m_total):
    """Reduce per-image (sum, sumsq) partials into global BN scale/shift."""
    s = jnp.sum(stats, axis=0)                                   # (2, C)
    mean = s[0] / m_total
    var = jnp.maximum(s[1] / m_total - mean * mean, 0.0)         # clamp >= 0
    scale = gamma.reshape(-1) * jax.lax.rsqrt(var + _EPS)
    shift = beta.reshape(-1) - mean * scale
    return (scale.reshape(1, -1).astype(jnp.float32),
            shift.reshape(1, -1).astype(jnp.float32))


def down_forward(x_nchw, params):
    w1, g1, b1, w2, g2, b2 = params
    N, Cin, H, W = x_nchw.shape
    assert H % 2 == 0 and W % 2 == 0
    H2, W2 = H // 2, W // 2
    Cout = w1.shape[-1]
    m_total = N * H2 * W2

    # Single layout pass: phase-major channels-last, f32.
    # xp[n, 2*dy+dx, i, j, c] == x[n, c, 2*i+dy, 2*j+dx]
    xp = jnp.transpose(x_nchw.reshape(N, Cin, H2, 2, W2, 2),
                       (0, 3, 5, 2, 4, 1)).reshape(N, 4, H2, W2, Cin)

    # Per-tap weight matrices (bf16 MXU operands), HWIO -> (9, Cin, Cout).
    w1_t = w1.reshape(9, Cin, Cout).astype(jnp.bfloat16)
    w2_t = w2.reshape(9, Cout, Cout).astype(jnp.bfloat16)

    cparams = pltpu.CompilerParams(
        dimension_semantics=("parallel",),
        vmem_limit_bytes=_vmem_limit_bytes())

    # ---- pass 1: maxpool + conv1 (raw) + per-image BN1 partial stats --------
    y1, st1 = pl.pallas_call(
        _pool_conv_kernel,
        grid=(N,),
        in_specs=[
            pl.BlockSpec((1, 4, H2, W2, Cin), lambda n: (n, 0, 0, 0, 0)),
            pl.BlockSpec((9, Cin, Cout), lambda n: (0, 0, 0)),
        ],
        out_specs=(
            pl.BlockSpec((1, H2, W2, Cout), lambda n: (n, 0, 0, 0)),
            pl.BlockSpec((1, 2, Cout), lambda n: (n, 0, 0)),
        ),
        out_shape=(
            jax.ShapeDtypeStruct((N, H2, W2, Cout), jnp.float32),
            jax.ShapeDtypeStruct((N, 2, Cout), jnp.float32),
        ),
        scratch_shapes=[pltpu.VMEM((H2 + 2, W2 + 2, Cin), jnp.bfloat16)],
        compiler_params=cparams,
    )(xp, w1_t)

    sc1, sh1 = _bn_affine(st1, g1, b1, m_total)

    # ---- pass 2: BN1+ReLU + conv2 (raw) + per-image BN2 partial stats -------
    y2, st2 = pl.pallas_call(
        _bn_relu_conv_kernel,
        grid=(N,),
        in_specs=[
            pl.BlockSpec((1, H2, W2, Cout), lambda n: (n, 0, 0, 0)),
            pl.BlockSpec((1, Cout), lambda n: (0, 0)),
            pl.BlockSpec((1, Cout), lambda n: (0, 0)),
            pl.BlockSpec((9, Cout, Cout), lambda n: (0, 0, 0)),
        ],
        out_specs=(
            pl.BlockSpec((1, H2, W2, Cout), lambda n: (n, 0, 0, 0)),
            pl.BlockSpec((1, 2, Cout), lambda n: (n, 0, 0)),
        ),
        out_shape=(
            jax.ShapeDtypeStruct((N, H2, W2, Cout), jnp.float32),
            jax.ShapeDtypeStruct((N, 2, Cout), jnp.float32),
        ),
        scratch_shapes=[pltpu.VMEM((H2 + 2, W2 + 2, Cout), jnp.bfloat16)],
        compiler_params=cparams,
    )(y1, sc1, sh1, w2_t)

    sc2, sh2 = _bn_affine(st2, g2, b2, m_total)

    # ---- pass 3: BN2 + ReLU --------------------------------------------------
    out_nhwc = pl.pallas_call(
        _bn_relu_kernel,
        grid=(N,),
        in_specs=[
            pl.BlockSpec((1, H2, W2, Cout), lambda n: (n, 0, 0, 0)),
            pl.BlockSpec((1, Cout), lambda n: (0, 0)),
            pl.BlockSpec((1, Cout), lambda n: (0, 0)),
        ],
        out_specs=pl.BlockSpec((1, H2, W2, Cout), lambda n: (n, 0, 0, 0)),
        out_shape=jax.ShapeDtypeStruct((N, H2, W2, Cout), jnp.float32),
        compiler_params=cparams,
    )(y2, sc2, sh2)

    return jnp.transpose(out_nhwc, (0, 3, 1, 2))                  # NHWC -> NCHW


def ref_forward(x_nchw, params):
    """Pure-JAX f32 reference (same semantics) for a correctness check."""
    w1, g1, b1, w2, g2, b2 = params
    x = jnp.transpose(x_nchw, (0, 2, 3, 1))
    x = jax.lax.reduce_window(x, -jnp.inf, jax.lax.max,
                              (1, 2, 2, 1), (1, 2, 2, 1), 'VALID')

    def block(h, w, g, b):
        y = jax.lax.conv_general_dilated(
            h, w, (1, 1), 'SAME', dimension_numbers=('NHWC', 'HWIO', 'NHWC'))
        m = jnp.mean(y, axis=(0, 1, 2))
        v = jnp.mean((y - m) ** 2, axis=(0, 1, 2))
        y = (y - m) * jax.lax.rsqrt(v + _EPS) * g.reshape(-1) + b.reshape(-1)
        return jnp.maximum(y, 0.0)

    h = block(x, w1, g1, b1)
    h = block(h, w2, g2, b2)
    return jnp.transpose(h, (0, 3, 1, 2))


if __name__ == "__main__":
    key = jax.random.PRNGKey(0)
    k_w1, k_w2, k_x = jax.random.split(key, 3)

    N, Cin, Cout, H, W = 2, 4, 8, 16, 16

    # Conv2d weights in HWIO; BatchNorm gamma=1, beta=0 (PyTorch defaults).
    w1 = jax.random.normal(k_w1, (3, 3, Cin, Cout), jnp.float32) * 0.1
    g1 = jnp.ones((1, Cout), jnp.float32)
    b1 = jnp.zeros((1, Cout), jnp.float32)
    w2 = jax.random.normal(k_w2, (3, 3, Cout, Cout), jnp.float32) * 0.1
    g2 = jnp.ones((1, Cout), jnp.float32)
    b2 = jnp.zeros((1, Cout), jnp.float32)
    params = (w1, g1, b1, w2, g2, b2)

    x = jax.random.normal(k_x, (N, Cin, H, W), jnp.float32)       # NCHW

    out = jax.jit(down_forward)(x, params)
    out = jax.block_until_ready(out)

    assert out.shape == (N, Cout, H // 2, W // 2), out.shape

    ref = ref_forward(x, params)
    err = float(jnp.max(jnp.abs(out - ref)))
    assert err < 5e-2, f"max abs err vs reference: {err}"

    print("KERNEL_OK")
</pallas_src>

<mosaic_0001>
module attributes {stable_mosaic.version = 11 : i64} {
  func.func @_pool_conv_kernel(%arg0: i32, %arg1: memref<1x4x8x8x4xf32, #tpu.memory_space<vmem>>, %arg2: memref<9x4x8xbf16, #tpu.memory_space<vmem>>, %arg3: memref<1x8x8x8xf32, #tpu.memory_space<vmem>>, %arg4: memref<1x2x8xf32, #tpu.memory_space<vmem>>, %arg5: memref<10x10x4xbf16, #tpu.memory_space<vmem>>) attributes {dimension_semantics = [#tpu.dimension_semantics<parallel>], iteration_bounds = array<i64: 2>, scalar_prefetch = 0 : i64, scratch_operands = 1 : i64, tpu.core_type = #tpu.core_type<tc>, window_params = [{transform_indices = @transform_0, window_bounds = array<i64: 1, 4, 8, 8, 4>}, {pipeline_mode = #tpu.pipeline_mode<synchronous>, transform_indices = @transform_1, window_bounds = array<i64: 9, 4, 8>}, {transform_indices = @transform_2, window_bounds = array<i64: 1, 8, 8, 8>}, {transform_indices = @transform_3, window_bounds = array<i64: 1, 2, 8>}]} {
    %c0 = arith.constant 0 : index
    %c0_0 = arith.constant 0 : index
    %c0_1 = arith.constant 0 : index
    %c0_2 = arith.constant 0 : index
    %c0_3 = arith.constant 0 : index
    %0 = vector.load %arg1[%c0, %c0_0, %c0_1, %c0_2, %c0_3] : memref<1x4x8x8x4xf32, #tpu.memory_space<vmem>>, vector<1x1x8x8x4xf32>
    %1 = vector.shape_cast %0 : vector<1x1x8x8x4xf32> to vector<8x8x4xf32>
    %c0_4 = arith.constant 0 : index
    %c1 = arith.constant 1 : index
    %c0_5 = arith.constant 0 : index
    %c0_6 = arith.constant 0 : index
    %c0_7 = arith.constant 0 : index
    %2 = vector.load %arg1[%c0_4, %c1, %c0_5, %c0_6, %c0_7] : memref<1x4x8x8x4xf32, #tpu.memory_space<vmem>>, vector<1x1x8x8x4xf32>
    %3 = vector.shape_cast %2 : vector<1x1x8x8x4xf32> to vector<8x8x4xf32>
    %4 = arith.maximumf %1, %3 : vector<8x8x4xf32>
    %c0_8 = arith.constant 0 : index
    %c2 = arith.constant 2 : index
    %c0_9 = arith.constant 0 : index
    %c0_10 = arith.constant 0 : index
    %c0_11 = arith.constant 0 : index
    %5 = vector.load %arg1[%c0_8, %c2, %c0_9, %c0_10, %c0_11] : memref<1x4x8x8x4xf32, #tpu.memory_space<vmem>>, vector<1x1x8x8x4xf32>
    %6 = vector.shape_cast %5 : vector<1x1x8x8x4xf32> to vector<8x8x4xf32>
    %c0_12 = arith.constant 0 : index
    %c3 = arith.constant 3 : index
    %c0_13 = arith.constant 0 : index
    %c0_14 = arith.constant 0 : index
    %c0_15 = arith.constant 0 : index
    %7 = vector.load %arg1[%c0_12, %c3, %c0_13, %c0_14, %c0_15] : memref<1x4x8x8x4xf32, #tpu.memory_space<vmem>>, vector<1x1x8x8x4xf32>
    %8 = vector.shape_cast %7 : vector<1x1x8x8x4xf32> to vector<8x8x4xf32>
    %9 = arith.maximumf %6, %8 : vector<8x8x4xf32>
    %10 = arith.maximumf %4, %9 : vector<8x8x4xf32>
    %cst = arith.constant 0.000000e+00 : bf16
    %11 = vector.broadcast %cst : bf16 to vector<1x10x4xbf16>
    %c0_16 = arith.constant 0 : index
    %c0_17 = arith.constant 0 : index
    %c0_18 = arith.constant 0 : index
    %12 = vector.load %arg5[%c0_16, %c0_17, %c0_18] : memref<10x10x4xbf16, #tpu.memory_space<vmem>>, vector<1x10x4xbf16>
    tpu.vector_store %arg5[%c0_16, %c0_17, %c0_18], %11 {strides = array<i32>} : memref<10x10x4xbf16, #tpu.memory_space<vmem>>, vector<1x10x4xbf16>,
    %cst_19 = arith.constant 0.000000e+00 : bf16
    %13 = vector.broadcast %cst_19 : bf16 to vector<1x10x4xbf16>
    %c9 = arith.constant 9 : index
    %c0_20 = arith.constant 0 : index
    %c0_21 = arith.constant 0 : index
    %14 = vector.load %arg5[%c9, %c0_20, %c0_21] : memref<10x10x4xbf16, #tpu.memory_space<vmem>>, vector<1x10x4xbf16>
    tpu.vector_store %arg5[%c9, %c0_20, %c0_21], %13 {strides = array<i32>} : memref<10x10x4xbf16, #tpu.memory_space<vmem>>, vector<1x10x4xbf16>,
    %cst_22 = arith.constant 0.000000e+00 : bf16
    %15 = vector.broadcast %cst_22 : bf16 to vector<8x1x4xbf16>
    %c1_23 = arith.constant 1 : index
    %c0_24 = arith.constant 0 : index
    %c0_25 = arith.constant 0 : index
    %16 = vector.load %arg5[%c1_23, %c0_24, %c0_25] : memref<10x10x4xbf16, #tpu.memory_space<vmem>>, vector<8x1x4xbf16>
    tpu.vector_store %arg5[%c1_23, %c0_24, %c0_25], %15 {strides = array<i32>} : memref<10x10x4xbf16, #tpu.memory_space<vmem>>, vector<8x1x4xbf16>,
    %cst_26 = arith.constant 0.000000e+00 : bf16
    %17 = vector.broadcast %cst_26 : bf16 to vector<8x1x4xbf16>
    %c1_27 = arith.constant 1 : index
    %c9_28 = arith.constant 9 : index
    %c0_29 = arith.constant 0 : index
    %18 = vector.load %arg5[%c1_27, %c9_28, %c0_29] : memref<10x10x4xbf16, #tpu.memory_space<vmem>>, vector<8x1x4xbf16>
    tpu.vector_store %arg5[%c1_27, %c9_28, %c0_29], %17 {strides = array<i32>} : memref<10x10x4xbf16, #tpu.memory_space<vmem>>, vector<8x1x4xbf16>,
    %19 = arith.truncf %10 : vector<8x8x4xf32> to vector<8x8x4xbf16>
    %c1_30 = arith.constant 1 : index
    %c1_31 = arith.constant 1 : index
    %c0_32 = arith.constant 0 : index
    %20 = vector.load %arg5[%c1_30, %c1_31, %c0_32] : memref<10x10x4xbf16, #tpu.memory_space<vmem>>, vector<8x8x4xbf16>
    tpu.vector_store %arg5[%c1_30, %c1_31, %c0_32], %19 {strides = array<i32>} : memref<10x10x4xbf16, #tpu.memory_space<vmem>>, vector<8x8x4xbf16>,
    %cst_33 = arith.constant 0.000000e+00 : f32
    %21 = vector.broadcast %cst_33 : f32 to vector<64x8xf32>
    %c0_34 = arith.constant 0 : index
    %c0_35 = arith.constant 0 : index
    %c0_36 = arith.constant 0 : index
    %22 = vector.load %arg5[%c0_34, %c0_35, %c0_36] : memref<10x10x4xbf16, #tpu.memory_space<vmem>>, vector<8x8x4xbf16>
    %23 = vector.shape_cast %22 : vector<8x8x4xbf16> to vector<64x4xbf16>
    %c0_37 = arith.constant 0 : index
    %c0_38 = arith.constant 0 : index
    %c0_39 = arith.constant 0 : index
    %24 = vector.load %arg2[%c0_37, %c0_38, %c0_39] : memref<9x4x8xbf16, #tpu.memory_space<vmem>>, vector<1x4x8xbf16>
    %25 = vector.shape_cast %24 : vector<1x4x8xbf16> to vector<4x8xbf16>
    %cst_40 = arith.constant dense<0.000000e+00> : vector<64x8xf32>
    %26 = tpu.matmul %23, %25, %cst_40 {dimension_numbers = #tpu.dot_dimension_numbers<[1], [0], [0], [1], [0, 0, 1, 1], [], []>} : vector<64x4xbf16>, vector<4x8xbf16>, vector<64x8xf32> -> vector<64x8xf32>
    %27 = arith.addf %21, %26 : vector<64x8xf32>
    %c0_41 = arith.constant 0 : index
    %c1_42 = arith.constant 1 : index
    %c0_43 = arith.constant 0 : index
    %28 = vector.load %arg5[%c0_41, %c1_42, %c0_43] : memref<10x10x4xbf16, #tpu.memory_space<vmem>>, vector<8x8x4xbf16>
    %29 = vector.shape_cast %28 : vector<8x8x4xbf16> to vector<64x4xbf16>
    %c1_44 = arith.constant 1 : index
    %c0_45 = arith.constant 0 : index
    %c0_46 = arith.constant 0 : index
    %30 = vector.load %arg2[%c1_44, %c0_45, %c0_46] : memref<9x4x8xbf16, #tpu.memory_space<vmem>>, vector<1x4x8xbf16>
    %31 = vector.shape_cast %30 : vector<1x4x8xbf16> to vector<4x8xbf16>
    %cst_47 = arith.constant dense<0.000000e+00> : vector<64x8xf32>
    %32 = tpu.matmul %29, %31, %cst_47 {dimension_numbers = #tpu.dot_dimension_numbers<[1], [0], [0], [1], [0, 0, 1, 1], [], []>} : vector<64x4xbf16>, vector<4x8xbf16>, vector<64x8xf32> -> vector<64x8xf32>
    %33 = arith.addf %27, %32 : vector<64x8xf32>
    %c0_48 = arith.constant 0 : index
    %c2_49 = arith.constant 2 : index
    %c0_50 = arith.constant 0 : index
    %34 = vector.load %arg5[%c0_48, %c2_49, %c0_50] : memref<10x10x4xbf16, #tpu.memory_space<vmem>>, vector<8x8x4xbf16>
    %35 = vector.shape_cast %34 : vector<8x8x4xbf16> to vector<64x4xbf16>
    %c2_51 = arith.constant 2 : index
    %c0_52 = arith.constant 0 : index
    %c0_53 = arith.constant 0 : index
    %36 = vector.load %arg2[%c2_51, %c0_52, %c0_53] : memref<9x4x8xbf16, #tpu.memory_space<vmem>>, vector<1x4x8xbf16>
    %37 = vector.shape_cast %36 : vector<1x4x8xbf16> to vector<4x8xbf16>
    %cst_54 = arith.constant dense<0.000000e+00> : vector<64x8xf32>
    %38 = tpu.matmul %35, %37, %cst_54 {dimension_numbers = #tpu.dot_dimension_numbers<[1], [0], [0], [1], [0, 0, 1, 1], [], []>} : vector<64x4xbf16>, vector<4x8xbf16>, vector<64x8xf32> -> vector<64x8xf32>
    %39 = arith.addf %33, %38 : vector<64x8xf32>
    %c1_55 = arith.constant 1 : index
    %c0_56 = arith.constant 0 : index
    %c0_57 = arith.constant 0 : index
    %40 = vector.load %arg5[%c1_55, %c0_56, %c0_57] : memref<10x10x4xbf16, #tpu.memory_space<vmem>>, vector<8x8x4xbf16>
    %41 = vector.shape_cast %40 : vector<8x8x4xbf16> to vector<64x4xbf16>
    %c3_58 = arith.constant 3 : index
    %c0_59 = arith.constant 0 : index
    %c0_60 = arith.constant 0 : index
    %42 = vector.load %arg2[%c3_58, %c0_59, %c0_60] : memref<9x4x8xbf16, #tpu.memory_space<vmem>>, vector<1x4x8xbf16>
    %43 = vector.shape_cast %42 : vector<1x4x8xbf16> to vector<4x8xbf16>
    %cst_61 = arith.constant dense<0.000000e+00> : vector<64x8xf32>
    %44 = tpu.matmul %41, %43, %cst_61 {dimension_numbers = #tpu.dot_dimension_numbers<[1], [0], [0], [1], [0, 0, 1, 1], [], []>} : vector<64x4xbf16>, vector<4x8xbf16>, vector<64x8xf32> -> vector<64x8xf32>
    %45 = arith.addf %39, %44 : vector<64x8xf32>
    %c1_62 = arith.constant 1 : index
    %c1_63 = arith.constant 1 : index
    %c0_64 = arith.constant 0 : index
    %46 = vector.load %arg5[%c1_62, %c1_63, %c0_64] : memref<10x10x4xbf16, #tpu.memory_space<vmem>>, vector<8x8x4xbf16>
    %47 = vector.shape_cast %46 : vector<8x8x4xbf16> to vector<64x4xbf16>
    %c4 = arith.constant 4 : index
    %c0_65 = arith.constant 0 : index
    %c0_66 = arith.constant 0 : index
    %48 = vector.load %arg2[%c4, %c0_65, %c0_66] : memref<9x4x8xbf16, #tpu.memory_space<vmem>>, vector<1x4x8xbf16>
    %49 = vector.shape_cast %48 : vector<1x4x8xbf16> to vector<4x8xbf16>
    %cst_67 = arith.constant dense<0.000000e+00> : vector<64x8xf32>
    %50 = tpu.matmul %47, %49, %cst_67 {dimension_numbers = #tpu.dot_dimension_numbers<[1], [0], [0], [1], [0, 0, 1, 1], [], []>} : vector<64x4xbf16>, vector<4x8xbf16>, vector<64x8xf32> -> vector<64x8xf32>
    %51 = arith.addf %45, %50 : vector<64x8xf32>
    %c1_68 = arith.constant 1 : index
    %c2_69 = arith.constant 2 : index
    %c0_70 = arith.constant 0 : index
    %52 = vector.load %arg5[%c1_68, %c2_69, %c0_70] : memref<10x10x4xbf16, #tpu.memory_space<vmem>>, vector<8x8x4xbf16>
    %53 = vector.shape_cast %52 : vector<8x8x4xbf16> to vector<64x4xbf16>
    %c5 = arith.constant 5 : index
    %c0_71 = arith.constant 0 : index
    %c0_72 = arith.constant 0 : index
    %54 = vector.load %arg2[%c5, %c0_71, %c0_72] : memref<9x4x8xbf16, #tpu.memory_space<vmem>>, vector<1x4x8xbf16>
    %55 = vector.shape_cast %54 : vector<1x4x8xbf16> to vector<4x8xbf16>
    %cst_73 = arith.constant dense<0.000000e+00> : vector<64x8xf32>
    %56 = tpu.matmul %53, %55, %cst_73 {dimension_numbers = #tpu.dot_dimension_numbers<[1], [0], [0], [1], [0, 0, 1, 1], [], []>} : vector<64x4xbf16>, vector<4x8xbf16>, vector<64x8xf32> -> vector<64x8xf32>
    %57 = arith.addf %51, %56 : vector<64x8xf32>
    %c2_74 = arith.constant 2 : index
    %c0_75 = arith.constant 0 : index
    %c0_76 = arith.constant 0 : index
    %58 = vector.load %arg5[%c2_74, %c0_75, %c0_76] : memref<10x10x4xbf16, #tpu.memory_space<vmem>>, vector<8x8x4xbf16>
    %59 = vector.shape_cast %58 : vector<8x8x4xbf16> to vector<64x4xbf16>
    %c6 = arith.constant 6 : index
    %c0_77 = arith.constant 0 : index
    %c0_78 = arith.constant 0 : index
    %60 = vector.load %arg2[%c6, %c0_77, %c0_78] : memref<9x4x8xbf16, #tpu.memory_space<vmem>>, vector<1x4x8xbf16>
    %61 = vector.shape_cast %60 : vector<1x4x8xbf16> to vector<4x8xbf16>
    %cst_79 = arith.constant dense<0.000000e+00> : vector<64x8xf32>
    %62 = tpu.matmul %59, %61, %cst_79 {dimension_numbers = #tpu.dot_dimension_numbers<[1], [0], [0], [1], [0, 0, 1, 1], [], []>} : vector<64x4xbf16>, vector<4x8xbf16>, vector<64x8xf32> -> vector<64x8xf32>
    %63 = arith.addf %57, %62 : vector<64x8xf32>
    %c2_80 = arith.constant 2 : index
    %c1_81 = arith.constant 1 : index
    %c0_82 = arith.constant 0 : index
    %64 = vector.load %arg5[%c2_80, %c1_81, %c0_82] : memref<10x10x4xbf16, #tpu.memory_space<vmem>>, vector<8x8x4xbf16>
    %65 = vector.shape_cast %64 : vector<8x8x4xbf16> to vector<64x4xbf16>
    %c7 = arith.constant 7 : index
    %c0_83 = arith.constant 0 : index
    %c0_84 = arith.constant 0 : index
    %66 = vector.load %arg2[%c7, %c0_83, %c0_84] : memref<9x4x8xbf16, #tpu.memory_space<vmem>>, vector<1x4x8xbf16>
    %67 = vector.shape_cast %66 : vector<1x4x8xbf16> to vector<4x8xbf16>
    %cst_85 = arith.constant dense<0.000000e+00> : vector<64x8xf32>
    %68 = tpu.matmul %65, %67, %cst_85 {dimension_numbers = #tpu.dot_dimension_numbers<[1], [0], [0], [1], [0, 0, 1, 1], [], []>} : vector<64x4xbf16>, vector<4x8xbf16>, vector<64x8xf32> -> vector<64x8xf32>
    %69 = arith.addf %63, %68 : vector<64x8xf32>
    %c2_86 = arith.constant 2 : index
    %c2_87 = arith.constant 2 : index
    %c0_88 = arith.constant 0 : index
    %70 = vector.load %arg5[%c2_86, %c2_87, %c0_88] : memref<10x10x4xbf16, #tpu.memory_space<vmem>>, vector<8x8x4xbf16>
    %71 = vector.shape_cast %70 : vector<8x8x4xbf16> to vector<64x4xbf16>
    %c8 = arith.constant 8 : index
    %c0_89 = arith.constant 0 : index
    %c0_90 = arith.constant 0 : index
    %72 = vector.load %arg2[%c8, %c0_89, %c0_90] : memref<9x4x8xbf16, #tpu.memory_space<vmem>>, vector<1x4x8xbf16>
    %73 = vector.shape_cast %72 : vector<1x4x8xbf16> to vector<4x8xbf16>
    %cst_91 = arith.constant dense<0.000000e+00> : vector<64x8xf32>
    %74 = tpu.matmul %71, %73, %cst_91 {dimension_numbers = #tpu.dot_dimension_numbers<[1], [0], [0], [1], [0, 0, 1, 1], [], []>} : vector<64x4xbf16>, vector<4x8xbf16>, vector<64x8xf32> -> vector<64x8xf32>
    %75 = arith.addf %69, %74 : vector<64x8xf32>
    %76 = vector.shape_cast %75 : vector<64x8xf32> to vector<8x8x8xf32>
    %c0_92 = arith.constant 0 : index
    %c0_93 = arith.constant 0 : index
    %c0_94 = arith.constant 0 : index
    %c0_95 = arith.constant 0 : index
    %77 = vector.load %arg3[%c0_92, %c0_93, %c0_94, %c0_95] : memref<1x8x8x8xf32, #tpu.memory_space<vmem>>, vector<1x8x8x8xf32>
    %78 = vector.shape_cast %77 : vector<1x8x8x8xf32> to vector<8x8x8xf32>
    %79 = vector.shape_cast %76 : vector<8x8x8xf32> to vector<1x8x8x8xf32>
    tpu.vector_store %arg3[%c0_92, %c0_93, %c0_94, %c0_95], %79 {strides = array<i32>} : memref<1x8x8x8xf32, #tpu.memory_space<vmem>>, vector<1x8x8x8xf32>,
    %cst_96 = arith.constant dense<0.000000e+00> : vector<8xf32>
    %80 = vector.multi_reduction <add>, %75, %cst_96 [0] : vector<64x8xf32> to vector<8xf32>
    %81 = vector.shape_cast %80 : vector<8xf32> to vector<1x8xf32>
    %c0_97 = arith.constant 0 : index
    %c0_98 = arith.constant 0 : index
    %c0_99 = arith.constant 0 : index
    %82 = vector.load %arg4[%c0_97, %c0_98, %c0_99] : memref<1x2x8xf32, #tpu.memory_space<vmem>>, vector<1x1x8xf32>
    %83 = vector.shape_cast %82 : vector<1x1x8xf32> to vector<1x8xf32>
    %84 = vector.shape_cast %81 : vector<1x8xf32> to vector<1x1x8xf32>
    tpu.vector_store %arg4[%c0_97, %c0_98, %c0_99], %84 {strides = array<i32>} : memref<1x2x8xf32, #tpu.memory_space<vmem>>, vector<1x1x8xf32>,
    %85 = arith.mulf %75, %75 : vector<64x8xf32>
    %cst_100 = arith.constant dense<0.000000e+00> : vector<8xf32>
    %86 = vector.multi_reduction <add>, %85, %cst_100 [0] : vector<64x8xf32> to vector<8xf32>
    %87 = vector.shape_cast %86 : vector<8xf32> to vector<1x8xf32>
    %c0_101 = arith.constant 0 : index
    %c1_102 = arith.constant 1 : index
    %c0_103 = arith.constant 0 : index
    %88 = vector.load %arg4[%c0_101, %c1_102, %c0_103] : memref<1x2x8xf32, #tpu.memory_space<vmem>>, vector<1x1x8xf32>
    %89 = vector.shape_cast %88 : vector<1x1x8xf32> to vector<1x8xf32>
    %90 = vector.shape_cast %87 : vector<1x8xf32> to vector<1x1x8xf32>
    tpu.vector_store %arg4[%c0_101, %c1_102, %c0_103], %90 {strides = array<i32>} : memref<1x2x8xf32, #tpu.memory_space<vmem>>, vector<1x1x8xf32>,
    return
  }
  func.func @transform_0(%arg0: i32) -> (i32, i32, i32, i32, i32) {
    %c0_i32 = arith.constant 0 : i32
    %c0_i32_0 = arith.constant 0 : i32
    %c0_i32_1 = arith.constant 0 : i32
    %c0_i32_2 = arith.constant 0 : i32
    %c0_i32_3 = arith.constant 0 : i32
    return %arg0, %c0_i32, %c0_i32_0, %c0_i32_1, %c0_i32_2 : i32, i32, i32, i32, i32
  }
  func.func @transform_1(%arg0: i32) -> (i32, i32, i32) {
    %c0_i32 = arith.constant 0 : i32
    %c0_i32_0 = arith.constant 0 : i32
    %c0_i32_1 = arith.constant 0 : i32
    %c0_i32_2 = arith.constant 0 : i32
    return %c0_i32, %c0_i32_0, %c0_i32_1 : i32, i32, i32
  }
  func.func @transform_2(%arg0: i32) -> (i32, i32, i32, i32) {
    %c0_i32 = arith.constant 0 : i32
    %c0_i32_0 = arith.constant 0 : i32
    %c0_i32_1 = arith.constant 0 : i32
    %c0_i32_2 = arith.constant 0 : i32
    return %arg0, %c0_i32, %c0_i32_0, %c0_i32_1 : i32, i32, i32, i32
  }
  func.func @transform_3(%arg0: i32) -> (i32, i32, i32) {
    %c0_i32 = arith.constant 0 : i32
    %c0_i32_0 = arith.constant 0 : i32
    %c0_i32_1 = arith.constant 0 : i32
    return %arg0, %c0_i32, %c0_i32_0 : i32, i32, i32
  }
}

module attributes {stable_mosaic.version = 11 : i64} {
  func.func @_bn_relu_conv_kernel(%arg0: i32, %arg1: memref<1x8x8x8xf32, #tpu.memory_space<vmem>>, %arg2: memref<1x8xf32, #tpu.memory_space<vmem>>, %arg3: memref<1x8xf32, #tpu.memory_space<vmem>>, %arg4: memref<9x8x8xbf16, #tpu.memory_space<vmem>>, %arg5: memref<1x8x8x8xf32, #tpu.memory_space<vmem>>, %arg6: memref<1x2x8xf32, #tpu.memory_space<vmem>>, %arg7: memref<10x10x8xbf16, #tpu.memory_space<vmem>>) attributes {dimension_semantics = [#tpu.dimension_semantics<parallel>], iteration_bounds = array<i64: 2>, scalar_prefetch = 0 : i64, scratch_operands = 1 : i64, tpu.core_type = #tpu.core_type<tc>, window_params = [{transform_indices = @transform_0, window_bounds = array<i64: 1, 8, 8, 8>}, {pipeline_mode = #tpu.pipeline_mode<synchronous>, transform_indices = @transform_1, window_bounds = array<i64: 1, 8>}, {pipeline_mode = #tpu.pipeline_mode<synchronous>, transform_indices = @transform_2, window_bounds = array<i64: 1, 8>}, {pipeline_mode = #tpu.pipeline_mode<synchronous>, transform_indices = @transform_3, window_bounds = array<i64: 9, 8, 8>}, {transform_indices = @transform_4, window_bounds = array<i64: 1, 8, 8, 8>}, {transform_indices = @transform_5, window_bounds = array<i64: 1, 2, 8>}]} {
    %c0 = arith.constant 0 : index
    %c0_0 = arith.constant 0 : index
    %c0_1 = arith.constant 0 : index
    %c0_2 = arith.constant 0 : index
    %0 = vector.load %arg1[%c0, %c0_0, %c0_1, %c0_2] : memref<1x8x8x8xf32, #tpu.memory_space<vmem>>, vector<1x8x8x8xf32>
    %1 = vector.shape_cast %0 : vector<1x8x8x8xf32> to vector<8x8x8xf32>
    %c0_3 = arith.constant 0 : index
    %c0_4 = arith.constant 0 : index
    %2 = vector.load %arg2[%c0_3, %c0_4] : memref<1x8xf32, #tpu.memory_space<vmem>>, vector<1x8xf32>
    %3 = vector.shape_cast %2 : vector<1x8xf32> to vector<1x1x8xf32>
    %4 = vector.broadcast %3 : vector<1x1x8xf32> to vector<8x8x8xf32>
    %5 = arith.mulf %1, %4 : vector<8x8x8xf32>
    %c0_5 = arith.constant 0 : index
    %c0_6 = arith.constant 0 : index
    %6 = vector.load %arg3[%c0_5, %c0_6] : memref<1x8xf32, #tpu.memory_space<vmem>>, vector<1x8xf32>
    %7 = vector.shape_cast %6 : vector<1x8xf32> to vector<1x1x8xf32>
    %8 = vector.broadcast %7 : vector<1x1x8xf32> to vector<8x8x8xf32>
    %9 = arith.addf %5, %8 : vector<8x8x8xf32>
    %cst = arith.constant 0.000000e+00 : f32
    %10 = vector.broadcast %cst : f32 to vector<8x8x8xf32>
    %11 = arith.maximumf %9, %10 : vector<8x8x8xf32>
    %cst_7 = arith.constant 0.000000e+00 : bf16
    %12 = vector.broadcast %cst_7 : bf16 to vector<1x10x8xbf16>
    %c0_8 = arith.constant 0 : index
    %c0_9 = arith.constant 0 : index
    %c0_10 = arith.constant 0 : index
    %13 = vector.load %arg7[%c0_8, %c0_9, %c0_10] : memref<10x10x8xbf16, #tpu.memory_space<vmem>>, vector<1x10x8xbf16>
    tpu.vector_store %arg7[%c0_8, %c0_9, %c0_10], %12 {strides = array<i32>} : memref<10x10x8xbf16, #tpu.memory_space<vmem>>, vector<1x10x8xbf16>,
    %cst_11 = arith.constant 0.000000e+00 : bf16
    %14 = vector.broadcast %cst_11 : bf16 to vector<1x10x8xbf16>
    %c9 = arith.constant 9 : index
    %c0_12 = arith.constant 0 : index
    %c0_13 = arith.constant 0 : index
    %15 = vector.load %arg7[%c9, %c0_12, %c0_13] : memref<10x10x8xbf16, #tpu.memory_space<vmem>>, vector<1x10x8xbf16>
    tpu.vector_store %arg7[%c9, %c0_12, %c0_13], %14 {strides = array<i32>} : memref<10x10x8xbf16, #tpu.memory_space<vmem>>, vector<1x10x8xbf16>,
    %cst_14 = arith.constant 0.000000e+00 : bf16
    %16 = vector.broadcast %cst_14 : bf16 to vector<8x1x8xbf16>
    %c1 = arith.constant 1 : index
    %c0_15 = arith.constant 0 : index
    %c0_16 = arith.constant 0 : index
    %17 = vector.load %arg7[%c1, %c0_15, %c0_16] : memref<10x10x8xbf16, #tpu.memory_space<vmem>>, vector<8x1x8xbf16>
    tpu.vector_store %arg7[%c1, %c0_15, %c0_16], %16 {strides = array<i32>} : memref<10x10x8xbf16, #tpu.memory_space<vmem>>, vector<8x1x8xbf16>,
    %cst_17 = arith.constant 0.000000e+00 : bf16
    %18 = vector.broadcast %cst_17 : bf16 to vector<8x1x8xbf16>
    %c1_18 = arith.constant 1 : index
    %c9_19 = arith.constant 9 : index
    %c0_20 = arith.constant 0 : index
    %19 = vector.load %arg7[%c1_18, %c9_19, %c0_20] : memref<10x10x8xbf16, #tpu.memory_space<vmem>>, vector<8x1x8xbf16>
    tpu.vector_store %arg7[%c1_18, %c9_19, %c0_20], %18 {strides = array<i32>} : memref<10x10x8xbf16, #tpu.memory_space<vmem>>, vector<8x1x8xbf16>,
    %20 = arith.truncf %11 : vector<8x8x8xf32> to vector<8x8x8xbf16>
    %c1_21 = arith.constant 1 : index
    %c1_22 = arith.constant 1 : index
    %c0_23 = arith.constant 0 : index
    %21 = vector.load %arg7[%c1_21, %c1_22, %c0_23] : memref<10x10x8xbf16, #tpu.memory_space<vmem>>, vector<8x8x8xbf16>
    tpu.vector_store %arg7[%c1_21, %c1_22, %c0_23], %20 {strides = array<i32>} : memref<10x10x8xbf16, #tpu.memory_space<vmem>>, vector<8x8x8xbf16>,
    %cst_24 = arith.constant 0.000000e+00 : f32
    %22 = vector.broadcast %cst_24 : f32 to vector<64x8xf32>
    %c0_25 = arith.constant 0 : index
    %c0_26 = arith.constant 0 : index
    %c0_27 = arith.constant 0 : index
    %23 = vector.load %arg7[%c0_25, %c0_26, %c0_27] : memref<10x10x8xbf16, #tpu.memory_space<vmem>>, vector<8x8x8xbf16>
    %24 = vector.shape_cast %23 : vector<8x8x8xbf16> to vector<64x8xbf16>
    %c0_28 = arith.constant 0 : index
    %c0_29 = arith.constant 0 : index
    %c0_30 = arith.constant 0 : index
    %25 = vector.load %arg4[%c0_28, %c0_29, %c0_30] : memref<9x8x8xbf16, #tpu.memory_space<vmem>>, vector<1x8x8xbf16>
    %26 = vector.shape_cast %25 : vector<1x8x8xbf16> to vector<8x8xbf16>
    %cst_31 = arith.constant dense<0.000000e+00> : vector<64x8xf32>
    %27 = tpu.matmul %24, %26, %cst_31 {dimension_numbers = #tpu.dot_dimension_numbers<[1], [0], [0], [1], [0, 0, 1, 1], [], []>} : vector<64x8xbf16>, vector<8x8xbf16>, vector<64x8xf32> -> vector<64x8xf32>
    %28 = arith.addf %22, %27 : vector<64x8xf32>
    %c0_32 = arith.constant 0 : index
    %c1_33 = arith.constant 1 : index
    %c0_34 = arith.constant 0 : index
    %29 = vector.load %arg7[%c0_32, %c1_33, %c0_34] : memref<10x10x8xbf16, #tpu.memory_space<vmem>>, vector<8x8x8xbf16>
    %30 = vector.shape_cast %29 : vector<8x8x8xbf16> to vector<64x8xbf16>
    %c1_35 = arith.constant 1 : index
    %c0_36 = arith.constant 0 : index
    %c0_37 = arith.constant 0 : index
    %31 = vector.load %arg4[%c1_35, %c0_36, %c0_37] : memref<9x8x8xbf16, #tpu.memory_space<vmem>>, vector<1x8x8xbf16>
    %32 = vector.shape_cast %31 : vector<1x8x8xbf16> to vector<8x8xbf16>
    %cst_38 = arith.constant dense<0.000000e+00> : vector<64x8xf32>
    %33 = tpu.matmul %30, %32, %cst_38 {dimension_numbers = #tpu.dot_dimension_numbers<[1], [0], [0], [1], [0, 0, 1, 1], [], []>} : vector<64x8xbf16>, vector<8x8xbf16>, vector<64x8xf32> -> vector<64x8xf32>
    %34 = arith.addf %28, %33 : vector<64x8xf32>
    %c0_39 = arith.constant 0 : index
    %c2 = arith.constant 2 : index
    %c0_40 = arith.constant 0 : index
    %35 = vector.load %arg7[%c0_39, %c2, %c0_40] : memref<10x10x8xbf16, #tpu.memory_space<vmem>>, vector<8x8x8xbf16>
    %36 = vector.shape_cast %35 : vector<8x8x8xbf16> to vector<64x8xbf16>
    %c2_41 = arith.constant 2 : index
    %c0_42 = arith.constant 0 : index
    %c0_43 = arith.constant 0 : index
    %37 = vector.load %arg4[%c2_41, %c0_42, %c0_43] : memref<9x8x8xbf16, #tpu.memory_space<vmem>>, vector<1x8x8xbf16>
    %38 = vector.shape_cast %37 : vector<1x8x8xbf16> to vector<8x8xbf16>
    %cst_44 = arith.constant dense<0.000000e+00> : vector<64x8xf32>
    %39 = tpu.matmul %36, %38, %cst_44 {dimension_numbers = #tpu.dot_dimension_numbers<[1], [0], [0], [1], [0, 0, 1, 1], [], []>} : vector<64x8xbf16>, vector<8x8xbf16>, vector<64x8xf32> -> vector<64x8xf32>
    %40 = arith.addf %34, %39 : vector<64x8xf32>
    %c1_45 = arith.constant 1 : index
    %c0_46 = arith.constant 0 : index
    %c0_47 = arith.constant 0 : index
    %41 = vector.load %arg7[%c1_45, %c0_46, %c0_47] : memref<10x10x8xbf16, #tpu.memory_space<vmem>>, vector<8x8x8xbf16>
    %42 = vector.shape_cast %41 : vector<8x8x8xbf16> to vector<64x8xbf16>
    %c3 = arith.constant 3 : index
    %c0_48 = arith.constant 0 : index
    %c0_49 = arith.constant 0 : index
    %43 = vector.load %arg4[%c3, %c0_48, %c0_49] : memref<9x8x8xbf16, #tpu.memory_space<vmem>>, vector<1x8x8xbf16>
    %44 = vector.shape_cast %43 : vector<1x8x8xbf16> to vector<8x8xbf16>
    %cst_50 = arith.constant dense<0.000000e+00> : vector<64x8xf32>
    %45 = tpu.matmul %42, %44, %cst_50 {dimension_numbers = #tpu.dot_dimension_numbers<[1], [0], [0], [1], [0, 0, 1, 1], [], []>} : vector<64x8xbf16>, vector<8x8xbf16>, vector<64x8xf32> -> vector<64x8xf32>
    %46 = arith.addf %40, %45 : vector<64x8xf32>
    %c1_51 = arith.constant 1 : index
    %c1_52 = arith.constant 1 : index
    %c0_53 = arith.constant 0 : index
    %47 = vector.load %arg7[%c1_51, %c1_52, %c0_53] : memref<10x10x8xbf16, #tpu.memory_space<vmem>>, vector<8x8x8xbf16>
    %48 = vector.shape_cast %47 : vector<8x8x8xbf16> to vector<64x8xbf16>
    %c4 = arith.constant 4 : index
    %c0_54 = arith.constant 0 : index
    %c0_55 = arith.constant 0 : index
    %49 = vector.load %arg4[%c4, %c0_54, %c0_55] : memref<9x8x8xbf16, #tpu.memory_space<vmem>>, vector<1x8x8xbf16>
    %50 = vector.shape_cast %49 : vector<1x8x8xbf16> to vector<8x8xbf16>
    %cst_56 = arith.constant dense<0.000000e+00> : vector<64x8xf32>
    %51 = tpu.matmul %48, %50, %cst_56 {dimension_numbers = #tpu.dot_dimension_numbers<[1], [0], [0], [1], [0, 0, 1, 1], [], []>} : vector<64x8xbf16>, vector<8x8xbf16>, vector<64x8xf32> -> vector<64x8xf32>
    %52 = arith.addf %46, %51 : vector<64x8xf32>
    %c1_57 = arith.constant 1 : index
    %c2_58 = arith.constant 2 : index
    %c0_59 = arith.constant 0 : index
    %53 = vector.load %arg7[%c1_57, %c2_58, %c0_59] : memref<10x10x8xbf16, #tpu.memory_space<vmem>>, vector<8x8x8xbf16>
    %54 = vector.shape_cast %53 : vector<8x8x8xbf16> to vector<64x8xbf16>
    %c5 = arith.constant 5 : index
    %c0_60 = arith.constant 0 : index
    %c0_61 = arith.constant 0 : index
    %55 = vector.load %arg4[%c5, %c0_60, %c0_61] : memref<9x8x8xbf16, #tpu.memory_space<vmem>>, vector<1x8x8xbf16>
    %56 = vector.shape_cast %55 : vector<1x8x8xbf16> to vector<8x8xbf16>
    %cst_62 = arith.constant dense<0.000000e+00> : vector<64x8xf32>
    %57 = tpu.matmul %54, %56, %cst_62 {dimension_numbers = #tpu.dot_dimension_numbers<[1], [0], [0], [1], [0, 0, 1, 1], [], []>} : vector<64x8xbf16>, vector<8x8xbf16>, vector<64x8xf32> -> vector<64x8xf32>
    %58 = arith.addf %52, %57 : vector<64x8xf32>
    %c2_63 = arith.constant 2 : index
    %c0_64 = arith.constant 0 : index
    %c0_65 = arith.constant 0 : index
    %59 = vector.load %arg7[%c2_63, %c0_64, %c0_65] : memref<10x10x8xbf16, #tpu.memory_space<vmem>>, vector<8x8x8xbf16>
    %60 = vector.shape_cast %59 : vector<8x8x8xbf16> to vector<64x8xbf16>
    %c6 = arith.constant 6 : index
    %c0_66 = arith.constant 0 : index
    %c0_67 = arith.constant 0 : index
    %61 = vector.load %arg4[%c6, %c0_66, %c0_67] : memref<9x8x8xbf16, #tpu.memory_space<vmem>>, vector<1x8x8xbf16>
    %62 = vector.shape_cast %61 : vector<1x8x8xbf16> to vector<8x8xbf16>
    %cst_68 = arith.constant dense<0.000000e+00> : vector<64x8xf32>
    %63 = tpu.matmul %60, %62, %cst_68 {dimension_numbers = #tpu.dot_dimension_numbers<[1], [0], [0], [1], [0, 0, 1, 1], [], []>} : vector<64x8xbf16>, vector<8x8xbf16>, vector<64x8xf32> -> vector<64x8xf32>
    %64 = arith.addf %58, %63 : vector<64x8xf32>
    %c2_69 = arith.constant 2 : index
    %c1_70 = arith.constant 1 : index
    %c0_71 = arith.constant 0 : index
    %65 = vector.load %arg7[%c2_69, %c1_70, %c0_71] : memref<10x10x8xbf16, #tpu.memory_space<vmem>>, vector<8x8x8xbf16>
    %66 = vector.shape_cast %65 : vector<8x8x8xbf16> to vector<64x8xbf16>
    %c7 = arith.constant 7 : index
    %c0_72 = arith.constant 0 : index
    %c0_73 = arith.constant 0 : index
    %67 = vector.load %arg4[%c7, %c0_72, %c0_73] : memref<9x8x8xbf16, #tpu.memory_space<vmem>>, vector<1x8x8xbf16>
    %68 = vector.shape_cast %67 : vector<1x8x8xbf16> to vector<8x8xbf16>
    %cst_74 = arith.constant dense<0.000000e+00> : vector<64x8xf32>
    %69 = tpu.matmul %66, %68, %cst_74 {dimension_numbers = #tpu.dot_dimension_numbers<[1], [0], [0], [1], [0, 0, 1, 1], [], []>} : vector<64x8xbf16>, vector<8x8xbf16>, vector<64x8xf32> -> vector<64x8xf32>
    %70 = arith.addf %64, %69 : vector<64x8xf32>
    %c2_75 = arith.constant 2 : index
    %c2_76 = arith.constant 2 : index
    %c0_77 = arith.constant 0 : index
    %71 = vector.load %arg7[%c2_75, %c2_76, %c0_77] : memref<10x10x8xbf16, #tpu.memory_space<vmem>>, vector<8x8x8xbf16>
    %72 = vector.shape_cast %71 : vector<8x8x8xbf16> to vector<64x8xbf16>
    %c8 = arith.constant 8 : index
    %c0_78 = arith.constant 0 : index
    %c0_79 = arith.constant 0 : index
    %73 = vector.load %arg4[%c8, %c0_78, %c0_79] : memref<9x8x8xbf16, #tpu.memory_space<vmem>>, vector<1x8x8xbf16>
    %74 = vector.shape_cast %73 : vector<1x8x8xbf16> to vector<8x8xbf16>
    %cst_80 = arith.constant dense<0.000000e+00> : vector<64x8xf32>
    %75 = tpu.matmul %72, %74, %cst_80 {dimension_numbers = #tpu.dot_dimension_numbers<[1], [0], [0], [1], [0, 0, 1, 1], [], []>} : vector<64x8xbf16>, vector<8x8xbf16>, vector<64x8xf32> -> vector<64x8xf32>
    %76 = arith.addf %70, %75 : vector<64x8xf32>
    %77 = vector.shape_cast %76 : vector<64x8xf32> to vector<8x8x8xf32>
    %c0_81 = arith.constant 0 : index
    %c0_82 = arith.constant 0 : index
    %c0_83 = arith.constant 0 : index
    %c0_84 = arith.constant 0 : index
    %78 = vector.load %arg5[%c0_81, %c0_82, %c0_83, %c0_84] : memref<1x8x8x8xf32, #tpu.memory_space<vmem>>, vector<1x8x8x8xf32>
    %79 = vector.shape_cast %78 : vector<1x8x8x8xf32> to vector<8x8x8xf32>
    %80 = vector.shape_cast %77 : vector<8x8x8xf32> to vector<1x8x8x8xf32>
    tpu.vector_store %arg5[%c0_81, %c0_82, %c0_83, %c0_84], %80 {strides = array<i32>} : memref<1x8x8x8xf32, #tpu.memory_space<vmem>>, vector<1x8x8x8xf32>,
    %cst_85 = arith.constant dense<0.000000e+00> : vector<8xf32>
    %81 = vector.multi_reduction <add>, %76, %cst_85 [0] : vector<64x8xf32> to vector<8xf32>
    %82 = vector.shape_cast %81 : vector<8xf32> to vector<1x8xf32>
    %c0_86 = arith.constant 0 : index
    %c0_87 = arith.constant 0 : index
    %c0_88 = arith.constant 0 : index
    %83 = vector.load %arg6[%c0_86, %c0_87, %c0_88] : memref<1x2x8xf32, #tpu.memory_space<vmem>>, vector<1x1x8xf32>
    %84 = vector.shape_cast %83 : vector<1x1x8xf32> to vector<1x8xf32>
    %85 = vector.shape_cast %82 : vector<1x8xf32> to vector<1x1x8xf32>
    tpu.vector_store %arg6[%c0_86, %c0_87, %c0_88], %85 {strides = array<i32>} : memref<1x2x8xf32, #tpu.memory_space<vmem>>, vector<1x1x8xf32>,
    %86 = arith.mulf %76, %76 : vector<64x8xf32>
    %cst_89 = arith.constant dense<0.000000e+00> : vector<8xf32>
    %87 = vector.multi_reduction <add>, %86, %cst_89 [0] : vector<64x8xf32> to vector<8xf32>
    %88 = vector.shape_cast %87 : vector<8xf32> to vector<1x8xf32>
    %c0_90 = arith.constant 0 : index
    %c1_91 = arith.constant 1 : index
    %c0_92 = arith.constant 0 : index
    %89 = vector.load %arg6[%c0_90, %c1_91, %c0_92] : memref<1x2x8xf32, #tpu.memory_space<vmem>>, vector<1x1x8xf32>
    %90 = vector.shape_cast %89 : vector<1x1x8xf32> to vector<1x8xf32>
    %91 = vector.shape_cast %88 : vector<1x8xf32> to vector<1x1x8xf32>
    tpu.vector_store %arg6[%c0_90, %c1_91, %c0_92], %91 {strides = array<i32>} : memref<1x2x8xf32, #tpu.memory_space<vmem>>, vector<1x1x8xf32>,
    return
  }
  func.func @transform_0(%arg0: i32) -> (i32, i32, i32, i32) {
    %c0_i32 = arith.constant 0 : i32
    %c0_i32_0 = arith.constant 0 : i32
    %c0_i32_1 = arith.constant 0 : i32
    %c0_i32_2 = arith.constant 0 : i32
    return %arg0, %c0_i32, %c0_i32_0, %c0_i32_1 : i32, i32, i32, i32
  }
  func.func @transform_1(%arg0: i32) -> (i32, i32) {
    %c0_i32 = arith.constant 0 : i32
    %c0_i32_0 = arith.constant 0 : i32
    %c0_i32_1 = arith.constant 0 : i32
    return %c0_i32, %c0_i32_0 : i32, i32
  }
  func.func @transform_2(%arg0: i32) -> (i32, i32) {
    %c0_i32 = arith.constant 0 : i32
    %c0_i32_0 = arith.constant 0 : i32
    %c0_i32_1 = arith.constant 0 : i32
    return %c0_i32, %c0_i32_0 : i32, i32
  }
  func.func @transform_3(%arg0: i32) -> (i32, i32, i32) {
    %c0_i32 = arith.constant 0 : i32
    %c0_i32_0 = arith.constant 0 : i32
    %c0_i32_1 = arith.constant 0 : i32
    %c0_i32_2 = arith.constant 0 : i32
    return %c0_i32, %c0_i32_0, %c0_i32_1 : i32, i32, i32
  }
  func.func @transform_4(%arg0: i32) -> (i32, i32, i32, i32) {
    %c0_i32 = arith.constant 0 : i32
    %c0_i32_0 = arith.constant 0 : i32
    %c0_i32_1 = arith.constant 0 : i32
    %c0_i32_2 = arith.constant 0 : i32
    return %arg0, %c0_i32, %c0_i32_0, %c0_i32_1 : i32, i32, i32, i32
  }
  func.func @transform_5(%arg0: i32) -> (i32, i32, i32) {
    %c0_i32 = arith.constant 0 : i32
    %c0_i32_0 = arith.constant 0 : i32
    %c0_i32_1 = arith.constant 0 : i32
    return %arg0, %c0_i32, %c0_i32_0 : i32, i32, i32
  }
}

module attributes {stable_mosaic.version = 11 : i64} {
  func.func @_bn_relu_kernel(%arg0: i32, %arg1: memref<1x8x8x8xf32, #tpu.memory_space<vmem>>, %arg2: memref<1x8xf32, #tpu.memory_space<vmem>>, %arg3: memref<1x8xf32, #tpu.memory_space<vmem>>, %arg4: memref<1x8x8x8xf32, #tpu.memory_space<vmem>>) attributes {dimension_semantics = [#tpu.dimension_semantics<parallel>], iteration_bounds = array<i64: 2>, scalar_prefetch = 0 : i64, scratch_operands = 0 : i64, tpu.core_type = #tpu.core_type<tc>, window_params = [{transform_indices = @transform_0, window_bounds = array<i64: 1, 8, 8, 8>}, {pipeline_mode = #tpu.pipeline_mode<synchronous>, transform_indices = @transform_1, window_bounds = array<i64: 1, 8>}, {pipeline_mode = #tpu.pipeline_mode<synchronous>, transform_indices = @transform_2, window_bounds = array<i64: 1, 8>}, {transform_indices = @transform_3, window_bounds = array<i64: 1, 8, 8, 8>}]} {
    %c0 = arith.constant 0 : index
    %c0_0 = arith.constant 0 : index
    %c0_1 = arith.constant 0 : index
    %c0_2 = arith.constant 0 : index
    %0 = vector.load %arg1[%c0, %c0_0, %c0_1, %c0_2] : memref<1x8x8x8xf32, #tpu.memory_space<vmem>>, vector<1x8x8x8xf32>
    %1 = vector.shape_cast %0 : vector<1x8x8x8xf32> to vector<8x8x8xf32>
    %c0_3 = arith.constant 0 : index
    %c0_4 = arith.constant 0 : index
    %2 = vector.load %arg2[%c0_3, %c0_4] : memref<1x8xf32, #tpu.memory_space<vmem>>, vector<1x8xf32>
    %3 = vector.shape_cast %2 : vector<1x8xf32> to vector<1x1x8xf32>
    %4 = vector.broadcast %3 : vector<1x1x8xf32> to vector<8x8x8xf32>
    %5 = arith.mulf %1, %4 : vector<8x8x8xf32>
    %c0_5 = arith.constant 0 : index
    %c0_6 = arith.constant 0 : index
    %6 = vector.load %arg3[%c0_5, %c0_6] : memref<1x8xf32, #tpu.memory_space<vmem>>, vector<1x8xf32>
    %7 = vector.shape_cast %6 : vector<1x8xf32> to vector<1x1x8xf32>
    %8 = vector.broadcast %7 : vector<1x1x8xf32> to vector<8x8x8xf32>
    %9 = arith.addf %5, %8 : vector<8x8x8xf32>
    %cst = arith.constant 0.000000e+00 : f32
    %10 = vector.broadcast %cst : f32 to vector<8x8x8xf32>
    %11 = arith.maximumf %9, %10 : vector<8x8x8xf32>
    %c0_7 = arith.constant 0 : index
    %c0_8 = arith.constant 0 : index
    %c0_9 = arith.constant 0 : index
    %c0_10 = arith.constant 0 : index
    %12 = vector.load %arg4[%c0_7, %c0_8, %c0_9, %c0_10] : memref<1x8x8x8xf32, #tpu.memory_space<vmem>>, vector<1x8x8x8xf32>
    %13 = vector.shape_cast %12 : vector<1x8x8x8xf32> to vector<8x8x8xf32>
    %14 = vector.shape_cast %11 : vector<8x8x8xf32> to vector<1x8x8x8xf32>
    tpu.vector_store %arg4[%c0_7, %c0_8, %c0_9, %c0_10], %14 {strides = array<i32>} : memref<1x8x8x8xf32, #tpu.memory_space<vmem>>, vector<1x8x8x8xf32>,
    return
  }
  func.func @transform_0(%arg0: i32) -> (i32, i32, i32, i32) {
    %c0_i32 = arith.constant 0 : i32
    %c0_i32_0 = arith.constant 0 : i32
    %c0_i32_1 = arith.constant 0 : i32
    %c0_i32_2 = arith.constant 0 : i32
    return %arg0, %c0_i32, %c0_i32_0, %c0_i32_1 : i32, i32, i32, i32
  }
  func.func @transform_1(%arg0: i32) -> (i32, i32) {
    %c0_i32 = arith.constant 0 : i32
    %c0_i32_0 = arith.constant 0 : i32
    %c0_i32_1 = arith.constant 0 : i32
    return %c0_i32, %c0_i32_0 : i32, i32
  }
  func.func @transform_2(%arg0: i32) -> (i32, i32) {
    %c0_i32 = arith.constant 0 : i32
    %c0_i32_0 = arith.constant 0 : i32
    %c0_i32_1 = arith.constant 0 : i32
    return %c0_i32, %c0_i32_0 : i32, i32
  }
  func.func @transform_3(%arg0: i32) -> (i32, i32, i32, i32) {
    %c0_i32 = arith.constant 0 : i32
    %c0_i32_0 = arith.constant 0 : i32
    %c0_i32_1 = arith.constant 0 : i32
    %c0_i32_2 = arith.constant 0 : i32
    return %arg0, %c0_i32, %c0_i32_0, %c0_i32_1 : i32, i32, i32, i32
  }
}

</mosaic_0001>

<bundles_post_ra>
// kernel: down_forward.5
= control target key start
LH: loop header
LB: loop body
LE: loop exit
PB: predicated region body
PF: predicated region fallthrough
CT: control target
= control target key end

     0   :  { %s332_s12 = smov 0   ;;  %s363_s0 = inlined_call_operand.vmem [shape: f32[2,8,8,8], index: 0, kind: input, shape index: {}]   ;;  %s364_s1 = inlined_call_operand.vmem [shape: f32[1,8], index: 1, kind: input, shape index: {}]   ;;  %s365_s2 = inlined_call_operand.vmem [shape: f32[1,8], index: 2, kind: input, shape index: {}]   ;;  %s366_s3 = inlined_call_operand.vmem [shape: f32[2,8,8,8], index: 3, kind: output, shape index: {}]  }
   0x1 LB: > { %s281_s13 = sadd.s32 4294967295, %s310_s12   ;;  %p285_p0 = scmp.ge.s32.totalorder %s310_s12, 1  ;;  %s310_s12 = sphi %s332_s12, %s13_s12  }
   0x2   : > { %p137_p1 = scmp.lt.s32.totalorder %s310_s12, 3 }
   0x4   : > { %p138_p2 = pnand %p285_p0, %p137_p1 }
   0x5   : > { %p161_p3 = scmp.lt.s32.totalorder (!%p138_p2), %s281_s13, 1 }
   0x6   : > { %141 = sbr.rel (%p138_p2) target bundleno = 25 (0x19), region = 32 }
   0xb   : > { %s368_s13 = smov (!%p161_p3, %s281_s13), 1  ;;  %v290_v0 = vld [vmem:[%s364_s1] ss:$0 sm:$0xff]  ;;  %vm217_vm0 = vcmask 64512  }
   0xc   : > { %s294_s14 = sshll.u32 %s368_s13, 6  ;;  %v291_v1 = vld [vmem:[%s365_s2] ss:$0 sm:$0xff] }
   0xd   : > { %s165_s19 = scalar_lea.vmem %s363_s0, %s294_s14  ;;  %s170_s24 = scalar_lea.vmem %s366_s3, %s294_s14 }
   0xe   : > { %v171_v2 = vld [vmem:[%s165_s19] sm:$0xff]  ;;  %v172_v3 = vld [vmem:[%s165_s19 + $0x8] sm:$0xff]  ;;  %v173_v4 = vld [vmem:[%s165_s19 + $0x10] sm:$0xff] }
   0xf   : > { %v186_v5 = vmul.f32 %v290_v0, %v171_v2  ;;  %v187_v6 = vmul.f32 %v290_v0, %v172_v3  ;;  %v188_v7 = vmul.f32 %v290_v0, %v173_v4  ;;  %v174_v8 = vld [vmem:[%s165_s19 + $0x18] sm:$0xff]  ;;  %v175_v9 = vld [vmem:[%s165_s19 + $0x20] sm:$0xff]  ;;  %v176_v10 = vld [vmem:[%s165_s19 + $0x28] sm:$0xff] }
  0x10   : > { %v189_v11 = vmul.f32 %v290_v0, %v174_v8  ;;  %v190_v12 = vmul.f32 %v290_v0, %v175_v9  ;;  %v191_v13 = vmul.f32 %v290_v0, %v176_v10  ;;  %v177_v14 = vld [vmem:[%s165_s19 + $0x30] sm:$0xff]  ;;  %v178_v15 = vld [vmem:[%s165_s19 + $0x38] sm:$0xff] }
  0x11   : > { %v201_v16 = vadd.f32 %v291_v1, %v186_v5  ;;  %v202_v17 = vadd.f32 %v291_v1, %v187_v6  ;;  %v203_v18 = vadd.f32 %v291_v1, %v188_v7  ;;  %v192_v19 = vmul.f32 %v290_v0, %v177_v14 }
  0x12   : > { %v204_v20 = vadd.f32 %v291_v1, %v189_v11  ;;  %v205_v21 = vadd.f32 %v291_v1, %v190_v12  ;;  %v206_v22 = vadd.f32 %v291_v1, %v191_v13  ;;  %v193_v23 = vmul.f32 %v290_v0, %v178_v15 }
  0x13   : > { %v209_v24 = vmax.f32 %v201_v16, 0.0  ;;  %v210_v25 = vmax.f32 %v202_v17, 0.0  ;;  %v211_v26 = vmax.f32 %v203_v18, 0.0  ;;  %v207_v27 = vadd.f32 %v291_v1, %v192_v19 }
  0x14   : > { %v212_v28 = vmax.f32 %v204_v20, 0.0  ;;  %v213_v29 = vmax.f32 %v205_v21, 0.0  ;;  %v214_v30 = vmax.f32 %v206_v22, 0.0  ;;  %v208_v31 = vadd.f32 %v291_v1, %v193_v23 }
  0x15   : > { %218 = vst.msk [vmem:[%s170_s24] sm:$0xff] %vm217_vm0, %v209_v24  ;;  %219 = vst.msk [vmem:[%s170_s24 + $0x8] sm:$0xff] %vm217_vm0, %v210_v25  ;;  %v215_v32 = vmax.f32 %v207_v27, 0.0 }
  0x16   : > { %220 = vst.msk [vmem:[%s170_s24 + $0x10] sm:$0xff] %vm217_vm0, %v211_v26  ;;  %221 = vst.msk [vmem:[%s170_s24 + $0x18] sm:$0xff] %vm217_vm0, %v212_v28  ;;  %v216_v33 = vmax.f32 %v208_v31, 0.0 }
  0x17   : > { %222 = vst.msk [vmem:[%s170_s24 + $0x20] sm:$0xff] %vm217_vm0, %v213_v29  ;;  %223 = vst.msk [vmem:[%s170_s24 + $0x28] sm:$0xff] %vm217_vm0, %v214_v30 }
  0x18   : > { %224 = vst.msk [vmem:[%s170_s24 + $0x30] sm:$0xff] %vm217_vm0, %v215_v32  ;;  %225 = vst.msk [vmem:[%s170_s24 + $0x38] sm:$0xff] %vm217_vm0, %v216_v33 }
  0x19 PF: > { %s13_s12 = sadd.s32 1, %s310_s12  }
  0x1a   : > { %p10_p4 = scmp.ge.s32.totalorder %s13_s12, 4  }
  0x1c   :  { %12 = sbr.rel (!%p10_p4) target bundleno = 1 (0x1), region = 62 }

// kernel: down_forward.3
= control target key start
LH: loop header
LB: loop body
LE: loop exit
PB: predicated region body
PF: predicated region fallthrough
CT: control target
= control target key end

     0   :  { %s2469_s12 = smov 0   ;;  %s3093_s0 = inlined_call_operand.vmem [shape: f32[2,4,8,8,4], index: 0, kind: input, shape index: {}]   ;;  %s3094_s1 = inlined_call_operand.vmem [shape: bf16[9,4,8], index: 1, kind: input, shape index: {}]   ;;  %s3095_s2 = inlined_call_operand.vmem [shape: f32[2,8,8,8], index: 2, kind: output, shape index: {0}]   ;;  %s3096_s3 = inlined_call_operand.vmem [shape: f32[2,2,8], index: 3, kind: output, shape index: {1}]  }
   0x1 LB: > { %s2115_s13 = sadd.s32 4294967295, %s2446_s12   ;;  %p2119_p0 = scmp.ge.s32.totalorder %s2446_s12, 1  ;;  %s2446_s12 = sphi %s2469_s12, %s14_s12  }
   0x2   : > { %p140_p1 = scmp.lt.s32.totalorder %s2446_s12, 3 }
   0x4   : > { %p141_p2 = pnand %p2119_p0, %p140_p1 }
   0x5   : > { %p168_p3 = scmp.lt.s32.totalorder (!%p141_p2), %s2115_s13, 1 }
   0x6   : > { %144 = sbr.rel (%p141_p2) target bundleno = 372 (0x174), region = 28 }
   0xb   : > { %v2157_v0 = vld [vmem:[%s3094_s1 + $0x2] sm:$0x3]  ;;  %vm624_vm0 = vcmask 1041408   ;;  %vm242_vm1 = vcmask 27648   ;;  %v2448_v2 = vmov 0   ;;  %vm244_vm2 = vcmask 24576  }
   0xc   : > { %2411 = vmatprep.subr.msk.bf16.mxu1 %vm624_vm0, %v2157_v0  ;;  %2410 = vmatprep.subr.msk.bf16.mxu0 %vm624_vm0, %v2157_v0  ;;  %v626_v1 = vsel %vm624_vm0, %v2157_v0, 0  ;;  %243 = vst.msk [vmem:[#allocation2] sm:$0xf] %vm242_vm1, %v2448_v2  ;;  %vm251_vm3 = vsmask.f32 256  ;;  %s3108_s13 = smov (!%p168_p3, %s2115_s13), 1 }
   0xd   : > { %v253_v3 = vld [vmem:[#allocation2 + $0x8] sm:$0x1]  ;;  %247 = vst.msk [vmem:[#allocation2 + $0x48] sm:$0xf] %vm242_vm1, %v2448_v2  ;;  %2409 = vmatpush3.bf16.msra.mxu1 %v626_v1  ;;  %2319 = vmatpush3.bf16.msra.mxu0 %v626_v1  ;;  %vm2487_vm4 = vmand %vm244_vm2, %vm251_vm3  ;;  %vm277_vm5 = vsmask.f32 7938 }
   0xe   : > { %245 = vst.msk [vmem:[#allocation2 + $0x4] sm:$0x1] %vm244_vm2, %v2448_v2  ;;  %v279_v5 = vld [vmem:[#allocation2 + $0xc] sm:$0x1]  ;;  %248 = vst.msk [vmem:[#allocation2 + $0x4c] sm:$0x1] %vm244_vm2, %v2448_v2 }
   0xf   : > { %v254_v6 = vsel %vm2487_vm4, 0, %v253_v3  ;;  %vm2494_vm6 = vmand %vm244_vm2, %vm277_vm5  ;;  %s2263_s16 = sshll.u32 %s3108_s13, 8  ;;  %v262_v9 = vld [vmem:[#allocation2 + $0x20] sm:$0x1]  ;;  %v265_v10 = vld [vmem:[#allocation2 + $0x28] sm:$0x1] }
  0x10   : > { %255 = vst [vmem:[#allocation2 + $0x8] sm:$0x1] %v254_v6  ;;  %v280_v8 = vsel %vm2494_vm6, 0, %v279_v5  ;;  %s2504_s19 = scalar_lea.vmem %s3093_s0, %s2263_s16  ;;  %v263_v11 = vsel %vm2487_vm4, 0, %v262_v9  ;;  %v266_v12 = vsel %vm2487_vm4, 0, %v265_v10  ;;  %vm2555_vm7 = vmand %vm242_vm1, %vm277_vm5  ;;  %vm611_vm11 = vcmask 31744  }
  0x11   : > { %281 = vst [vmem:[#allocation2 + $0xc] sm:$0x1] %v280_v8  ;;  %v288_v13 = vld [vmem:[#allocation2 + $0x24] sm:$0x1]  ;;  %v291_v14 = vld [vmem:[#allocation2 + $0x2c] sm:$0x1] }
  0x12   : > { %v183_v15 = vld [vmem:[%s2504_s19] sm:$0xff]  ;;  %264 = vst [vmem:[#allocation2 + $0x20] sm:$0x1] %v263_v11  ;;  %267 = vst [vmem:[#allocation2 + $0x28] sm:$0x1] %v266_v12  ;;  %v289_v18 = vsel %vm2494_vm6, 0, %v288_v13 }
  0x13   : > { %v2125_v16 = vld [vmem:[%s2504_s19 + $0x40] sm:$0xff]  ;;  %v292_v19 = vsel %vm2494_vm6, 0, %v291_v14  ;;  %v186_v22 = vld [vmem:[%s2504_s19 + $0x18] sm:$0xff]  ;;  %290 = vst [vmem:[#allocation2 + $0x24] sm:$0x1] %v289_v18  ;;  %v184_v41 = vld [vmem:[%s2504_s19 + $0x8] sm:$0xff] }
  0x14   : > { %v2133_v17 = vld [vmem:[%s2504_s19 + $0x80] sm:$0xff]  ;;  %v200_v20 = vmax.f32 %v183_v15, %v2125_v16  ;;  %293 = vst [vmem:[#allocation2 + $0x2c] sm:$0x1] %v292_v19  ;;  %v2128_v26 = vld [vmem:[%s2504_s19 + $0x58] sm:$0xff]  ;;  %v185_v43 = vld [vmem:[%s2504_s19 + $0x10] sm:$0xff]  ;;  %vm817_vm12 = vcmask 1042432  }
  0x15   : > { %v2141_v21 = vld [vmem:[%s2504_s19 + $0xc0] sm:$0xff]  ;;  %v203_v30 = vmax.f32 %v186_v22, %v2128_v26  ;;  %v2136_v32 = vld [vmem:[%s2504_s19 + $0x98] sm:$0xff]  ;;  %v2126_v44 = vld [vmem:[%s2504_s19 + $0x48] sm:$0xff]  ;;  %vm482_vm8 = vsmask.f32 3328  ;;  %vm818_vm13 = vcmask 1046532  }
  0x16   : > { %v187_v23 = vld [vmem:[%s2504_s19 + $0x20] sm:$0xff]  ;;  %v226_v24 = vmax.f32 %v2133_v17, %v2141_v21  ;;  %v2144_v35 = vld [vmem:[%s2504_s19 + $0xd8] sm:$0xff]  ;;  %v2127_v45 = vld [vmem:[%s2504_s19 + $0x50] sm:$0xff]  ;;  %v201_v53 = vmax.f32 %v184_v41, %v2126_v44  ;;  %vm483_vm9 = vsmask.f32 7440  ;;  %s2264_s9 = sshll.u32 %s3108_s13, 6 }
  0x17   : > { %v2520_v25 = vld [vmem:[#allocation2] sm:$0xf]  ;;  %v2535_v38 = vld [vmem:[#allocation2 + $0x4] sm:$0x1]  ;;  %v229_v39 = vmax.f32 %v2136_v32, %v2144_v35  ;;  %v2134_v50 = vld [vmem:[%s2504_s19 + $0x88] sm:$0xff]  ;;  %v202_v59 = vmax.f32 %v185_v43, %v2127_v45  ;;  %vm1967_vm15 = vcmask 64512   ;;  %s3050_s14 = scalar_lea.vmem %s3095_s2, %s2264_s9 }
  0x18   : > { %v2129_v27 = vld [vmem:[%s2504_s19 + $0x60] sm:$0xff]  ;;  %v486_v28 = vshrl.u32 %v2520_v25, 16  ;;  %v489_v29 = vshll.u32 %v2520_v25, 16  ;;  %v234_v34 = vmax.f32 %v200_v20, %v226_v24  ;;  %v417_v54 = vld [vmem:[#allocation2 + $0x8] sm:$0xf]  ;;  %v495_v56 = vshll.u32 %v2535_v38, 16  ;;  %vm2625_vm10 = vmor %vm482_vm8, %vm483_vm9 }
  0x19   : > { %v204_v31 = vmax.f32 %v187_v23, %v2129_v27  ;;  %v2137_v33 = vld [vmem:[%s2504_s19 + $0xa0] sm:$0xff]  ;;  %v237_v48 = vmax.f32 %v203_v30, %v229_v39  ;;  %v420_v55 = vld [vmem:[#allocation2 + $0xc] sm:$0x1]  ;;  %v2135_v60 = vld [vmem:[%s2504_s19 + $0x90] sm:$0xff]  ;;  %v822_v0 = vrot.slane %v2535_v38, 5  ;;  %s2124_s15 = sshll.u32 %s3108_s13, 1 }
  0x1a   : > { %v2145_v36 = vld [vmem:[%s2504_s19 + $0xe0] sm:$0xff]  ;;  %v2265_v42 = vpack.c.bf16 %v234_v34, %v234_v34  ;;  %v2543_v46 = vrot.slane %v486_v28, 4  ;;  %v2545_v47 = vrot.slane %v489_v29, 5  ;;  %v2142_v61 = vld [vmem:[%s2504_s19 + $0xc8] sm:$0xff]  ;;  %v2143_v62 = vld [vmem:[%s2504_s19 + $0xd0] sm:$0xff]  ;;  %s181_s18 = scalar_lea.vmem %s3096_s3, %s2124_s15 }
  0x1b   : > { %v2533_v37 = vld [vmem:[%s3094_s1] sm:$0x3]  ;;  %v230_v40 = vmax.f32 %v2137_v33, %v2145_v36  ;;  %v2268_v57 = vpack.c.bf16 %v237_v48, %v237_v48  ;;  %v227_v1 = vmax.f32 %v2134_v50, %v2142_v61  ;;  %v228_v2 = vmax.f32 %v2135_v60, %v2143_v62  ;;  %v256_v3 = vld [vmem:[#allocation2 + $0x10] sm:$0x1]  ;;  %v259_v5 = vld [vmem:[#allocation2 + $0x18] sm:$0x1] }
  0x1c   : > { %2412 = vmatprep.subr.msk.bf16.mxu1 %vm624_vm0, %v2533_v37  ;;  %v336_v51 = vshrl.u32 %v2265_v42, 16  ;;  %v339_v52 = vshll.u32 %v2265_v42, 16  ;;  %v492_v8 = vor.u32 %v2545_v47, %v2543_v46  ;;  %v282_v12 = vld [vmem:[#allocation2 + $0x14] sm:$0x1]  ;;  %v435_v16 = vld [vmem:[#allocation2 + $0x20] sm:$0xf]  ;;  %vm2692_vm14 = vmor %vm817_vm12, %vm818_vm13 }
  0x1d   : > { %v238_v49 = vmax.f32 %v204_v31, %v230_v40  ;;  %v360_v9 = vshrl.u32 %v2268_v57, 16  ;;  %v363_v10 = vshll.u32 %v2268_v57, 16  ;;  %v438_v17 = vld [vmem:[#allocation2 + $0x24] sm:$0x1]  ;;  %v441_v18 = vld [vmem:[#allocation2 + $0x28] sm:$0xf]  ;;  %v235_v19 = vmax.f32 %v201_v53, %v227_v1 }
  0x1e   : > { %v338_v63 = vrot.slane %v336_v51, 7  ;;  %v2562_v20 = vld [vmem:[%s2504_s19 + $0x28] sm:$0xff]  ;;  %v236_v23 = vmax.f32 %v202_v59, %v228_v2  ;;  %v257_v24 = vsel %vm2487_vm4, 0, %v256_v3  ;;  %v285_v26 = vld [vmem:[#allocation2 + $0x1c] sm:$0x1]  ;;  %v260_v31 = vsel %vm2487_vm4, 0, %v259_v5 }
  0x1f   : > { %v2269_v58 = vpack.c.bf16 %v238_v49, %v238_v49  ;;  %v362_v21 = vrot.slane %v360_v9, 7  ;;  %v2130_v27 = vld [vmem:[%s2504_s19 + $0x68] sm:$0xff]  ;;  %258 = vst [vmem:[#allocation2 + $0x10] sm:$0x1] %v257_v24  ;;  %v283_v32 = vsel %vm2494_vm6, 0, %v282_v12  ;;  %v2576_v33 = vld [vmem:[%s2504_s19 + $0x30] sm:$0xff]  ;;  %v2266_v45 = vpack.c.bf16 %v235_v19, %v235_v19 }
  0x20   : > { %v341_v13 = vor.u32 %v339_v52, %v338_v63  ;;  %v342_v14 = vrot.slane %v338_v63, 4  ;;  %v444_v30 = vld [vmem:[#allocation2 + $0x2c] sm:$0x1]  ;;  %v2579_v34 = vld [vmem:[%s2504_s19 + $0x70] sm:$0xff]  ;;  %261 = vst [vmem:[#allocation2 + $0x18] sm:$0x1] %v260_v31  ;;  %v2267_v48 = vpack.c.bf16 %v236_v23, %v236_v23  ;;  %v205_v49 = vmax.f32 %v2562_v20, %v2130_v27 }
  0x21   : > { %v368_v11 = vshrl.u32 %v2269_v58, 16  ;;  %v371_v15 = vshll.u32 %v2269_v58, 16  ;;  %v365_v35 = vor.u32 %v363_v10, %v362_v21  ;;  %v366_v36 = vrot.slane %v362_v21, 4  ;;  %284 = vst [vmem:[#allocation2 + $0x14] sm:$0x1] %v283_v32  ;;  %v2138_v41 = vld [vmem:[%s2504_s19 + $0xa8] sm:$0xff] }
  0x22   : > { %v418_v28 = vsel %vm2555_vm7, %v341_v13, %v417_v54  ;;  %v421_v29 = vsel %vm2487_vm4, %v342_v14, %v420_v55  ;;  %v2139_v42 = vld [vmem:[%s2504_s19 + $0xb0] sm:$0xff]  ;;  %v2146_v43 = vld [vmem:[%s2504_s19 + $0xe8] sm:$0xff]  ;;  %v286_v44 = vsel %vm2494_vm6, 0, %v285_v26  ;;  %v2182_v52 = vld [vmem:[%s3094_s1 + $0x4] sm:$0x3]  ;;  %v344_v60 = vshrl.u32 %v2266_v45, 16 }
  0x23   : > { %v370_v22 = vrot.slane %v368_v11, 7  ;;  %419 = vst [vmem:[#allocation2 + $0x8] sm:$0xf] %v418_v28  ;;  %422 = vst [vmem:[#allocation2 + $0xc] sm:$0x1] %v421_v29  ;;  %v2147_v50 = vld [vmem:[%s2504_s19 + $0xf0] sm:$0xff]  ;;  %v436_v53 = vsel %vm2555_vm7, %v365_v35, %v435_v16  ;;  %v439_v54 = vsel %vm2487_vm4, %v366_v36, %v438_v17  ;;  %2413 = vmatprep.subr.msk.bf16.mxu0 %vm624_vm0, %v2182_v52 }
  0x24   : > { %v268_v51 = vld [vmem:[#allocation2 + $0x30] sm:$0x1]  ;;  %287 = vst [vmem:[#allocation2 + $0x1c] sm:$0x1] %v286_v44  ;;  %v271_v58 = vld [vmem:[#allocation2 + $0x38] sm:$0x1]  ;;  %v206_v2 = vmax.f32 %v2576_v33, %v2579_v34  ;;  %v231_v3 = vmax.f32 %v2138_v41, %v2146_v43  ;;  %v232_v5 = vmax.f32 %v2139_v42, %v2147_v50 }
  0x25   : > { %v373_v39 = vor.u32 %v371_v15, %v370_v22  ;;  %v374_v40 = vrot.slane %v370_v22, 4  ;;  %v294_v59 = vld [vmem:[#allocation2 + $0x34] sm:$0x1]  ;;  %437 = vst [vmem:[#allocation2 + $0x20] sm:$0xf] %v436_v53  ;;  %v347_v61 = vshll.u32 %v2266_v45, 16 }
  0x26   : > { %440 = vst [vmem:[#allocation2 + $0x24] sm:$0x1] %v439_v54  ;;  %v352_v62 = vshrl.u32 %v2267_v48, 16  ;;  %v355_v63 = vshll.u32 %v2267_v48, 16  ;;  %v297_v1 = vld [vmem:[#allocation2 + $0x3c] sm:$0x1]  ;;  %v239_v17 = vmax.f32 %v205_v49, %v231_v3  ;;  %v240_v27 = vmax.f32 %v206_v2, %v232_v5 }
  0x27   : > { %v442_v55 = vsel %vm2555_vm7, %v373_v39, %v441_v18  ;;  %v445_v57 = vsel %vm2487_vm4, %v374_v40, %v444_v30  ;;  %v269_v9 = vsel %vm2487_vm4, 0, %v268_v51  ;;  %v346_v10 = vrot.slane %v344_v60, 7  ;;  %v423_v16 = vld [vmem:[#allocation2 + $0x10] sm:$0xf]  ;;  %v429_v31 = vld [vmem:[#allocation2 + $0x18] sm:$0xf] }
  0x28   : > { %443 = vst [vmem:[#allocation2 + $0x28] sm:$0xf] %v442_v55  ;;  %446 = vst [vmem:[#allocation2 + $0x2c] sm:$0x1] %v445_v57  ;;  %v354_v11 = vrot.slane %v352_v62, 7  ;;  %v272_v12 = vsel %vm2487_vm4, 0, %v271_v58  ;;  %v2656_v48 = vpack.c.bf16 %v239_v17, %v239_v17  ;;  %v2271_v57 = vpack.c.bf16 %v240_v27, %v240_v27 }
  0x29   : > { %270 = vst [vmem:[#allocation2 + $0x30] sm:$0x1] %v269_v9  ;;  %v295_v13 = vsel %vm2494_vm6, 0, %v294_v59  ;;  %v2611_v14 = vrot.slane %v492_v8, 4  ;;  %v2615_v15 = vrot.slane %v495_v56, 5  ;;  %v298_v18 = vsel %vm2494_vm6, 0, %v297_v1 }
  0x2a   : > { %273 = vst [vmem:[#allocation2 + $0x38] sm:$0x1] %v272_v12  ;;  %296 = vst [vmem:[#allocation2 + $0x34] sm:$0x1] %v295_v13  ;;  %v2619_v19 = vld [vmem:[#allocation2 + $0x8] sm:$0xf]  ;;  %v349_v21 = vor.u32 %v347_v61, %v346_v10  ;;  %v357_v46 = vor.u32 %v355_v63, %v354_v11 }
  0x2b   : > { %v2621_v20 = vld [vmem:[#allocation2 + $0xc] sm:$0x1]  ;;  %v350_v22 = vrot.slane %v346_v10, 4  ;;  %v358_v47 = vrot.slane %v354_v11, 4  ;;  %299 = vst [vmem:[#allocation2 + $0x3c] sm:$0x1] %v298_v18  ;;  %v498_v41 = vsel %vm2625_vm10, %v2611_v14, %v2615_v15 }
  0x2c   : > { %v500_v8 = vshrl.u32 %v2619_v19, 16  ;;  %v503_v23 = vshll.u32 %v2619_v19, 16  ;;  %v509_v24 = vshll.u32 %v2621_v20, 16  ;;  %v426_v26 = vld [vmem:[#allocation2 + $0x14] sm:$0x1]  ;;  %v826_v28 = vrot.slane %v2621_v20, 5 }
  0x2d   : > { %v424_v29 = vsel %vm2555_vm7, %v349_v21, %v423_v16  ;;  %v427_v30 = vsel %vm2487_vm4, %v350_v22, %v426_v26  ;;  %v432_v32 = vld [vmem:[#allocation2 + $0x1c] sm:$0x1]  ;;  %v2638_v33 = vsel %vm624_vm0, %v2182_v52, 0  ;;  %v2640_v39 = vld [vmem:[#allocation2 + $0x20] sm:$0xf]  ;;  %v430_v40 = vsel %vm2555_vm7, %v357_v46, %v429_v31 }
  0x2e   : > { %v502_v34 = vrot.slane %v500_v8, 4  ;;  %v505_v35 = vrot.slane %v503_v23, 5  ;;  %v511_v36 = vrot.slane %v509_v24, 5  ;;  %425 = vst [vmem:[#allocation2 + $0x10] sm:$0xf] %v424_v29  ;;  %v433_v45 = vsel %vm2487_vm4, %v358_v47, %v432_v32 }
  0x2f   : > { %428 = vst [vmem:[#allocation2 + $0x14] sm:$0x1] %v427_v30  ;;  %v2648_v42 = vld [vmem:[#allocation2 + $0x28] sm:$0xf]  ;;  %v2650_v43 = vld [vmem:[#allocation2 + $0x24] sm:$0x1] }
  0x30   : > { %v2652_v44 = vld [vmem:[#allocation2 + $0x2c] sm:$0x1]  ;;  %431 = vst [vmem:[#allocation2 + $0x18] sm:$0xf] %v430_v40  ;;  %v506_v49 = vor.u32 %v505_v35, %v502_v34  ;;  %v542_v50 = vshrl.u32 %v2640_v39, 16  ;;  %v545_v51 = vshll.u32 %v2640_v39, 16 }
  0x31   : > { %v551_v52 = vshll.u32 %v2650_v43, 16  ;;  %434 = vst [vmem:[#allocation2 + $0x1c] sm:$0x1] %v433_v45  ;;  %v556_v53 = vshrl.u32 %v2648_v42, 16  ;;  %v559_v54 = vshll.u32 %v2648_v42, 16  ;;  %v565_v55 = vshll.u32 %v2652_v44, 16 }
  0x32   : > { %v507_v58 = vrot.slane %v506_v49, 4  ;;  %v544_v59 = vrot.slane %v542_v50, 4  ;;  %v547_v60 = vrot.slane %v545_v51, 5  ;;  %v838_v61 = vrot.slane %v2650_v43, 5  ;;  %v793_v47 = vld [vmem:[#allocation2] sm:$0xe] }
  0x33   : > { %v553_v62 = vrot.slane %v551_v52, 5  ;;  %v558_v63 = vrot.slane %v556_v53, 4  ;;  %v561_v1 = vrot.slane %v559_v54, 5  ;;  %v567_v2 = vrot.slane %v565_v55, 5  ;;  %v794_v34 = vld [vmem:[#allocation2 + $0x8] sm:$0xe] }
  0x34   : > { %v512_v3 = vsel %vm2625_vm10, %v507_v58, %v511_v36  ;;  %v548_v5 = vor.u32 %v547_v60, %v544_v59  ;;  %v376_v9 = vshrl.u32 %v2656_v48, 16  ;;  %v379_v10 = vshll.u32 %v2656_v48, 16  ;;  %v447_v45 = vld [vmem:[#allocation2 + $0x30] sm:$0xf]  ;;  %v450_v48 = vld [vmem:[#allocation2 + $0x34] sm:$0x1] }
  0x35   : > { %v2158_v11 = vcombine.low %v498_v41, %v512_v3  ;;  %v562_v12 = vor.u32 %v561_v1, %v558_v63  ;;  %v2669_v13 = vld [vmem:[#allocation2 + $0x10] sm:$0xf]  ;;  %v384_v15 = vshrl.u32 %v2271_v57, 16  ;;  %v387_v16 = vshll.u32 %v2271_v57, 16  ;;  %v453_v58 = vld [vmem:[#allocation2 + $0x38] sm:$0xf] }
  0x36   : > { %v2671_v14 = vld [vmem:[#allocation2 + $0x14] sm:$0x1]  ;;  %v549_v17 = vrot.slane %v548_v5, 4  ;;  %v514_v21 = vshrl.u32 %v2669_v13, 16  ;;  %v517_v22 = vshll.u32 %v2669_v13, 16  ;;  %v378_v52 = vrot.slane %v376_v9, 7 }
  0x37   : > { %v2673_v18 = vld [vmem:[#allocation2 + $0x18] sm:$0xf]  ;;  %v523_v46 = vshll.u32 %v2671_v14, 16  ;;  %2320 = vmatprep.mubr.msk.bf16.mxu0 %vm611_vm11, %v2158_v11  ;;  %v563_v8 = vrot.slane %v562_v12, 4  ;;  %v830_v27 = vrot.slane %v2671_v14, 5  ;;  %v386_v57 = vrot.slane %v384_v15, 7 }
  0x38   : > { %v2679_v23 = vld [vmem:[#allocation2 + $0x1c] sm:$0x1]  ;;  %v528_v24 = vshrl.u32 %v2673_v18, 16  ;;  %v531_v26 = vshll.u32 %v2673_v18, 16  ;;  %v554_v29 = vsel %vm2625_vm10, %v549_v17, %v553_v62  ;;  %v516_v30 = vrot.slane %v514_v21, 4 }
  0x39   : > { %v519_v31 = vrot.slane %v517_v22, 5  ;;  %v525_v32 = vrot.slane %v523_v46, 5  ;;  %v568_v35 = vsel %vm2625_vm10, %v563_v8, %v567_v2  ;;  %v537_v41 = vshll.u32 %v2679_v23, 16  ;;  %v456_v1 = vld [vmem:[#allocation2 + $0x3c] sm:$0x1] }
  0x3a   : > { %v530_v36 = vrot.slane %v528_v24, 4  ;;  %v533_v40 = vrot.slane %v531_v26, 5  ;;  %v2160_v49 = vcombine.low %v554_v29, %v568_v35  ;;  %v834_v51 = vrot.slane %v2679_v23, 5  ;;  %v795_v12 = vld [vmem:[#allocation2 + $0x10] sm:$0xe] }
  0x3b   : > { %v520_v50 = vor.u32 %v519_v31, %v516_v30  ;;  %v539_v55 = vrot.slane %v537_v41, 5  ;;  %v2174_v59 = vrot.slane %v793_v47, 9  ;;  %v381_v62 = vor.u32 %v379_v10, %v378_v52  ;;  %v796_v17 = vld [vmem:[#allocation2 + $0x18] sm:$0xe]  ;;  %v797_v38 = vld [vmem:[#allocation2 + $0x20] sm:$0xe] }
  0x3c   : > { %v534_v54 = vor.u32 %v533_v40, %v530_v36  ;;  %2324 = vmatprep.mubr.msk.bf16.mxu1 %vm611_vm11, %v2160_v49  ;;  %v382_v63 = vrot.slane %v378_v52, 4  ;;  %v2175_v2 = vrot.slane %v794_v34, 9  ;;  %v389_v5 = vor.u32 %v387_v16, %v386_v57  ;;  %v2720_v20 = vld [vmem:[%s3094_s1 + $0x6] sm:$0x3]  ;;  %v798_v8 = vld [vmem:[#allocation2 + $0x28] sm:$0xe] }
  0x3d   : > { %v521_v60 = vrot.slane %v520_v50, 4  ;;  %v390_v9 = vrot.slane %v386_v57, 4  ;;  %v823_v11 = vsel %vm2692_vm14, %v2174_v59, %v822_v0  ;;  %v448_v21 = vsel %vm2555_vm7, %v381_v62, %v447_v45  ;;  %v2723_v30 = vld [vmem:[#allocation2 + $0xc] sm:$0x1]  ;;  %v2740_v41 = vld [vmem:[%s2504_s19 + $0x38] sm:$0xff] }
  0x3e   : > { %v535_v3 = vrot.slane %v534_v54, 4  ;;  %v451_v10 = vsel %vm2487_vm4, %v382_v63, %v450_v48  ;;  %v827_v16 = vsel %vm2692_vm14, %v2175_v2, %v826_v28  ;;  %449 = vst [vmem:[#allocation2 + $0x30] sm:$0xf] %v448_v21  ;;  %v454_v22 = vsel %vm2555_vm7, %v389_v5, %v453_v58  ;;  %v1072_v28 = vld [vmem:[#allocation2 + $0x8] sm:$0xf]  ;;  %v2752_v52 = vld [vmem:[%s2504_s19 + $0x78] sm:$0xff] }
  0x3f   : > { %v526_v15 = vsel %vm2625_vm10, %v521_v60, %v525_v32  ;;  %452 = vst [vmem:[#allocation2 + $0x34] sm:$0x1] %v451_v10  ;;  %v457_v46 = vsel %vm2487_vm4, %v390_v9, %v456_v1  ;;  %v2183_v47 = vcombine.low %v823_v11, %v827_v16  ;;  %v842_v23 = vrot.slane %v2652_v44, 5  ;;  %455 = vst [vmem:[#allocation2 + $0x38] sm:$0xf] %v454_v22  ;;  %v2755_v54 = vld [vmem:[%s2504_s19 + $0xb8] sm:$0xff] }
  0x40   : > { %v540_v0 = vsel %vm2625_vm10, %v535_v3, %v539_v55  ;;  %458 = vst [vmem:[#allocation2 + $0x3c] sm:$0x1] %v457_v46  ;;  %v2176_v26 = vrot.slane %v795_v12, 9  ;;  %v2177_v29 = vrot.slane %v796_v17, 9  ;;  %v2727_v31 = vsel %vm624_vm0, %v2533_v37, 0  ;;  %v2758_v55 = vld [vmem:[%s2504_s19 + $0xf8] sm:$0xff] }
  0x41   : > { %v2159_v24 = vcombine.low %v526_v15, %v540_v0  ;;  %v2200_v32 = vld [vmem:[%s3094_s1 + $0x8] sm:$0x3]  ;;  %v2178_v34 = vrot.slane %v797_v38, 9  ;;  %v2166_v44 = vcombine.low %v2520_v25, %v2619_v19  ;;  %v2737_v35 = vsel %vm624_vm0, %v2720_v20, 0  ;;  %v1074_v37 = vld [vmem:[#allocation2 + $0x10] sm:$0xf] }
  0x42   : > { %v2179_v36 = vrot.slane %v798_v8, 9  ;;  %v1089_v40 = vshrl.u32 %v1072_v28, 16  ;;  %v831_v45 = vsel %vm2692_vm14, %v2176_v26, %v830_v27  ;;  %v835_v48 = vsel %vm2692_vm14, %v2177_v29, %v834_v51  ;;  %v2768_v51 = vld [vmem:[#allocation2 + $0x14] sm:$0x1]  ;;  %v2787_v10 = vld [vmem:[%s3094_s1 + $0xc] sm:$0x3] }
  0x43   : > { %2321 = vmatmul.mubr.msk.bf16.vlgmr.msra.gmra.mxu0 %vm611_vm11, %v2159_v24  ;;  %v1092_v49 = vshll.u32 %v1072_v28, 16  ;;  %v1098_v50 = vshll.u32 %v2723_v30, 16  ;;  %v839_v14 = vsel %vm2692_vm14, %v2178_v34, %v838_v61  ;;  %v1103_v60 = vshrl.u32 %v1074_v37, 16 }
  0x44   : > { %2339 = vmatpush3.bf16.msra.mxu0 %v2638_v33  ;;  %2340 = vmatprep.mubr.msk.bf16.mxu0 %vm611_vm11, %v2183_v47  ;;  %v1227_v33 = vsel %vm624_vm0, %v2200_v32, 0  ;;  %v843_v27 = vsel %vm2692_vm14, %v2179_v36, %v842_v23  ;;  %v1091_v57 = vrot.slane %v1089_v40, 4  ;;  %v1106_v62 = vshll.u32 %v1074_v37, 16 }
  0x45   : > { %2415 = vmatprep.subr.msk.bf16.mxu0 %vm624_vm0, %v2200_v32  ;;  %v1094_v58 = vrot.slane %v1092_v49, 5  ;;  %v2770_v59 = vrot.slane %v1098_v50, 5  ;;  %v2772_v63 = vld [vmem:[#allocation2 + $0x30] sm:$0xf]  ;;  %v2167_v43 = vcombine.low %v2669_v13, %v2673_v18  ;;  %v2184_v2 = vcombine.low %v831_v45, %v835_v48  ;;  %v1076_v45 = vld [vmem:[#allocation2 + $0x18] sm:$0xf] }
  0x46   : > { %v480_v1 = vld [vmem:[#allocation2 + $0x34] sm:$0x1]  ;;  %v799_v3 = vld [vmem:[#allocation2 + $0x30] sm:$0xe]  ;;  %v207_v61 = vmax.f32 %v2740_v41, %v2752_v52  ;;  %v233_v5 = vmax.f32 %v2755_v54, %v2758_v55  ;;  %v2780_v9 = vld [vmem:[#allocation2 + $0x38] sm:$0xf]  ;;  %v2185_v15 = vcombine.low %v839_v14, %v843_v27 }
  0x47   : > { %v481_v11 = vld [vmem:[#allocation2 + $0x3c] sm:$0x1]  ;;  %v570_v12 = vshrl.u32 %v2772_v63, 16  ;;  %v573_v17 = vshll.u32 %v2772_v63, 16  ;;  %v1095_v21 = vor.u32 %v1094_v58, %v1091_v57  ;;  %v579_v16 = vshll.u32 %v480_v1, 16 }
  0x48   : > { %v584_v38 = vshrl.u32 %v2780_v9, 16  ;;  %v587_v0 = vshll.u32 %v2780_v9, 16  ;;  %v593_v22 = vshll.u32 %v481_v11, 16  ;;  %v800_v46 = vld [vmem:[#allocation2 + $0x38] sm:$0xe]  ;;  %v2180_v28 = vrot.slane %v799_v3, 9 }
  0x49   : > { %v572_v47 = vrot.slane %v570_v12, 4  ;;  %v575_v8 = vrot.slane %v573_v17, 5  ;;  %v1112_v23 = vshll.u32 %v2768_v51, 16  ;;  %v581_v24 = vrot.slane %v579_v16, 5  ;;  %v2794_v27 = vld [vmem:[#allocation2 + $0x1c] sm:$0x1] }
  0x4a   : > { %v586_v26 = vrot.slane %v584_v38, 4  ;;  %v589_v29 = vrot.slane %v587_v0, 5  ;;  %v595_v32 = vrot.slane %v593_v22, 5  ;;  %v846_v36 = vrot.slane %v480_v1, 5  ;;  %v2807_v17 = vld [vmem:[#allocation2 + $0x24] sm:$0x1] }
  0x4b   : > { %2341 = vmatmul.mubr.msk.bf16.vlgmr.msra.gmra.mxu0 %vm611_vm11, %v2184_v2  ;;  %v576_v34 = vor.u32 %v575_v8, %v572_v47  ;;  %v2181_v37 = vrot.slane %v800_v46, 9  ;;  %v850_v40 = vrot.slane %v481_v11, 5  ;;  %v1096_v49 = vrot.slane %v1095_v21, 4  ;;  %v1078_v2 = vld [vmem:[#allocation2 + $0x20] sm:$0xf] }
  0x4c   : > { %2359 = vmatpush3.bf16.msra.mxu0 %v1227_v33  ;;  %2344 = vmatprep.mubr.msk.bf16.mxu0 %vm611_vm11, %v2185_v15  ;;  %v590_v48 = vor.u32 %v589_v29, %v586_v26  ;;  %v1105_v50 = vrot.slane %v1103_v60, 4  ;;  %v1108_v14 = vrot.slane %v1106_v62, 5  ;;  %v847_v58 = vsel %vm2692_vm14, %v2180_v28, %v846_v36  ;;  %v1080_v47 = vld [vmem:[#allocation2 + $0x28] sm:$0xf]  ;;  %v1082_v26 = vld [vmem:[#allocation2 + $0x30] sm:$0xf] }
  0x4d   : > { %2417 = vmatprep.subr.msk.bf16.mxu0 %vm624_vm0, %v2787_v10  ;;  %v577_v57 = vrot.slane %v576_v34, 4  ;;  %v851_v33 = vsel %vm2692_vm14, %v2181_v37, %v850_v40  ;;  %v1114_v1 = vrot.slane %v1112_v23, 5  ;;  %v1101_v60 = vsel %vm2625_vm10, %v1096_v49, %v2770_v59 }
  0x4e   : > { %v591_v3 = vrot.slane %v590_v48, 4  ;;  %v2186_v11 = vcombine.low %v847_v58, %v851_v33  ;;  %v1109_v62 = vor.u32 %v1108_v14, %v1105_v50  ;;  %v1117_v15 = vshrl.u32 %v1076_v45, 16 }
  0x4f   : > { %v582_v12 = vsel %vm2625_vm10, %v577_v57, %v581_v24  ;;  %v1120_v21 = vshll.u32 %v1076_v45, 16  ;;  %v1126_v16 = vshll.u32 %v2794_v27, 16  ;;  %v1131_v22 = vshrl.u32 %v1078_v2, 16  ;;  %v2814_v24 = vld [vmem:[#allocation2 + $0x2c] sm:$0x1] }
  0x50   : > { %v596_v38 = vsel %vm2625_vm10, %v591_v3, %v595_v32  ;;  %v1110_v0 = vrot.slane %v1109_v62, 4  ;;  %v1134_v46 = vshll.u32 %v1078_v2, 16  ;;  %v2168_v59 = vcombine.low %v2640_v39, %v2648_v42  ;;  %v2821_v39 = vld [vmem:[#allocation2 + $0x34] sm:$0x1] }
  0x51   : > { %v2161_v8 = vcombine.low %v582_v12, %v596_v38  ;;  %v1119_v28 = vrot.slane %v1117_v15, 4  ;;  %v1122_v23 = vrot.slane %v1120_v21, 5  ;;  %v1133_v34 = vrot.slane %v1131_v22, 4  ;;  %v1084_v21 = vld [vmem:[#allocation2 + $0x38] sm:$0xf] }
  0x52   : > { %v1115_v29 = vsel %vm2625_vm10, %v1110_v0, %v1114_v1  ;;  %v1136_v32 = vrot.slane %v1134_v46, 5  ;;  %v1140_v36 = vshll.u32 %v2807_v17, 16  ;;  %v1128_v45 = vrot.slane %v1126_v16, 5  ;;  %v2217_v16 = vld [vmem:[%s3094_s1 + $0xa] sm:$0x3] }
  0x53   : > { %2345 = vmatmul.mubr.msk.bf16.gmra.mxu0 %vm611_vm11, %v2186_v11  ;;  %2325 = vmatmul.mubr.msk.bf16.vlgmr.msra.gmra.mxu1 %vm611_vm11, %v2161_v8  ;;  %v2201_v37 = vcombine.low %v1101_v60, %v1115_v29  ;;  %v1123_v40 = vor.u32 %v1122_v23, %v1119_v28  ;;  %v241_v42 = vmax.f32 %v207_v61, %v233_v5  ;;  %v1145_v50 = vshrl.u32 %v1080_v47, 16  ;;  %v1302_v29 = vld [vmem:[#allocation2 + $0x8] sm:$0xe] }
  0x54   : > { %2329 = vmatpush3.bf16.msra.mxu1 %v2727_v31  ;;  %2330 = vmatprep.mubr.msk.bf16.mxu1 %vm611_vm11, %v2166_v44  ;;  %v1137_v48 = vor.u32 %v1136_v32, %v1133_v34  ;;  %v1142_v49 = vrot.slane %v1140_v36, 5  ;;  %v1148_v14 = vshll.u32 %v1080_v47, 16  ;;  %v1154_v41 = vshll.u32 %v2814_v24, 16  ;;  %v274_v31 = vld [vmem:[#allocation2 + $0x40] sm:$0x1] }
  0x55   : > { %2414 = vmatprep.subr.msk.bf16.mxu1 %vm624_vm0, %v2720_v20  ;;  %2360 = vmatprep.mubr.msk.bf16.mxu0 %vm611_vm11, %v2201_v37  ;;  %v1124_v54 = vrot.slane %v1123_v40, 4  ;;  %v1159_v52 = vshrl.u32 %v1082_v26, 16  ;;  %v1162_v55 = vshll.u32 %v1082_v26, 16  ;;  %v1147_v5 = vrot.slane %v1145_v50, 4  ;;  %v300_v44 = vld [vmem:[#allocation2 + $0x44] sm:$0x1] }
  0x56   : > { %v1138_v61 = vrot.slane %v1137_v48, 4  ;;  %v1150_v25 = vrot.slane %v1148_v14, 5  ;;  %v1168_v19 = vshll.u32 %v2821_v39, 16  ;;  %v1156_v58 = vrot.slane %v1154_v41, 5  ;;  %v2860_v47 = vld [vmem:[%s3094_s1 + $0x10] sm:$0x3] }
  0x57   : > { %v1129_v57 = vsel %vm2625_vm10, %v1124_v54, %v1128_v45  ;;  %v1161_v33 = vrot.slane %v1159_v52, 4  ;;  %v1164_v20 = vrot.slane %v1162_v55, 5  ;;  %v275_v11 = vsel %vm2487_vm4, 0, %v274_v31  ;;  %v2874_v32 = vld [vmem:[#allocation2 + $0x3c] sm:$0x1] }
  0x58   : > { %v1143_v1 = vsel %vm2625_vm10, %v1138_v61, %v1142_v49  ;;  %v1151_v2 = vor.u32 %v1150_v25, %v1147_v5  ;;  %v1170_v3 = vrot.slane %v1168_v19, 5  ;;  %276 = vst [vmem:[#allocation2 + $0x40] sm:$0x1] %v275_v11  ;;  %v2272_v12 = vpack.c.bf16 %v241_v42, %v241_v42  ;;  %v1303_v42 = vld [vmem:[#allocation2 + $0x10] sm:$0xe] }
  0x59   : > { %v2202_v60 = vcombine.low %v1129_v57, %v1143_v1  ;;  %v1165_v62 = vor.u32 %v1164_v20, %v1161_v33  ;;  %v301_v15 = vsel %vm2494_vm6, 0, %v300_v44  ;;  %v1504_v38 = vsel %vm624_vm0, %v2787_v10, 0  ;;  %v1305_v48 = vld [vmem:[#allocation2 + $0x20] sm:$0xe]  ;;  %v1579_v14 = vld [vmem:[#allocation2 + $0x10] sm:$0xf] }
  0x5a   : > { %v1152_v0 = vrot.slane %v1151_v2, 4  ;;  %302 = vst [vmem:[#allocation2 + $0x44] sm:$0x1] %v301_v15  ;;  %v392_v7 = vshrl.u32 %v2272_v12, 16  ;;  %v395_v46 = vshll.u32 %v2272_v12, 16  ;;  %v1173_v13 = vshrl.u32 %v1084_v21, 16 }
  0x5b   : > { %2331 = vmatmul.mubr.msk.bf16.vlgmr.msra.gmra.mxu1 %vm611_vm11, %v2167_v43  ;;  %2361 = vmatmul.mubr.msk.bf16.vlgmr.msra.gmra.mxu0 %vm611_vm11, %v2202_v60  ;;  %v1166_v22 = vrot.slane %v1165_v62, 4  ;;  %v1176_v18 = vshll.u32 %v1084_v21, 16  ;;  %v1182_v49 = vshll.u32 %v2874_v32, 16  ;;  %v2209_v50 = vrot.slane %v1302_v29, 9  ;;  %v1581_v5 = vld [vmem:[#allocation2 + $0x18] sm:$0xf] }
  0x5c   : > { %2349 = vmatpush3.bf16.msra.mxu1 %v2737_v35  ;;  %2334 = vmatprep.mubr.msk.bf16.mxu1 %vm611_vm11, %v2168_v59  ;;  %v1157_v10 = vsel %vm2625_vm10, %v1152_v0, %v1156_v58  ;;  %v394_v8 = vrot.slane %v392_v7, 7  ;;  %v2169_v35 = vcombine.low %v2772_v63, %v2780_v9  ;;  %v2432_v59 = vld [vmem:[#allocation2 + $0x8] ss:$8 sps:$4 sm:$0xff]   ;;  %v1175_v36 = vrot.slane %v1173_v13, 4  ;;  %v1304_v9 = vld [vmem:[#allocation2 + $0x18] sm:$0xe] }
  0x5d   : > { %2416 = vmatprep.subr.msk.bf16.mxu1 %vm624_vm0, %v2217_v16  ;;  %2379 = vmatpush3.bf16.msra.mxu0 %v1504_v38  ;;  %v1171_v43 = vsel %vm2625_vm10, %v1166_v22, %v1170_v3  ;;  %v1178_v37 = vrot.slane %v1176_v18, 5  ;;  %v1328_v6 = vrot.slane %v2723_v30, 5  ;;  %v2210_v41 = vrot.slane %v1303_v42, 9  ;;  %v2433_v25 = vld [vmem:[#allocation2 + $0x18] ss:$8 sps:$4 sm:$0xff]  }
  0x5e   : > { %v2203_v28 = vcombine.low %v1157_v10, %v1171_v43  ;;  %2419 = vmatprep.subr.msk.bf16.mxu0 %vm624_vm0, %v2860_v47  ;;  %v397_v23 = vor.u32 %v395_v46, %v394_v8  ;;  %v398_v26 = vrot.slane %v394_v8, 4  ;;  %v1332_v52 = vrot.slane %v2768_v51, 5  ;;  %v1306_v19 = vld [vmem:[#allocation2 + $0x28] sm:$0xe]  ;;  %v1307_v30 = vld [vmem:[#allocation2 + $0x30] sm:$0xe] }
  0x5f   : > { %v459_v34 = vld [vmem:[#allocation2 + $0x40] sm:$0xf]  ;;  %v1179_v54 = vor.u32 %v1178_v37, %v1175_v36  ;;  %v2211_v55 = vrot.slane %v1304_v9, 9  ;;  %v1336_v4 = vrot.slane %v2794_v27, 5  ;;  %v2212_v31 = vrot.slane %v1305_v48, 9 }
  0x60   : > { %2364 = vmatprep.mubr.msk.bf16.mxu0 %vm611_vm11, %v2203_v28  ;;  %v460_v40 = vsel %vm2555_vm7, %v397_v23, %v459_v34  ;;  %v1340_v61 = vrot.slane %v2807_v17, 5  ;;  %v1596_v44 = vshrl.u32 %v1579_v14, 16  ;;  %v1599_v57 = vshll.u32 %v1579_v14, 16  ;;  %v2434_v33 = vld [vmem:[#allocation2 + $0x28] ss:$8 sps:$4 sm:$0xff]  }
  0x61   : > { %v462_v45 = vld [vmem:[#allocation2 + $0x44] sm:$0x1]  ;;  %461 = vst [vmem:[#allocation2 + $0x40] sm:$0xf] %v460_v40  ;;  %v1385_v58 = vsel %vm624_vm0, %v2217_v16, 0  ;;  %v2888_v20 = vrot.slane %v1182_v49, 5  ;;  %v2894_v51 = vsel %vm2692_vm14, %v2209_v50, %v1328_v6  ;;  %v1333_v60 = vsel %vm2692_vm14, %v2210_v41, %v1332_v52 }
  0x62   : > { %v463_v63 = vsel %vm2487_vm4, %v398_v26, %v462_v45  ;;  %v2890_v1 = vrot.slane %v1179_v54, 4  ;;  %v2235_v27 = vld [vmem:[%s3094_s1 + $0xe] sm:$0x3]  ;;  %v2899_v17 = vld [vmem:[#allocation2 + $0x14] sm:$0x1]  ;;  %v1610_v2 = vshrl.u32 %v1581_v5, 16  ;;  %v2905_v62 = vsel %vm2692_vm14, %v2211_v55, %v1336_v4 }
  0x63   : > { %2335 = vmatmul.mubr.msk.bf16.gmra.mxu1 %vm611_vm11, %v2169_v35  ;;  %464 = vst [vmem:[#allocation2 + $0x44] sm:$0x1] %v463_v63  ;;  %v1613_v3 = vshll.u32 %v1581_v5, 16  ;;  %v2909_v12 = vsel %vm2692_vm14, %v2212_v31, %v1340_v61  ;;  %v2213_v15 = vrot.slane %v1306_v19, 9  ;;  %v1598_v0 = vrot.slane %v1596_v44, 4 }
  0x64   : > { %2350 = vmatprep.mubr.msk.bf16.mxu1 %vm611_vm11, %v2432_v59  ;;  %v1601_v22 = vrot.slane %v1599_v57, 5  ;;  %v1344_v46 = vrot.slane %v2814_v24, 5  ;;  %v2214_v10 = vrot.slane %v1307_v30, 9  ;;  %v1348_v13 = vrot.slane %v2821_v39, 5  ;;  %v1308_v8 = vld [vmem:[#allocation2 + $0x38] sm:$0xe] }
  0x65   : > { %v1612_v28 = vrot.slane %v1610_v2, 4  ;;  %v1615_v35 = vrot.slane %v1613_v3, 5  ;;  %v2218_v59 = vcombine.low %v2894_v51, %v1333_v60  ;;  %v2921_v23 = vsel %vm624_vm0, %v2235_v27, 0  ;;  %v1582_v26 = vld [vmem:[#allocation2 + $0x1c] sm:$0x1] }
  0x66   : > { %v1605_v24 = vshll.u32 %v2899_v17, 16  ;;  %v1185_v39 = vsel %vm2625_vm10, %v2890_v1, %v2888_v20  ;;  %v1602_v37 = vor.u32 %v1601_v22, %v1598_v0  ;;  %v1809_v40 = vld [vmem:[#allocation2 + $0x10] sm:$0xe]  ;;  %v2219_v42 = vcombine.low %v2905_v62, %v2909_v12  ;;  %v1583_v49 = vld [vmem:[#allocation2 + $0x20] sm:$0xf] }
  0x67   : > { %v2932_v63 = vsel %vm2692_vm14, %v2213_v15, %v1344_v46  ;;  %v2215_v9 = vrot.slane %v1308_v8, 9  ;;  %v1352_v48 = vrot.slane %v2874_v32, 5  ;;  %v2436_v14 = vld [vmem:[#allocation2 + $0x10] ss:$8 sps:$4 sm:$0xff]   ;;  %v2937_v54 = vsel %vm2692_vm14, %v2214_v10, %v1348_v13  ;;  %v1585_v52 = vld [vmem:[#allocation2 + $0x28] sm:$0xf] }
  0x68   : > { %v1086_v11 = vld [vmem:[#allocation2 + $0x40] sm:$0xf]  ;;  %v1616_v6 = vor.u32 %v1615_v35, %v1612_v28  ;;  %v1619_v41 = vshll.u32 %v1582_v26, 16  ;;  %v1607_v4 = vrot.slane %v1605_v24, 5  ;;  %v1810_v31 = vld [vmem:[#allocation2 + $0x18] sm:$0xe]  ;;  %v2220_v3 = vcombine.low %v2932_v63, %v2937_v54 }
  0x69   : > { %v1187_v16 = vshrl.u32 %v1086_v11, 16  ;;  %v1190_v38 = vshll.u32 %v1086_v11, 16  ;;  %v1309_v36 = vld [vmem:[#allocation2 + $0x40] sm:$0xe]  ;;  %v2244_v61 = vrot.slane %v1809_v40, 9  ;;  %v1835_v5 = vrot.slane %v2899_v17, 5 }
  0x6a   : > { %v2911_v21 = vld [vmem:[#allocation2 + $0x44] sm:$0x1]  ;;  %v2435_v45 = vld [vmem:[#allocation2 + $0x38] ss:$8 sps:$4 sm:$0xff]   ;;  %v2216_v55 = vrot.slane %v1309_v36, 9  ;;  %v1603_v19 = vrot.slane %v1602_v37, 4  ;;  %v2950_v11 = vsel %vm2692_vm14, %v2215_v9, %v1352_v48 }
  0x6b   : > { %2351 = vmatmul.mubr.msk.bf16.vlgmr.msra.gmra.mxu1 %vm611_vm11, %v2433_v25  ;;  %v1196_v7 = vshll.u32 %v2911_v21, 16  ;;  %v1189_v18 = vrot.slane %v1187_v16, 4  ;;  %v1192_v43 = vrot.slane %v1190_v38, 5  ;;  %v1356_v32 = vrot.slane %v2911_v21, 5  ;;  %v1587_v57 = vld [vmem:[#allocation2 + $0x30] sm:$0xf] }
  0x6c   : > { %2369 = vmatpush3.bf16.msra.mxu1 %v1385_v58  ;;  %2354 = vmatprep.mubr.msk.bf16.mxu1 %vm611_vm11, %v2434_v33  ;;  %v1624_v44 = vshrl.u32 %v1583_v49, 16  ;;  %v1627_v33 = vshll.u32 %v1583_v49, 16  ;;  %v1638_v20 = vshrl.u32 %v1585_v52, 16  ;;  %v1641_v30 = vshll.u32 %v1585_v52, 16  ;;  %v1589_v1 = vld [vmem:[#allocation2 + $0x38] sm:$0xf] }
  0x6d   : > { %2418 = vmatprep.subr.msk.bf16.mxu1 %vm624_vm0, %v2235_v27  ;;  %v1193_v29 = vor.u32 %v1192_v43, %v1189_v18  ;;  %v1198_v34 = vrot.slane %v1196_v7, 5  ;;  %v1617_v51 = vrot.slane %v1616_v6, 4  ;;  %v1621_v27 = vrot.slane %v1619_v41, 5  ;;  %v2952_v60 = vld [vmem:[#allocation2 + $0x24] sm:$0x1] }
  0x6e   : > { %v2245_v17 = vrot.slane %v1810_v31, 9  ;;  %v1839_v2 = vrot.slane %v1582_v26, 5  ;;  %v1652_v15 = vshrl.u32 %v1587_v57, 16  ;;  %v1655_v21 = vshll.u32 %v1587_v57, 16  ;;  %v2437_v7 = vld [vmem:[#allocation2 + $0x20] ss:$8 sps:$4 sm:$0xff]  }
  0x6f   : > { %v1194_v50 = vrot.slane %v1193_v29, 4  ;;  %v2957_v16 = vsel %vm2692_vm14, %v2216_v55, %v1356_v32  ;;  %v1608_v38 = vsel %vm2625_vm10, %v1603_v19, %v1607_v4  ;;  %v2963_v0 = vsel %vm2692_vm14, %v2244_v61, %v1835_v5  ;;  %v2965_v46 = vld [vmem:[#allocation2 + $0x2c] sm:$0x1]  ;;  %v2438_v8 = vld [vmem:[#allocation2 + $0x30] ss:$8 sps:$4 sm:$0xff]  }
  0x70   : > { %v1666_v22 = vshrl.u32 %v1589_v1, 16  ;;  %v1626_v10 = vrot.slane %v1624_v44, 4  ;;  %v1629_v13 = vrot.slane %v1627_v33, 5  ;;  %v1640_v18 = vrot.slane %v1638_v20, 4  ;;  %v2974_v26 = vld [vmem:[#allocation2 + $0x20] sm:$0xe] }
  0x71   : > { %v1199_v25 = vsel %vm2625_vm10, %v1194_v50, %v1198_v34  ;;  %v1643_v43 = vrot.slane %v1641_v30, 5  ;;  %v1622_v28 = vsel %vm2625_vm10, %v1617_v51, %v1621_v27  ;;  %v2971_v35 = vsel %vm2692_vm14, %v2245_v17, %v1839_v2  ;;  %v1591_v37 = vld [vmem:[#allocation2 + $0x40] sm:$0xf]  ;;  %v2981_v63 = vld [vmem:[#allocation2 + $0x34] sm:$0x1] }
  0x72   : > { %v2204_v58 = vcombine.low %v1185_v39, %v1199_v25  ;;  %v1669_v24 = vshll.u32 %v1589_v1, 16  ;;  %v1892_v39 = vsel %vm624_vm0, %v2860_v47, 0  ;;  %v1654_v29 = vrot.slane %v1652_v15, 4  ;;  %v2983_v9 = vld [vmem:[#allocation2 + $0x3c] sm:$0x1] }
  0x73   : > { %2355 = vmatmul.mubr.msk.bf16.gmra.mxu1 %vm611_vm11, %v2435_v45  ;;  %v1657_v34 = vrot.slane %v1655_v21, 5  ;;  %v1668_v36 = vrot.slane %v1666_v22, 4  ;;  %v2221_v40 = vcombine.low %v2950_v11, %v2957_v16  ;;  %v1647_v45 = vshll.u32 %v2965_v46, 16  ;;  %v1593_v54 = vld [vmem:[#allocation2 + $0x48] sm:$0xf] }
  0x74   : > { %2370 = vmatprep.mubr.msk.bf16.mxu1 %vm611_vm11, %v2218_v59  ;;  %2365 = vmatmul.mubr.msk.bf16.gmra.mxu0 %vm611_vm11, %v2204_v58  ;;  %v1633_v59 = vshll.u32 %v2952_v60, 16  ;;  %v1671_v48 = vrot.slane %v1669_v24, 5  ;;  %v2236_v47 = vcombine.low %v1608_v38, %v1622_v28  ;;  %v2253_v49 = vcombine.low %v2963_v0, %v2971_v35  ;;  %v1812_v41 = vld [vmem:[#allocation2 + $0x28] sm:$0xe]  ;;  %v1813_v61 = vld [vmem:[#allocation2 + $0x30] sm:$0xe] }
  0x75   : > { %2380 = vmatprep.mubr.msk.bf16.mxu0 %vm611_vm11, %v2436_v14  ;;  %v1630_v50 = vor.u32 %v1629_v13, %v1626_v10  ;;  %v1644_v14 = vor.u32 %v1643_v43, %v1640_v18  ;;  %v2246_v52 = vrot.slane %v2974_v26, 9  ;;  %v1680_v55 = vshrl.u32 %v1591_v37, 16  ;;  %v1814_v25 = vld [vmem:[#allocation2 + $0x38] sm:$0xe]  ;;  %v2439_v44 = vld [vmem:[#allocation2 + $0x40] ss:$8 sps:$4 sm:$0xff]  }
  0x76   : > { %v1635_v6 = vrot.slane %v1633_v59, 5  ;;  %v1683_v4 = vshll.u32 %v1591_v37, 16  ;;  %v1658_v62 = vor.u32 %v1657_v34, %v1654_v29  ;;  %v1661_v12 = vshll.u32 %v2981_v63, 16  ;;  %v1592_v30 = vld [vmem:[#allocation2 + $0x44] sm:$0x1] }
  0x77   : > { %v1675_v31 = vshll.u32 %v2983_v9, 16  ;;  %v1843_v5 = vrot.slane %v2952_v60, 5  ;;  %v1694_v32 = vshrl.u32 %v1593_v54, 16  ;;  %v1697_v19 = vshll.u32 %v1593_v54, 16  ;;  %v1594_v21 = vld [vmem:[#allocation2 + $0x4c] sm:$0x1] }
  0x78   : > { %v1631_v57 = vrot.slane %v1630_v50, 4  ;;  %v1645_v58 = vrot.slane %v1644_v14, 4  ;;  %v2247_v33 = vrot.slane %v1812_v41, 9  ;;  %v1847_v20 = vrot.slane %v2965_v46, 5  ;;  %v1815_v29 = vld [vmem:[#allocation2 + $0x40] sm:$0xe] }
  0x79   : > { %v1682_v1 = vrot.slane %v1680_v55, 4  ;;  %v1685_v51 = vrot.slane %v1683_v4, 5  ;;  %v1696_v27 = vrot.slane %v1694_v32, 4  ;;  %v1699_v17 = vrot.slane %v1697_v19, 5  ;;  %v1816_v34 = vld [vmem:[#allocation2 + $0x48] sm:$0xe] }
  0x7a   : > { %v1659_v2 = vrot.slane %v1658_v62, 4  ;;  %v1677_v15 = vrot.slane %v1675_v31, 5  ;;  %v2248_v60 = vrot.slane %v1813_v61, 9  ;;  %v1851_v16 = vrot.slane %v2981_v63, 5 }
  0x7b   : > { %2371 = vmatmul.mubr.msk.bf16.vlgmr.msra.gmra.mxu1 %vm611_vm11, %v2219_v42  ;;  %v1672_v42 = vor.u32 %v1671_v48, %v1668_v36  ;;  %v2249_v38 = vrot.slane %v1814_v25, 9  ;;  %v1855_v0 = vrot.slane %v2983_v9, 5  ;;  %v1636_v22 = vsel %vm2625_vm10, %v1631_v57, %v1635_v6 }
  0x7c   : > { %2389 = vmatpush3.bf16.msra.mxu1 %v2921_v23  ;;  %2374 = vmatprep.mubr.msk.bf16.mxu1 %vm611_vm11, %v2220_v3  ;;  %v1649_v23 = vrot.slane %v1647_v45, 5  ;;  %v1663_v3 = vrot.slane %v1661_v12, 5  ;;  %v1686_v10 = vor.u32 %v1685_v51, %v1682_v1  ;;  %v1700_v13 = vor.u32 %v1699_v17, %v1696_v27 }
  0x7d   : > { %2381 = vmatmul.mubr.msk.bf16.vlgmr.msra.gmra.mxu0 %vm611_vm11, %v2437_v7  ;;  %v1673_v11 = vrot.slane %v1672_v42, 4  ;;  %v1689_v7 = vshll.u32 %v1592_v30, 16  ;;  %v1703_v18 = vshll.u32 %v1594_v21, 16  ;;  %v1844_v28 = vsel %vm2692_vm14, %v2246_v52, %v1843_v5 }
  0x7e   : > { %2399 = vmatpush3.bf16.msra.mxu0 %v1892_v39  ;;  %2384 = vmatprep.mubr.msk.bf16.mxu0 %vm611_vm11, %v2438_v8  ;;  %v1650_v46 = vsel %vm2625_vm10, %v1645_v58, %v1649_v23  ;;  %v1664_v43 = vsel %vm2625_vm10, %v1659_v2, %v1663_v3  ;;  %v1848_v35 = vsel %vm2692_vm14, %v2247_v33, %v1847_v20  ;;  %v1687_v37 = vrot.slane %v1686_v10, 4 }
  0x7f   : > { %v1678_v8 = vsel %vm2625_vm10, %v1673_v11, %v1677_v15  ;;  %v1852_v59 = vsel %vm2692_vm14, %v2248_v60, %v1851_v16  ;;  %v1856_v26 = vsel %vm2692_vm14, %v2249_v38, %v1855_v0  ;;  %v2237_v24 = vcombine.low %v1636_v22, %v1650_v46 }
  0x80   : > { %v1691_v39 = vrot.slane %v1689_v7, 5  ;;  %v2238_v36 = vcombine.low %v1664_v43, %v1678_v8  ;;  %v1705_v45 = vrot.slane %v1703_v18, 5  ;;  %v2254_v63 = vcombine.low %v1844_v28, %v1848_v35 }
  0x81   : > { %v2255_v9 = vcombine.low %v1852_v59, %v1856_v26  ;;  %v2250_v48 = vrot.slane %v1815_v29, 9  ;;  %v1863_v50 = vrot.slane %v1594_v21, 5  ;;  %vm1997_vm0 = vcmask 57344  }
  0x82   : > { %v1692_v14 = vsel %vm2625_vm10, %v1687_v37, %v1691_v39 }
  0x83   : > { %2375 = vmatmul.mubr.msk.bf16.gmra.mxu1 %vm611_vm11, %v2221_v40  ;;  %v1701_v40 = vrot.slane %v1700_v13, 4 }
  0x84   : > { %2390 = vmatprep.mubr.msk.bf16.mxu1 %vm611_vm11, %v2236_v47  ;;  %v1859_v47 = vrot.slane %v1592_v30, 5 }
  0x85   : > { %2385 = vmatmul.mubr.msk.bf16.gmra.mxu0 %vm611_vm11, %v2439_v44  ;;  %v1706_v54 = vsel %vm2625_vm10, %v1701_v40, %v1705_v45 }
  0x86   : > { %2400 = vmatprep.mubr.msk.bf16.mxu0 %vm611_vm11, %v2253_v49  ;;  %v2251_v49 = vrot.slane %v1816_v34, 9  ;;  %v1860_v6 = vsel %vm2692_vm14, %v2250_v48, %v1859_v47  ;;  %v2239_v52 = vcombine.low %v1692_v14, %v1706_v54 }
  0x88   : > { %v1864_v41 = vsel %vm2692_vm14, %v2251_v49, %v1863_v50 }
  0x89   : > { %v2256_v55 = vcombine.low %v1860_v6, %v1864_v41 }
  0x8b   : > { %2391 = vmatmul.mubr.msk.bf16.vlgmr.msra.gmra.mxu1 %vm611_vm11, %v2237_v24 }
  0x8c   : > { %2394 = vmatprep.mubr.msk.bf16.mxu1 %vm611_vm11, %v2238_v36 }
  0x8d   : > { %2401 = vmatmul.mubr.msk.bf16.vlgmr.msra.gmra.mxu0 %vm611_vm11, %v2254_v63 }
  0x8e   : > { %2404 = vmatprep.mubr.msk.bf16.mxu0 %vm611_vm11, %v2255_v9 }
  0x93   : > { %2395 = vmatmul.mubr.msk.bf16.gmra.mxu1 %vm611_vm11, %v2239_v52 }
  0x95   : > { %2405 = vmatmul.mubr.msk.bf16.gmra.mxu0 %vm611_vm11, %v2256_v55 }
 0x103   : > { %v2322_v4 = vpop.f32.mrf.mxu0 }
 0x105   : > { %v662_v62 = vpop.f32.mrf.mxu0 }
 0x107   : > { %v2323_v56 = vpop.f32.mrf.mxu0 }
 0x109   : > { %v665_v12 = vpop.f32.mrf.mxu0 }
 0x10b   : > { %v2342_v42 = vpop.f32.mrf.mxu0 }
 0x10d   : > { %v915_v31 = vpop.f32.mrf.mxu0 }
 0x10f   : > { %v2343_v61 = vpop.f32.mrf.mxu0 }
 0x111   : > { %v918_v23 = vpop.f32.mrf.mxu0 }
 0x113   : > { %v2326_v5 = vpop.f32.mrf.mxu1  ;;  %v2346_v32 = vpop.f32.mrf.mxu0 }
 0x115   : > { %v678_v25 = vpop.f32.mrf.mxu1  ;;  %v931_v44 = vpop.f32.mrf.mxu0 }
 0x117   : > { %v2327_v19 = vpop.f32.mrf.mxu1  ;;  %v3036_v33 = vpop.f32.mrf.mxu0 }
 0x119   : > { %v681_v53 = vpop.f32.mrf.mxu1  ;;  %v3038_v1 = vpop.f32.mrf.mxu0 }
 0x11b   : > { %v2332_v57 = vpop.f32.mrf.mxu1  ;;  %v2362_v17 = vpop.f32.mrf.mxu0 }
 0x11c   : > { %v771_v8 = vadd.f32 %v2332_v57, %v2322_v4 }
 0x11d   : > { %v762_v58 = vpop.f32.mrf.mxu1  ;;  %v1263_v11 = vpop.f32.mrf.mxu0 }
 0x11e   : > { %v763_v59 = vadd.f32 %v762_v58, %v662_v62  ;;  %v948_v39 = vadd.f32 %v2342_v42, %v771_v8 }
 0x11f   : > { %v2333_v20 = vpop.f32.mrf.mxu1  ;;  %v2363_v60 = vpop.f32.mrf.mxu0 }
 0x120   : > { %v774_v29 = vadd.f32 %v2333_v20, %v2323_v56  ;;  %v946_v37 = vadd.f32 %v915_v31, %v763_v59 }
 0x121   : > { %v765_v30 = vpop.f32.mrf.mxu1  ;;  %v1266_v0 = vpop.f32.mrf.mxu0 }
 0x122   : > { %v766_v45 = vadd.f32 %v765_v30, %v665_v12  ;;  %v949_v48 = vadd.f32 %v2343_v61, %v774_v29 }
 0x123   : > { %v2336_v51 = vpop.f32.mrf.mxu1 }
 0x124   : > { %v787_v47 = vadd.f32 %v2336_v51, %v2326_v5  ;;  %v947_v52 = vadd.f32 %v918_v23, %v766_v45 }
 0x125   : > { %v778_v27 = vpop.f32.mrf.mxu1 }
 0x126   : > { %v779_v50 = vadd.f32 %v778_v27, %v678_v25  ;;  %v952_v62 = vadd.f32 %v2346_v32, %v787_v47 }
 0x127   : > { %v2337_v2 = vpop.f32.mrf.mxu1 }
 0x128   : > { %v950_v31 = vadd.f32 %v931_v44, %v779_v50  ;;  %v790_v57 = vadd.f32 %v2337_v2, %v2327_v19 }
 0x129   : > { %v781_v3 = vpop.f32.mrf.mxu1 }
 0x12a   : > { %v782_v12 = vadd.f32 %v781_v3, %v681_v53  ;;  %v953_v32 = vadd.f32 %v3036_v33, %v790_v57 }
 0x12b   : > { %v2352_v15 = vpop.f32.mrf.mxu1 }
 0x12c   : > { %v1066_v40 = vadd.f32 %v2352_v15, %v948_v39 }
 0x12d   : > { %v1033_v21 = vpop.f32.mrf.mxu1 }
 0x12e   : > { %v1064_v49 = vadd.f32 %v1033_v21, %v946_v37  ;;  %v1296_v6 = vadd.f32 %v2362_v17, %v1066_v40 }
 0x12f   : > { %v2353_v16 = vpop.f32.mrf.mxu1 }
 0x130   : > { %v1067_v41 = vadd.f32 %v2353_v16, %v949_v48  ;;  %v1294_v56 = vadd.f32 %v1263_v11, %v1064_v49  ;;  %v951_v11 = vadd.f32 %v3038_v1, %v782_v12 }
 0x131   : > { %v1036_v38 = vpop.f32.mrf.mxu1 }
 0x132   : > { %v1065_v58 = vadd.f32 %v1036_v38, %v947_v52  ;;  %v1297_v5 = vadd.f32 %v2363_v60, %v1067_v41 }
 0x133   : > { %v2356_v22 = vpop.f32.mrf.mxu1 }
 0x134   : > { %v2366_v7 = vpop.f32.mrf.mxu0  ;;  %v1070_v30 = vadd.f32 %v2356_v22, %v952_v62  ;;  %v1295_v21 = vadd.f32 %v1266_v0, %v1065_v58 }
 0x135   : > { %v1049_v46 = vpop.f32.mrf.mxu1 }
 0x136   : > { %v1279_v10 = vpop.f32.mrf.mxu0  ;;  %v1068_v51 = vadd.f32 %v1049_v46, %v950_v31  ;;  %v1300_v53 = vadd.f32 %v2366_v7, %v1070_v30 }
 0x137   : > { %v2357_v13 = vpop.f32.mrf.mxu1 }
 0x138   : > { %v3040_v18 = vpop.f32.mrf.mxu0  ;;  %v1298_v60 = vadd.f32 %v1279_v10, %v1068_v51  ;;  %v1071_v16 = vadd.f32 %v2357_v13, %v953_v32 }
 0x139   : > { %v1052_v43 = vpop.f32.mrf.mxu1 }
 0x13a   : > { %v3042_v28 = vpop.f32.mrf.mxu0  ;;  %v1069_v38 = vadd.f32 %v1052_v43, %v951_v11  ;;  %v1301_v43 = vadd.f32 %v3040_v18, %v1071_v16 }
 0x13b   : > { %v2372_v35 = vpop.f32.mrf.mxu1 }
 0x13c   : > { %v1454_v42 = vadd.f32 %v2372_v35, %v1296_v6 }
 0x13d   : > { %v2382_v26 = vpop.f32.mrf.mxu0  ;;  %v1421_v24 = vpop.f32.mrf.mxu1 }
 0x13e   : > { %v1452_v25 = vadd.f32 %v1421_v24, %v1294_v56  ;;  %v1573_v15 = vadd.f32 %v2382_v26, %v1454_v42 }
 0x13f   : > { %v1540_v34 = vpop.f32.mrf.mxu0  ;;  %v2373_v36 = vpop.f32.mrf.mxu1 }
 0x140   : > { %v1455_v23 = vadd.f32 %v2373_v36, %v1297_v5  ;;  %v1571_v2 = vadd.f32 %v1540_v34, %v1452_v25  ;;  %v1299_v34 = vadd.f32 %v3042_v28, %v1069_v38 }
 0x141   : > { %v2383_v63 = vpop.f32.mrf.mxu0  ;;  %v1424_v9 = vpop.f32.mrf.mxu1 }
 0x142   : > { %v1453_v22 = vadd.f32 %v1424_v9, %v1295_v21  ;;  %v1574_v1 = vadd.f32 %v2383_v63, %v1455_v23 }
 0x143   : > { %v1543_v14 = vpop.f32.mrf.mxu0  ;;  %v2376_v54 = vpop.f32.mrf.mxu1 }
 0x144   : > { %v1458_v0 = vadd.f32 %v2376_v54, %v1300_v53  ;;  %v1572_v24 = vadd.f32 %v1543_v14, %v1453_v22 }
 0x145   : > { %v2386_v55 = vpop.f32.mrf.mxu0  ;;  %v1437_v4 = vpop.f32.mrf.mxu1 }
 0x146   : > { %v1456_v26 = vadd.f32 %v1437_v4, %v1298_v60  ;;  %v1577_v36 = vadd.f32 %v2386_v55, %v1458_v0 }
 0x147   : > { %v1556_v20 = vpop.f32.mrf.mxu0  ;;  %v2377_v61 = vpop.f32.mrf.mxu1 }
 0x148   : > { %v1459_v40 = vadd.f32 %v2377_v61, %v1301_v43  ;;  %v1575_v48 = vadd.f32 %v1556_v20, %v1456_v26 }
 0x149   : > { %v2387_v27 = vpop.f32.mrf.mxu0  ;;  %v1440_v17 = vpop.f32.mrf.mxu1 }
 0x14a   : > { %v1457_v47 = vadd.f32 %v1440_v17, %v1299_v34  ;;  %v1578_v52 = vadd.f32 %v2387_v27, %v1459_v40 }
 0x14b   : > { %v1559_v44 = vpop.f32.mrf.mxu0  ;;  %v2392_v19 = vpop.f32.mrf.mxu1 }
 0x14c   : > { %v1803_v3 = vadd.f32 %v2392_v19, %v1573_v15  ;;  %v1576_v31 = vadd.f32 %v1559_v44, %v1457_v47 }
 0x14d   : > { %v2402_v33 = vpop.f32.mrf.mxu0  ;;  %v1770_v46 = vpop.f32.mrf.mxu1 }
 0x14e   : > { %v1961_v8 = vadd.f32 %v2402_v33, %v1803_v3  ;;  %v1801_v7 = vadd.f32 %v1770_v46, %v1571_v2 }
 0x14f   : > { %v1928_v35 = vpop.f32.mrf.mxu0  ;;  %v2393_v59 = vpop.f32.mrf.mxu1 }
 0x150   : > { %1970 = vst.msk [vmem:[%s3050_s14 + $0x10] sm:$0xff] %vm1967_vm15, %v1961_v8  ;;  %v1959_v10 = vadd.f32 %v1928_v35, %v1801_v7  ;;  %v1804_v13 = vadd.f32 %v2393_v59, %v1574_v1  ;;  %v2001_v28 = vmul.f32 %v1961_v8, %v1961_v8  ;;  %v1979_v57 = vsel %vm1967_vm15, %v1961_v8, 0.0 }
 0x151   : > { %v2403_v39 = vpop.f32.mrf.mxu0  ;;  %v1773_v29 = vpop.f32.mrf.mxu1 }
 0x152   : > { %1968 = vst.msk [vmem:[%s3050_s14] sm:$0xff] %vm1967_vm15, %v1959_v10  ;;  %v1962_v37 = vadd.f32 %v2403_v39, %v1804_v13  ;;  %v1802_v45 = vadd.f32 %v1773_v29, %v1572_v24  ;;  %v1999_v18 = vmul.f32 %v1959_v10, %v1959_v10  ;;  %v1976_v55 = vsel %vm1967_vm15, %v1959_v10, 0.0 }
 0x153   : > { %v1931_v63 = vpop.f32.mrf.mxu0  ;;  %v2396_v9 = vpop.f32.mrf.mxu1  ;;  %v2010_v27 = vsel %vm1967_vm15, %v2001_v28, 0.0 }
 0x154   : > { %1971 = vst.msk [vmem:[%s3050_s14 + $0x18] sm:$0xff] %vm1967_vm15, %v1962_v37  ;;  %v1807_v49 = vadd.f32 %v2396_v9, %v1577_v36  ;;  %v1960_v50 = vadd.f32 %v1931_v63, %v1802_v45  ;;  %v2007_v20 = vsel %vm1967_vm15, %v1999_v18, 0.0  ;;  %v2002_v61 = vmul.f32 %v1962_v37, %v1962_v37 }
 0x155   : > { %v2406_v14 = vpop.f32.mrf.mxu0  ;;  %v1786_v54 = vpop.f32.mrf.mxu1  ;;  %v1981_v23 = vsel %vm1967_vm15, %v1962_v37, 0.0 }
 0x156   : > { %v1965_v6 = vadd.f32 %v2406_v14, %v1807_v49  ;;  %v1805_v41 = vadd.f32 %v1786_v54, %v1575_v48  ;;  %1969 = vst.msk [vmem:[%s3050_s14 + $0x8] sm:$0xff] %vm1967_vm15, %v1960_v50  ;;  %v1977_v4 = vsel %vm1967_vm15, %v1960_v50, 0.0  ;;  %v2000_v62 = vmul.f32 %v1960_v50, %v1960_v50 }
 0x157   : > { %v1944_v56 = vpop.f32.mrf.mxu0  ;;  %v2397_v42 = vpop.f32.mrf.mxu1  ;;  %v1978_v12 = vadd.f32 %v1977_v4, %v1976_v55  ;;  %v2012_v2 = vsel %vm1967_vm15, %v2002_v61, 0.0 }
 0x158   : > { %1974 = vst.msk [vmem:[%s3050_s14 + $0x30] sm:$0xff] %vm1967_vm15, %v1965_v6  ;;  %v1963_v58 = vadd.f32 %v1944_v56, %v1805_v41  ;;  %v2008_v5 = vsel %vm1967_vm15, %v2000_v62, 0.0  ;;  %v1808_v30 = vadd.f32 %v2397_v42, %v1578_v52  ;;  %v2005_v22 = vmul.f32 %v1965_v6, %v1965_v6 }
 0x159   : > { %v2407_v25 = vpop.f32.mrf.mxu0  ;;  %v1789_v51 = vpop.f32.mrf.mxu1  ;;  %v1980_v17 = vadd.f32 %v1979_v57, %v1978_v12  ;;  %v2009_v15 = vadd.f32 %v2008_v5, %v2007_v20  ;;  %v1987_v7 = vsel %vm1967_vm15, %v1965_v6, 0.0 }
 0x15a   : > { %1972 = vst.msk [vmem:[%s3050_s14 + $0x20] sm:$0xff] %vm1967_vm15, %v1963_v58  ;;  %v2003_v32 = vmul.f32 %v1963_v58, %v1963_v58  ;;  %v1966_v11 = vadd.f32 %v2407_v25, %v1808_v30  ;;  %v1806_v21 = vadd.f32 %v1789_v51, %v1576_v31  ;;  %v1983_v3 = vsel %vm1967_vm15, %v1963_v58, 0.0 }
 0x15b   : > { %v2011_v44 = vadd.f32 %v2010_v27, %v2009_v15  ;;  %v1982_v19 = vadd.f32 %v1981_v23, %v1980_v17  ;;  %v1947_v53 = vpop.f32.mrf.mxu0  ;;  %v2018_v13 = vsel %vm1967_vm15, %v2005_v22, 0.0 }
 0x15c   : > { %1975 = vst.msk [vmem:[%s3050_s14 + $0x38] sm:$0xff] %vm1967_vm15, %v1966_v11  ;;  %v1964_v60 = vadd.f32 %v1947_v53, %v1806_v21  ;;  %v2014_v33 = vsel %vm1967_vm15, %v2003_v32, 0.0  ;;  %v2006_v35 = vmul.f32 %v1966_v11, %v1966_v11  ;;  %v1989_v43 = vsel %vm1967_vm15, %v1966_v11, 0.0 }
 0x15d   : > { %v1984_v16 = vadd.f32 %v1983_v3, %v1982_v19  ;;  %v2013_v38 = vadd.f32 %v2012_v2, %v2011_v44 }
 0x15e   : > { %1973 = vst.msk [vmem:[%s3050_s14 + $0x28] sm:$0xff] %vm1967_vm15, %v1964_v60  ;;  %v1985_v46 = vsel %vm1967_vm15, %v1964_v60, 0.0  ;;  %v2004_v1 = vmul.f32 %v1964_v60, %v1964_v60  ;;  %v2020_v29 = vsel %vm1967_vm15, %v2006_v35, 0.0 }
 0x15f   : > { %v2015_v0 = vadd.f32 %v2014_v33, %v2013_v38  ;;  %v1986_v8 = vadd.f32 %v1985_v46, %v1984_v16 }
 0x160   : > { %v2016_v59 = vsel %vm1967_vm15, %v2004_v1, 0.0 }
 0x161   : > { %v1988_v26 = vadd.f32 %v1987_v7, %v1986_v8  ;;  %v2017_v10 = vadd.f32 %v2016_v59, %v2015_v0 }
 0x163   : > { %v1990_v24 = vadd.f32 %v1989_v43, %v1988_v26  ;;  %v2019_v39 = vadd.f32 %v2018_v13, %v2017_v10 }
 0x165   : > { %v1991_v34 = vrot.slane %v1990_v24, 4  ;;  %v2021_v36 = vadd.f32 %v2020_v29, %v2019_v39 }
 0x167   : > { %v1992_v37 = vadd.f32 %v1991_v34, %v1990_v24  ;;  %v2022_v40 = vrot.slane %v2021_v36, 4 }
 0x169   : > { %v1993_v45 = vrot.slane %v1992_v37, 2  ;;  %v2023_v63 = vadd.f32 %v2022_v40, %v2021_v36 }
 0x16b   : > { %v1994_v9 = vadd.f32 %v1993_v45, %v1992_v37  ;;  %v2024_v48 = vrot.slane %v2023_v63, 2 }
 0x16d   : > { %v1995_v47 = vrot.slane %v1994_v9, 1  ;;  %v2025_v49 = vadd.f32 %v2024_v48, %v2023_v63 }
 0x16f   : > { %v1996_v18 = vadd.f32 %v1995_v47, %v1994_v9  ;;  %v2026_v50 = vrot.slane %v2025_v49, 1 }
 0x171   : > { %1998 = vst.msk [vmem:[%s181_s18] sm:$0x1] %vm1997_vm0, %v1996_v18  ;;  %v2027_v14 = vadd.f32 %v2026_v50, %v2025_v49 }
 0x173   : > { %2028 = vst.msk [vmem:[%s181_s18 + $0x1] sm:$0x1] %vm1997_vm0, %v2027_v14 }
 0x174 PF: > { %s14_s12 = sadd.s32 1, %s2446_s12  }
 0x175   : > { %p11_p4 = scmp.ge.s32.totalorder %s14_s12, 4  }
 0x177   :  { %13 = sbr.rel (!%p11_p4) target bundleno = 1 (0x1), region = 84 }

// kernel: down_forward.4
= control target key start
LH: loop header
LB: loop body
LE: loop exit
PB: predicated region body
PF: predicated region fallthrough
CT: control target
= control target key end

     0   :  { %s2496_s18 = smov 0   ;;  %s3073_s0 = inlined_call_operand.vmem [shape: f32[2,8,8,8], index: 0, kind: input, shape index: {}]   ;;  %s3074_s1 = inlined_call_operand.vmem [shape: f32[1,8], index: 1, kind: input, shape index: {}]   ;;  %s3075_s2 = inlined_call_operand.vmem [shape: f32[1,8], index: 2, kind: input, shape index: {}]   ;;  %s3076_s3 = inlined_call_operand.vmem [shape: bf16[9,8,8], index: 3, kind: input, shape index: {}]   ;;  %s3077_s4 = inlined_call_operand.vmem [shape: f32[2,8,8,8], index: 4, kind: output, shape index: {0}]   ;;  %s3078_s5 = inlined_call_operand.vmem [shape: f32[2,2,8], index: 5, kind: output, shape index: {1}]  }
   0x1 LB: > { %s2154_s19 = sadd.s32 4294967295, %s2463_s18   ;;  %p2158_p0 = scmp.ge.s32.totalorder %s2463_s18, 1  ;;  %s2463_s18 = sphi %s2496_s18, %s16_s18  }
   0x2   : > { %p190_p1 = scmp.lt.s32.totalorder %s2463_s18, 3 }
   0x4   : > { %p191_p2 = pnand %p2158_p0, %p190_p1 }
   0x5   : > { %p222_p3 = scmp.lt.s32.totalorder (!%p191_p2), %s2154_s19, 1 }
   0x6   : > { %194 = sbr.rel (%p191_p2) target bundleno = 373 (0x175), region = 36 }
   0xb   : > { %v2174_v0 = vld [vmem:[%s3076_s3 + $0x4] sm:$0xf]  ;;  %vm665_vm0 = vcmask 1043456   ;;  %vm283_vm1 = vcmask 60416   ;;  %vm285_vm2 = vcmask 57344   ;;  %s3090_s19 = smov (!%p222_p3, %s2154_s19), 1 }
   0xc   : > { %2428 = vmatprep.subr.msk.bf16.mxu1 %vm665_vm0, %v2174_v0  ;;  %2427 = vmatprep.subr.msk.bf16.mxu0 %vm665_vm0, %v2174_v0  ;;  %v667_v1 = vsel %vm665_vm0, %v2174_v0, 0  ;;  %v2465_v2 = vmov 0   ;;  %vm292_vm3 = vsmask.f32 256  ;;  %v294_v3 = vld [vmem:[#allocation2 + $0x8] sm:$0x1] }
   0xd   : > { %2426 = vmatpush3.bf16.msra.mxu1 %v667_v1  ;;  %2336 = vmatpush3.bf16.msra.mxu0 %v667_v1  ;;  %284 = vst.msk [vmem:[#allocation2] sm:$0xf] %vm283_vm1, %v2465_v2  ;;  %288 = vst.msk [vmem:[#allocation2 + $0x48] sm:$0xf] %vm283_vm1, %v2465_v2  ;;  %vm318_vm5 = vsmask.f32 7938 }
   0xe   : > { %286 = vst.msk [vmem:[#allocation2 + $0x4] sm:$0x1] %vm285_vm2, %v2465_v2  ;;  %289 = vst.msk [vmem:[#allocation2 + $0x4c] sm:$0x1] %vm285_vm2, %v2465_v2  ;;  %v320_v5 = vld [vmem:[#allocation2 + $0xc] sm:$0x1] }
   0xf   : > { %vm2517_vm4 = vmand %vm285_vm2, %vm292_vm3  ;;  %s2280_s22 = sshll.u32 %s3090_s19, 6  ;;  %v2525_v6 = vld [vmem:[%s3074_s1] ss:$0 sm:$0xff]  ;;  %v306_v12 = vld [vmem:[#allocation2 + $0x28] sm:$0x1]  ;;  %vm652_vm11 = vcmask 64512  }
  0x10   : > { %v295_v7 = vsel %vm2517_vm4, 0, %v294_v3  ;;  %vm2531_vm6 = vmand %vm285_vm2, %vm318_vm5  ;;  %v303_v9 = vld [vmem:[#allocation2 + $0x20] sm:$0x1]  ;;  %s2540_s27 = scalar_lea.vmem %s3073_s0, %s2280_s22  ;;  %v329_v13 = vld [vmem:[#allocation2 + $0x24] sm:$0x1]  ;;  %v307_v17 = vsel %vm2517_vm4, 0, %v306_v12  ;;  %s3028_s26 = scalar_lea.vmem %s3077_s4, %s2280_s22 }
  0x11   : > { %296 = vst [vmem:[#allocation2 + $0x8] sm:$0x1] %v295_v7  ;;  %v321_v10 = vsel %vm2531_vm6, 0, %v320_v5  ;;  %v304_v11 = vsel %vm2517_vm4, 0, %v303_v9  ;;  %v237_v14 = vld [vmem:[%s2540_s27] sm:$0xff]  ;;  %v240_v16 = vld [vmem:[%s2540_s27 + $0x18] sm:$0xff]  ;;  %vm2600_vm9 = vmand %vm283_vm1, %vm318_vm5 }
  0x12   : > { %v2550_v15 = vld [vmem:[%s3075_s2] ss:$0 sm:$0xff]  ;;  %322 = vst [vmem:[#allocation2 + $0xc] sm:$0x1] %v321_v10  ;;  %305 = vst [vmem:[#allocation2 + $0x20] sm:$0x1] %v304_v11  ;;  %v252_v19 = vmul.f32 %v2525_v6, %v237_v14  ;;  %v255_v21 = vmul.f32 %v2525_v6, %v240_v16 }
  0x13   : > { %v330_v18 = vsel %vm2531_vm6, 0, %v329_v13  ;;  %v241_v20 = vld [vmem:[%s2540_s27 + $0x20] sm:$0xff]  ;;  %308 = vst [vmem:[#allocation2 + $0x28] sm:$0x1] %v307_v17  ;;  %v332_v22 = vld [vmem:[#allocation2 + $0x2c] sm:$0x1] }
  0x14   : > { %331 = vst [vmem:[#allocation2 + $0x24] sm:$0x1] %v330_v18  ;;  %v514_v23 = vld [vmem:[%s3076_s3] sm:$0xf]  ;;  %v256_v24 = vmul.f32 %v2525_v6, %v241_v20  ;;  %v333_v25 = vsel %vm2531_vm6, 0, %v332_v22  ;;  %v238_v26 = vld [vmem:[%s2540_s27 + $0x8] sm:$0xff]  ;;  %v267_v28 = vadd.f32 %v2550_v15, %v252_v19  ;;  %v270_v31 = vadd.f32 %v2550_v15, %v255_v21 }
  0x15   : > { %2429 = vmatprep.subr.msk.bf16.mxu1 %vm665_vm0, %v514_v23  ;;  %v239_v27 = vld [vmem:[%s2540_s27 + $0x10] sm:$0xff]  ;;  %v2570_v29 = vld [vmem:[#allocation2] sm:$0xf]  ;;  %v2572_v30 = vld [vmem:[#allocation2 + $0x4] sm:$0x1]  ;;  %v253_v32 = vmul.f32 %v2525_v6, %v238_v26  ;;  %v2584_v46 = vsel %vm665_vm0, %v514_v23, 0 }
  0x16   : > { %334 = vst [vmem:[#allocation2 + $0x2c] sm:$0x1] %v333_v25  ;;  %v254_v33 = vmul.f32 %v2525_v6, %v239_v27  ;;  %v527_v34 = vshrl.u32 %v2570_v29, 16  ;;  %v530_v35 = vshll.u32 %v2570_v29, 16  ;;  %v536_v36 = vshll.u32 %v2572_v30, 16  ;;  %v242_v52 = vld [vmem:[%s2540_s27 + $0x28] sm:$0xff] }
  0x17   : > { %v275_v37 = vmax.f32 %v267_v28, 0.0  ;;  %v271_v38 = vadd.f32 %v2550_v15, %v256_v24  ;;  %v278_v39 = vmax.f32 %v270_v31, 0.0  ;;  %v268_v40 = vadd.f32 %v2550_v15, %v253_v32  ;;  %v297_v41 = vld [vmem:[#allocation2 + $0x10] sm:$0x1]  ;;  %v300_v45 = vld [vmem:[#allocation2 + $0x18] sm:$0x1] }
  0x18   : > { %v529_v42 = vrot.slane %v527_v34, 4  ;;  %v532_v43 = vrot.slane %v530_v35, 5  ;;  %v269_v44 = vadd.f32 %v2550_v15, %v254_v33  ;;  %v2586_v48 = vrot.slane %v536_v36, 5  ;;  %v323_v51 = vld [vmem:[#allocation2 + $0x14] sm:$0x1]  ;;  %s2163_s22 = sshll.u32 %s3090_s19, 1 }
  0x19   : > { %v2282_v47 = vpack.c.bf16 %v275_v37, %v275_v37  ;;  %v279_v49 = vmax.f32 %v271_v38, 0.0  ;;  %v2285_v50 = vpack.c.bf16 %v278_v39, %v278_v39  ;;  %v276_v54 = vmax.f32 %v268_v40, 0.0  ;;  %v326_v61 = vld [vmem:[#allocation2 + $0x1c] sm:$0x1]  ;;  %v458_v62 = vld [vmem:[#allocation2 + $0x8] sm:$0xf]  ;;  %s235_s29 = scalar_lea.vmem %s3078_s5, %s2163_s22 }
  0x1a   : > { %v533_v53 = vor.u32 %v532_v43, %v529_v42  ;;  %v277_v55 = vmax.f32 %v269_v44, 0.0  ;;  %v298_v56 = vsel %vm2517_vm4, 0, %v297_v41  ;;  %vm523_vm7 = vsmask.f32 3328  ;;  %v461_v5 = vld [vmem:[#allocation2 + $0xc] sm:$0x1] }
  0x1b   : > { %v377_v57 = vshrl.u32 %v2282_v47, 16  ;;  %v380_v58 = vshll.u32 %v2282_v47, 16  ;;  %vm524_vm8 = vsmask.f32 7440  ;;  %v2286_v59 = vpack.c.bf16 %v279_v49, %v279_v49  ;;  %299 = vst [vmem:[#allocation2 + $0x10] sm:$0x1] %v298_v56 }
  0x1c   : > { %v401_v60 = vshrl.u32 %v2285_v50, 16  ;;  %v404_v63 = vshll.u32 %v2285_v50, 16  ;;  %v301_v0 = vsel %vm2517_vm4, 0, %v300_v45  ;;  %v324_v1 = vsel %vm2531_vm6, 0, %v323_v51  ;;  %v476_v13 = vld [vmem:[#allocation2 + $0x20] sm:$0xf]  ;;  %vm2632_vm10 = vmor %vm523_vm7, %vm524_vm8 }
  0x1d   : > { %v257_v2 = vmul.f32 %v2525_v6, %v242_v52  ;;  %v379_v3 = vrot.slane %v377_v57, 7  ;;  %v2596_v7 = vrot.slane %v533_v53, 4  ;;  %v409_v10 = vshrl.u32 %v2286_v59, 16  ;;  %302 = vst [vmem:[#allocation2 + $0x18] sm:$0x1] %v301_v0  ;;  %v243_v23 = vld [vmem:[%s2540_s27 + $0x30] sm:$0xff] }
  0x1e   : > { %v403_v9 = vrot.slane %v401_v60, 7  ;;  %325 = vst [vmem:[#allocation2 + $0x14] sm:$0x1] %v324_v1  ;;  %v412_v12 = vshll.u32 %v2286_v59, 16  ;;  %v479_v14 = vld [vmem:[#allocation2 + $0x24] sm:$0x1]  ;;  %v2283_v17 = vpack.c.bf16 %v276_v54, %v276_v54  ;;  %v2284_v18 = vpack.c.bf16 %v277_v55, %v277_v55 }
  0x1f   : > { %v327_v16 = vsel %vm2531_vm6, 0, %v326_v61  ;;  %v382_v19 = vor.u32 %v380_v58, %v379_v3  ;;  %v383_v20 = vrot.slane %v379_v3, 4  ;;  %v2199_v24 = vld [vmem:[%s3076_s3 + $0x8] sm:$0xf]  ;;  %v411_v25 = vrot.slane %v409_v10, 7 }
  0x20   : > { %v406_v21 = vor.u32 %v404_v63, %v403_v9  ;;  %v407_v22 = vrot.slane %v403_v9, 4  ;;  %328 = vst [vmem:[#allocation2 + $0x1c] sm:$0x1] %v327_v16  ;;  %v385_v26 = vshrl.u32 %v2283_v17, 16  ;;  %v388_v27 = vshll.u32 %v2283_v17, 16  ;;  %2430 = vmatprep.subr.msk.bf16.mxu0 %vm665_vm0, %v2199_v24 }
  0x21   : > { %v393_v28 = vshrl.u32 %v2284_v18, 16  ;;  %v309_v31 = vld [vmem:[#allocation2 + $0x30] sm:$0x1]  ;;  %v459_v32 = vsel %vm2600_vm9, %v382_v19, %v458_v62  ;;  %v462_v33 = vsel %vm2517_vm4, %v383_v20, %v461_v5  ;;  %v482_v36 = vld [vmem:[#allocation2 + $0x28] sm:$0xf]  ;;  %v414_v39 = vor.u32 %v412_v12, %v411_v25 }
  0x22   : > { %v477_v34 = vsel %vm2600_vm9, %v406_v21, %v476_v13  ;;  %v480_v35 = vsel %vm2517_vm4, %v407_v22, %v479_v14  ;;  %v485_v37 = vld [vmem:[#allocation2 + $0x2c] sm:$0x1]  ;;  %v312_v38 = vld [vmem:[#allocation2 + $0x38] sm:$0x1]  ;;  %460 = vst [vmem:[#allocation2 + $0x8] sm:$0xf] %v459_v32  ;;  %v258_v47 = vmul.f32 %v2525_v6, %v243_v23  ;;  %v272_v49 = vadd.f32 %v2550_v15, %v257_v2 }
  0x23   : > { %463 = vst [vmem:[#allocation2 + $0xc] sm:$0x1] %v462_v33  ;;  %v415_v40 = vrot.slane %v411_v25, 4  ;;  %478 = vst [vmem:[#allocation2 + $0x20] sm:$0xf] %v477_v34  ;;  %v387_v41 = vrot.slane %v385_v26, 7  ;;  %v483_v52 = vsel %vm2600_vm9, %v414_v39, %v482_v36  ;;  %v539_v21 = vsel %vm2632_vm10, %v2596_v7, %v2586_v48 }
  0x24   : > { %481 = vst [vmem:[#allocation2 + $0x24] sm:$0x1] %v480_v35  ;;  %v395_v42 = vrot.slane %v393_v28, 7  ;;  %v335_v43 = vld [vmem:[#allocation2 + $0x34] sm:$0x1]  ;;  %v396_v44 = vshll.u32 %v2284_v18, 16  ;;  %v273_v60 = vadd.f32 %v2550_v15, %v258_v47 }
  0x25   : > { %v464_v45 = vld [vmem:[#allocation2 + $0x10] sm:$0xf]  ;;  %v310_v50 = vsel %vm2517_vm4, 0, %v309_v31  ;;  %v338_v51 = vld [vmem:[#allocation2 + $0x3c] sm:$0x1]  ;;  %v486_v53 = vsel %vm2517_vm4, %v415_v40, %v485_v37  ;;  %v390_v54 = vor.u32 %v388_v27, %v387_v41  ;;  %v391_v55 = vrot.slane %v387_v41, 4 }
  0x26   : > { %v467_v56 = vld [vmem:[#allocation2 + $0x14] sm:$0x1]  ;;  %v470_v57 = vld [vmem:[#allocation2 + $0x18] sm:$0xf]  ;;  %311 = vst [vmem:[#allocation2 + $0x30] sm:$0x1] %v310_v50  ;;  %v398_v58 = vor.u32 %v396_v44, %v395_v42 }
  0x27   : > { %484 = vst [vmem:[#allocation2 + $0x28] sm:$0xf] %v483_v52  ;;  %487 = vst [vmem:[#allocation2 + $0x2c] sm:$0x1] %v486_v53  ;;  %v399_v59 = vrot.slane %v395_v42, 4  ;;  %v280_v61 = vmax.f32 %v272_v49, 0.0  ;;  %v465_v0 = vsel %vm2600_vm9, %v390_v54, %v464_v45  ;;  %v468_v1 = vsel %vm2517_vm4, %v391_v55, %v467_v56 }
  0x28   : > { %v2628_v62 = vld [vmem:[#allocation2] sm:$0xe]  ;;  %v473_v2 = vld [vmem:[#allocation2 + $0x1c] sm:$0x1]  ;;  %v313_v3 = vsel %vm2517_vm4, 0, %v312_v38  ;;  %v336_v5 = vsel %vm2531_vm6, 0, %v335_v43  ;;  %v471_v10 = vsel %vm2600_vm9, %v398_v58, %v470_v57 }
  0x29   : > { %v863_v9 = vrot.slane %v2572_v30, 5  ;;  %466 = vst [vmem:[#allocation2 + $0x10] sm:$0xf] %v465_v0  ;;  %469 = vst [vmem:[#allocation2 + $0x14] sm:$0x1] %v468_v1  ;;  %v474_v12 = vsel %vm2517_vm4, %v399_v59, %v473_v2  ;;  %v339_v13 = vsel %vm2531_vm6, 0, %v338_v51  ;;  %v2651_v16 = vpack.c.bf16 %v280_v61, %v280_v61 }
  0x2a   : > { %314 = vst [vmem:[#allocation2 + $0x38] sm:$0x1] %v313_v3  ;;  %337 = vst [vmem:[#allocation2 + $0x34] sm:$0x1] %v336_v5  ;;  %v281_v14 = vmax.f32 %v273_v60, 0.0  ;;  %v2654_v17 = vsel %vm665_vm0, %v2199_v24, 0 }
  0x2b   : > { %472 = vst [vmem:[#allocation2 + $0x18] sm:$0xf] %v471_v10  ;;  %475 = vst [vmem:[#allocation2 + $0x1c] sm:$0x1] %v474_v12  ;;  %v2191_v18 = vrot.slane %v2628_v62, 9  ;;  %vm858_vm12 = vcmask 1042432  }
  0x2c   : > { %340 = vst [vmem:[#allocation2 + $0x3c] sm:$0x1] %v339_v13  ;;  %v2657_v19 = vld [vmem:[#allocation2 + $0x8] sm:$0xf]  ;;  %v2659_v20 = vld [vmem:[#allocation2 + $0xc] sm:$0x1]  ;;  %v2288_v54 = vpack.c.bf16 %v281_v14, %v281_v14 }
  0x2d   : > { %v2665_v22 = vld [vmem:[#allocation2 + $0x20] sm:$0xf]  ;;  %v541_v23 = vshrl.u32 %v2657_v19, 16  ;;  %v544_v25 = vshll.u32 %v2657_v19, 16  ;;  %v550_v24 = vshll.u32 %v2659_v20, 16  ;;  %v867_v26 = vrot.slane %v2659_v20, 5 }
  0x2e   : > { %v2671_v27 = vld [vmem:[#allocation2 + $0x24] sm:$0x1]  ;;  %vm859_vm13 = vcmask 1046532   ;;  %v583_v28 = vshrl.u32 %v2665_v22, 16  ;;  %v586_v31 = vshll.u32 %v2665_v22, 16  ;;  %v417_v36 = vshrl.u32 %v2651_v16, 16 }
  0x2f   : > { %v592_v48 = vshll.u32 %v2671_v27, 16  ;;  %v879_v7 = vrot.slane %v2671_v27, 5  ;;  %v543_v32 = vrot.slane %v541_v23, 4  ;;  %v546_v33 = vrot.slane %v544_v25, 5  ;;  %v2677_v35 = vld [vmem:[#allocation2 + $0x28] sm:$0xf]  ;;  %vm2710_vm14 = vmor %vm858_vm12, %vm859_vm13 }
  0x30   : > { %v552_v34 = vrot.slane %v550_v24, 5  ;;  %v2680_v37 = vld [vmem:[#allocation2 + $0x2c] sm:$0x1]  ;;  %v585_v38 = vrot.slane %v583_v28, 4  ;;  %v588_v39 = vrot.slane %v586_v31, 5  ;;  %v597_v41 = vshrl.u32 %v2677_v35, 16 }
  0x31   : > { %v594_v40 = vrot.slane %v592_v48, 5  ;;  %v547_v42 = vor.u32 %v546_v33, %v543_v32  ;;  %v600_v43 = vshll.u32 %v2677_v35, 16  ;;  %v606_v44 = vshll.u32 %v2680_v37, 16  ;;  %v2686_v47 = vld [vmem:[#allocation2 + $0x10] sm:$0xf] }
  0x32   : > { %v883_v45 = vrot.slane %v2680_v37, 5  ;;  %v589_v49 = vor.u32 %v588_v39, %v585_v38  ;;  %v599_v50 = vrot.slane %v597_v41, 4  ;;  %v2688_v51 = vld [vmem:[#allocation2 + $0x18] sm:$0xf]  ;;  %v2690_v52 = vld [vmem:[#allocation2 + $0x14] sm:$0x1] }
  0x33   : > { %v555_v53 = vshrl.u32 %v2686_v47, 16  ;;  %v548_v55 = vrot.slane %v547_v42, 4  ;;  %v602_v56 = vrot.slane %v600_v43, 5  ;;  %v608_v57 = vrot.slane %v606_v44, 5  ;;  %v2694_v60 = vld [vmem:[#allocation2 + $0x1c] sm:$0x1] }
  0x34   : > { %v558_v58 = vshll.u32 %v2686_v47, 16  ;;  %v590_v59 = vrot.slane %v589_v49, 4  ;;  %v564_v0 = vshll.u32 %v2690_v52, 16  ;;  %v569_v1 = vshrl.u32 %v2688_v51, 16  ;;  %v488_v48 = vld [vmem:[#allocation2 + $0x30] sm:$0xf] }
  0x35   : > { %v557_v61 = vrot.slane %v555_v53, 4  ;;  %v553_v2 = vsel %vm2632_vm10, %v548_v55, %v552_v34  ;;  %v603_v3 = vor.u32 %v602_v56, %v599_v50  ;;  %v572_v10 = vshll.u32 %v2688_v51, 16  ;;  %v491_v32 = vld [vmem:[#allocation2 + $0x34] sm:$0x1]  ;;  %v835_v39 = vld [vmem:[#allocation2 + $0x8] sm:$0xe] }
  0x36   : > { %v560_v5 = vrot.slane %v558_v58, 5  ;;  %v2175_v12 = vcombine.low %v539_v21, %v553_v2  ;;  %v595_v13 = vsel %vm2632_vm10, %v590_v59, %v594_v40  ;;  %v566_v14 = vrot.slane %v564_v0, 5  ;;  %v836_v49 = vld [vmem:[#allocation2 + $0x10] sm:$0xe]  ;;  %v837_v55 = vld [vmem:[#allocation2 + $0x18] sm:$0xe] }
  0x37   : > { %v571_v23 = vrot.slane %v569_v1, 4  ;;  %v604_v25 = vrot.slane %v603_v3, 4  ;;  %v574_v28 = vrot.slane %v572_v10, 5  ;;  %v578_v31 = vshll.u32 %v2694_v60, 16  ;;  %v494_v59 = vld [vmem:[#allocation2 + $0x38] sm:$0xf] }
  0x38   : > { %v561_v24 = vor.u32 %v560_v5, %v557_v61  ;;  %2337 = vmatprep.mubr.msk.bf16.mxu0 %vm652_vm11, %v2175_v12  ;;  %v871_v33 = vrot.slane %v2690_v52, 5  ;;  %v875_v34 = vrot.slane %v2694_v60, 5  ;;  %v419_v38 = vrot.slane %v417_v36, 7  ;;  %v2217_v60 = vld [vmem:[%s3076_s3 + $0x10] sm:$0xf] }
  0x39   : > { %v420_v21 = vshll.u32 %v2651_v16, 16  ;;  %v609_v41 = vsel %vm2632_vm10, %v604_v25, %v608_v57  ;;  %v575_v43 = vor.u32 %v574_v28, %v571_v23  ;;  %v580_v44 = vrot.slane %v578_v31, 5  ;;  %v497_v1 = vld [vmem:[#allocation2 + $0x3c] sm:$0x1]  ;;  %v838_v2 = vld [vmem:[#allocation2 + $0x20] sm:$0xe] }
  0x3a   : > { %v562_v42 = vrot.slane %v561_v24, 4  ;;  %v2177_v50 = vcombine.low %v595_v13, %v609_v41  ;;  %v423_v53 = vrot.slane %v419_v38, 4  ;;  %v425_v36 = vshrl.u32 %v2288_v54, 16  ;;  %v839_v13 = vld [vmem:[#allocation2 + $0x28] sm:$0xe] }
  0x3b   : > { %v422_v52 = vor.u32 %v420_v21, %v419_v38  ;;  %v576_v56 = vrot.slane %v575_v43, 4  ;;  %v428_v58 = vshll.u32 %v2288_v54, 16  ;;  %v864_v57 = vsel %vm2710_vm14, %v2191_v18, %v863_v9  ;;  %v2740_v24 = vld [vmem:[#allocation2 + $0xc] sm:$0x1]  ;;  %v1115_v28 = vld [vmem:[#allocation2 + $0x10] sm:$0xf] }
  0x3c   : > { %v567_v16 = vsel %vm2632_vm10, %v562_v42, %v566_v14  ;;  %2341 = vmatprep.mubr.msk.bf16.mxu1 %vm652_vm11, %v2177_v50  ;;  %v427_v61 = vrot.slane %v425_v36, 7  ;;  %v492_v54 = vsel %vm2517_vm4, %v423_v53, %v491_v32  ;;  %v2192_v30 = vrot.slane %v835_v39, 9  ;;  %v1113_v14 = vld [vmem:[#allocation2 + $0x8] sm:$0xf]  ;;  %v2742_v31 = vld [vmem:[#allocation2 + $0x14] sm:$0x1] }
  0x3d   : > { %v489_v0 = vsel %vm2600_vm9, %v422_v52, %v488_v48  ;;  %v581_v62 = vsel %vm2632_vm10, %v576_v56, %v580_v44  ;;  %493 = vst [vmem:[#allocation2 + $0x34] sm:$0x1] %v492_v54  ;;  %v2193_v9 = vrot.slane %v836_v49, 9  ;;  %v2194_v18 = vrot.slane %v837_v55, 9  ;;  %v244_v52 = vld [vmem:[%s2540_s27 + $0x38] sm:$0xff] }
  0x3e   : > { %490 = vst [vmem:[#allocation2 + $0x30] sm:$0xf] %v489_v0  ;;  %v2176_v3 = vcombine.low %v567_v16, %v581_v62  ;;  %v430_v5 = vor.u32 %v428_v58, %v427_v61  ;;  %v431_v10 = vrot.slane %v427_v61, 4  ;;  %v868_v12 = vsel %vm2710_vm14, %v2192_v30, %v867_v26  ;;  %v2773_v30 = vld [vmem:[%s3076_s3 + $0x18] sm:$0xf] }
  0x3f   : > { %v2200_v23 = vcombine.low %v864_v57, %v868_v12  ;;  %v872_v25 = vsel %vm2710_vm14, %v2193_v9, %v871_v33  ;;  %v876_v26 = vsel %vm2710_vm14, %v2194_v18, %v875_v34  ;;  %v1268_v32 = vsel %vm665_vm0, %v2217_v60, 0  ;;  %v2234_v8 = vld [vmem:[%s3076_s3 + $0x14] sm:$0xf]  ;;  %v1620_v11 = vld [vmem:[#allocation2 + $0x10] sm:$0xf] }
  0x40   : > { %2338 = vmatmul.mubr.msk.bf16.vlgmr.msra.gmra.mxu0 %vm652_vm11, %v2176_v3  ;;  %v495_v48 = vsel %vm2600_vm9, %v430_v5, %v494_v59  ;;  %v498_v20 = vsel %vm2517_vm4, %v431_v10, %v497_v1  ;;  %v2195_v33 = vrot.slane %v838_v2, 9  ;;  %v2196_v38 = vrot.slane %v839_v13, 9  ;;  %v1117_v3 = vld [vmem:[#allocation2 + $0x18] sm:$0xf] }
  0x41   : > { %496 = vst [vmem:[#allocation2 + $0x38] sm:$0xf] %v495_v48  ;;  %499 = vst [vmem:[#allocation2 + $0x3c] sm:$0x1] %v498_v20  ;;  %2356 = vmatpush3.bf16.msra.mxu0 %v2654_v17  ;;  %2357 = vmatprep.mubr.msk.bf16.mxu0 %vm652_vm11, %v2200_v23  ;;  %v1130_v21 = vshrl.u32 %v1113_v14, 16  ;;  %v1133_v39 = vshll.u32 %v1113_v14, 16  ;;  %v2201_v55 = vcombine.low %v872_v25, %v876_v26 }
  0x42   : > { %2432 = vmatprep.subr.msk.bf16.mxu0 %vm665_vm0, %v2217_v60  ;;  %v1139_v41 = vshll.u32 %v2740_v24, 16  ;;  %v1144_v42 = vshrl.u32 %v1115_v28, 16  ;;  %v1147_v43 = vshll.u32 %v1115_v28, 16  ;;  %v1153_v34 = vshll.u32 %v2742_v31, 16  ;;  %v2784_v23 = vld [vmem:[#allocation2 + $0x1c] sm:$0x1] }
  0x43   : > { %v880_v44 = vsel %vm2710_vm14, %v2195_v33, %v879_v7  ;;  %v884_v17 = vsel %vm2710_vm14, %v2196_v38, %v883_v45  ;;  %v1132_v49 = vrot.slane %v1130_v21, 4  ;;  %v1135_v50 = vrot.slane %v1133_v39, 5  ;;  %v1119_v21 = vld [vmem:[#allocation2 + $0x20] sm:$0xf] }
  0x44   : > { %v521_v36 = vld [vmem:[#allocation2 + $0x34] sm:$0x1]  ;;  %v2202_v16 = vcombine.low %v880_v44, %v884_v17  ;;  %v1141_v60 = vrot.slane %v1139_v41, 5  ;;  %v1146_v61 = vrot.slane %v1144_v42, 4  ;;  %v1149_v1 = vrot.slane %v1147_v43, 5 }
  0x45   : > { %v2766_v53 = vld [vmem:[#allocation2 + $0x30] sm:$0xf]  ;;  %v620_v59 = vshll.u32 %v521_v36, 16  ;;  %v887_v57 = vrot.slane %v521_v36, 5  ;;  %v1136_v37 = vor.u32 %v1135_v50, %v1132_v49  ;;  %v2183_v9 = vcombine.low %v2570_v29, %v2657_v19  ;;  %v2794_v43 = vld [vmem:[#allocation2 + $0x24] sm:$0x1] }
  0x46   : > { %v840_v56 = vld [vmem:[#allocation2 + $0x30] sm:$0xe]  ;;  %v611_v58 = vshrl.u32 %v2766_v53, 16  ;;  %v614_v27 = vshll.u32 %v2766_v53, 16  ;;  %v259_v5 = vmul.f32 %v2525_v6, %v244_v52  ;;  %v1150_v41 = vor.u32 %v1149_v1, %v1146_v61  ;;  %v2805_v61 = vld [vmem:[#allocation2 + $0x2c] sm:$0x1] }
  0x47   : > { %v2197_v7 = vrot.slane %v840_v56, 9  ;;  %v622_v54 = vrot.slane %v620_v59, 5  ;;  %v1137_v20 = vrot.slane %v1136_v37, 4  ;;  %v1155_v42 = vrot.slane %v1153_v34, 5  ;;  %v1121_v56 = vld [vmem:[#allocation2 + $0x28] sm:$0xf] }
  0x48   : > { %v613_v45 = vrot.slane %v611_v58, 4  ;;  %v616_v0 = vrot.slane %v614_v27, 5  ;;  %v2775_v2 = vld [vmem:[#allocation2 + $0x38] sm:$0xf]  ;;  %v522_v62 = vld [vmem:[#allocation2 + $0x3c] sm:$0x1]  ;;  %2358 = vmatmul.mubr.msk.bf16.vlgmr.msra.gmra.mxu0 %vm652_vm11, %v2201_v55  ;;  %v2184_v34 = vcombine.low %v2686_v47, %v2688_v51 }
  0x49   : > { %v841_v18 = vld [vmem:[#allocation2 + $0x38] sm:$0xe]  ;;  %v625_v12 = vshrl.u32 %v2775_v2, 16  ;;  %v628_v13 = vshll.u32 %v2775_v2, 16  ;;  %v634_v14 = vshll.u32 %v522_v62, 16  ;;  %2376 = vmatpush3.bf16.msra.mxu0 %v1268_v32  ;;  %2361 = vmatprep.mubr.msk.bf16.mxu0 %vm652_vm11, %v2202_v16  ;;  %v888_v25 = vsel %vm2710_vm14, %v2197_v7, %v887_v57 }
  0x4a   : > { %v617_v10 = vor.u32 %v616_v0, %v613_v45  ;;  %v2198_v28 = vrot.slane %v841_v18, 9  ;;  %v891_v48 = vrot.slane %v522_v62, 5  ;;  %2434 = vmatprep.subr.msk.bf16.mxu0 %vm665_vm0, %v2773_v30  ;;  %v1142_v39 = vsel %vm2632_vm10, %v1137_v20, %v1141_v60  ;;  %v1123_v1 = vld [vmem:[#allocation2 + $0x30] sm:$0xf]  ;;  %v2809_v62 = vld [vmem:[#allocation2 + $0x34] sm:$0x1] }
  0x4b   : > { %v627_v26 = vrot.slane %v625_v12, 4  ;;  %v630_v33 = vrot.slane %v628_v13, 5  ;;  %v636_v38 = vrot.slane %v634_v14, 5  ;;  %v1158_v50 = vshrl.u32 %v1117_v3, 16 }
  0x4c   : > { %v618_v6 = vrot.slane %v617_v10, 4  ;;  %v892_v32 = vsel %vm2710_vm14, %v2198_v28, %v891_v48  ;;  %v1151_v52 = vrot.slane %v1150_v41, 4  ;;  %v1161_v36 = vshll.u32 %v1117_v3, 16  ;;  %v2208_v10 = vld [vmem:[%s3076_s3 + $0xc] sm:$0xf] }
  0x4d   : > { %v631_v17 = vor.u32 %v630_v33, %v627_v26  ;;  %v2203_v49 = vcombine.low %v888_v25, %v892_v32  ;;  %v1167_v55 = vshll.u32 %v2784_v23, 16  ;;  %v1172_v16 = vshrl.u32 %v1119_v21, 16  ;;  %v315_v33 = vld [vmem:[#allocation2 + $0x40] sm:$0x1]  ;;  %v341_v41 = vld [vmem:[#allocation2 + $0x44] sm:$0x1] }
  0x4e   : > { %v623_v44 = vsel %vm2632_vm10, %v618_v6, %v622_v54  ;;  %v1160_v27 = vrot.slane %v1158_v50, 4  ;;  %v1175_v59 = vshll.u32 %v1119_v21, 16  ;;  %v1181_v7 = vshll.u32 %v2794_v43, 16 }
  0x4f   : > { %v632_v58 = vrot.slane %v631_v17, 4  ;;  %v1156_v57 = vsel %vm2632_vm10, %v1151_v52, %v1155_v42  ;;  %v1163_v37 = vrot.slane %v1161_v36, 5  ;;  %v1174_v60 = vrot.slane %v1172_v16, 4 }
  0x50   : > { %2362 = vmatmul.mubr.msk.bf16.gmra.mxu0 %vm652_vm11, %v2203_v49  ;;  %v2218_v0 = vcombine.low %v1142_v39, %v1156_v57  ;;  %v1177_v54 = vrot.slane %v1175_v59, 5  ;;  %v274_v18 = vadd.f32 %v2550_v15, %v259_v5  ;;  %v1169_v13 = vrot.slane %v1167_v55, 5 }
  0x51   : > { %v637_v45 = vsel %vm2632_vm10, %v632_v58, %v636_v38  ;;  %v1164_v12 = vor.u32 %v1163_v37, %v1160_v27  ;;  %v1183_v14 = vrot.slane %v1181_v7, 5  ;;  %v1186_v28 = vshrl.u32 %v1121_v56, 16  ;;  %v2840_v58 = vld [vmem:[%s3076_s3 + $0x20] sm:$0xf]  ;;  %v1125_v7 = vld [vmem:[#allocation2 + $0x38] sm:$0xf] }
  0x52   : > { %v2178_v3 = vcombine.low %v623_v44, %v637_v45  ;;  %2377 = vmatprep.mubr.msk.bf16.mxu0 %vm652_vm11, %v2218_v0  ;;  %v1178_v25 = vor.u32 %v1177_v54, %v1174_v60  ;;  %v1189_v48 = vshll.u32 %v1121_v56, 16  ;;  %v1195_v20 = vshll.u32 %v2805_v61, 16 }
  0x53   : > { %v1165_v6 = vrot.slane %v1164_v12, 4  ;;  %v1200_v26 = vshrl.u32 %v1123_v1, 16  ;;  %v1203_v15 = vshll.u32 %v1123_v1, 16  ;;  %v1209_v5 = vshll.u32 %v2809_v62, 16  ;;  %v1343_v1 = vld [vmem:[#allocation2 + $0x8] sm:$0xe] }
  0x54   : > { %2342 = vmatmul.mubr.msk.bf16.vlgmr.msra.gmra.mxu1 %vm652_vm11, %v2178_v3  ;;  %v1179_v38 = vrot.slane %v1178_v25, 4  ;;  %v1545_v21 = vsel %vm665_vm0, %v2773_v30, 0  ;;  %v1188_v32 = vrot.slane %v1186_v28, 4  ;;  %v1191_v39 = vrot.slane %v1189_v48, 5  ;;  %v2449_v12 = vld [vmem:[#allocation2 + $0x8] ss:$8 sps:$4 sm:$0xff]  }
  0x55   : > { %2346 = vmatpush3.bf16.msra.mxu1 %v2584_v46  ;;  %2347 = vmatprep.mubr.msk.bf16.mxu1 %vm652_vm11, %v2183_v9  ;;  %v1170_v42 = vsel %vm2632_vm10, %v1165_v6, %v1169_v13  ;;  %v1197_v44 = vrot.slane %v1195_v20, 5  ;;  %v1202_v17 = vrot.slane %v1200_v26, 4  ;;  %v1205_v46 = vrot.slane %v1203_v15, 5  ;;  %v2866_v25 = vld [vmem:[#allocation2 + $0x3c] sm:$0x1] }
  0x56   : > { %2431 = vmatprep.subr.msk.bf16.mxu1 %vm665_vm0, %v2208_v10  ;;  %v1184_v29 = vsel %vm2632_vm10, %v1179_v38, %v1183_v14  ;;  %v1192_v19 = vor.u32 %v1191_v39, %v1188_v32  ;;  %v282_v9 = vmax.f32 %v274_v18, 0.0  ;;  %v316_v49 = vsel %vm2517_vm4, 0, %v315_v33  ;;  %v1344_v18 = vld [vmem:[#allocation2 + $0x10] sm:$0xe]  ;;  %v1346_v15 = vld [vmem:[#allocation2 + $0x20] sm:$0xe] }
  0x57   : > { %v2219_v30 = vcombine.low %v1170_v42, %v1184_v29  ;;  %v1206_v50 = vor.u32 %v1205_v46, %v1202_v17  ;;  %v1211_v52 = vrot.slane %v1209_v5, 5  ;;  %317 = vst [vmem:[#allocation2 + $0x40] sm:$0x1] %v316_v49  ;;  %v342_v36 = vsel %vm2531_vm6, 0, %v341_v41  ;;  %v2450_v32 = vld [vmem:[#allocation2 + $0x18] ss:$8 sps:$4 sm:$0xff]  }
  0x58   : > { %v2185_v55 = vcombine.low %v2665_v22, %v2677_v35  ;;  %v1193_v16 = vrot.slane %v1192_v19, 4  ;;  %v2289_v56 = vpack.c.bf16 %v282_v9, %v282_v9  ;;  %343 = vst [vmem:[#allocation2 + $0x44] sm:$0x1] %v342_v36  ;;  %v1038_v27 = vsel %vm665_vm0, %v2208_v10, 0  ;;  %v2451_v42 = vld [vmem:[#allocation2 + $0x28] ss:$8 sps:$4 sm:$0xff]  }
  0x59   : > { %2378 = vmatmul.mubr.msk.bf16.vlgmr.msra.gmra.mxu0 %vm652_vm11, %v2219_v30  ;;  %v1207_v59 = vrot.slane %v1206_v50, 4  ;;  %v1214_v0 = vshrl.u32 %v1125_v7, 16  ;;  %v1217_v54 = vshll.u32 %v1125_v7, 16  ;;  %v2186_v3 = vcombine.low %v2766_v53, %v2775_v2  ;;  %v1345_v2 = vld [vmem:[#allocation2 + $0x18] sm:$0xe] }
  0x5a   : > { %2396 = vmatpush3.bf16.msra.mxu0 %v1545_v21  ;;  %v1198_v22 = vsel %vm2632_vm10, %v1193_v16, %v1197_v44  ;;  %v433_v35 = vshrl.u32 %v2289_v56, 16  ;;  %v436_v57 = vshll.u32 %v2289_v56, 16  ;;  %v2226_v20 = vrot.slane %v1343_v1, 9  ;;  %v1622_v21 = vld [vmem:[#allocation2 + $0x18] sm:$0xf] }
  0x5b   : > { %v1212_v37 = vsel %vm2632_vm10, %v1207_v59, %v1211_v52  ;;  %2436 = vmatprep.subr.msk.bf16.mxu0 %vm665_vm0, %v2840_v58  ;;  %v1216_v28 = vrot.slane %v1214_v0, 4  ;;  %v1219_v48 = vrot.slane %v1217_v54, 5  ;;  %v1369_v6 = vrot.slane %v2740_v24, 5  ;;  %v1347_v44 = vld [vmem:[#allocation2 + $0x28] sm:$0xe] }
  0x5c   : > { %2348 = vmatmul.mubr.msk.bf16.vlgmr.msra.gmra.mxu1 %vm652_vm11, %v2184_v34  ;;  %v2220_v60 = vcombine.low %v1198_v22, %v1212_v37  ;;  %v435_v45 = vrot.slane %v433_v35, 7  ;;  %v2227_v26 = vrot.slane %v1344_v18, 9  ;;  %v1373_v53 = vrot.slane %v2742_v31, 5  ;;  %v2889_v36 = vld [vmem:[%s3076_s3 + $0x1c] sm:$0xf] }
  0x5d   : > { %2366 = vmatpush3.bf16.msra.mxu1 %v1038_v27  ;;  %2351 = vmatprep.mubr.msk.bf16.mxu1 %vm652_vm11, %v2185_v55  ;;  %v1220_v4 = vor.u32 %v1219_v48, %v1216_v28  ;;  %v1223_v5 = vshll.u32 %v2866_v25, 16  ;;  %v2228_v33 = vrot.slane %v1345_v2, 9  ;;  %v1377_v38 = vrot.slane %v2784_v23, 5  ;;  %v1348_v23 = vld [vmem:[#allocation2 + $0x30] sm:$0xe] }
  0x5e   : > { %2433 = vmatprep.subr.msk.bf16.mxu1 %vm665_vm0, %v2234_v8  ;;  %2381 = vmatprep.mubr.msk.bf16.mxu0 %vm652_vm11, %v2220_v60  ;;  %v438_v47 = vor.u32 %v436_v57, %v435_v45  ;;  %v439_v51 = vrot.slane %v435_v45, 4  ;;  %v500_v34 = vld [vmem:[#allocation2 + $0x40] sm:$0xf]  ;;  %v2876_v24 = vsel %vm2710_vm14, %v2226_v20, %v1369_v6  ;;  %v2880_v31 = vsel %vm2710_vm14, %v2227_v26, %v1373_v53  ;;  %v1349_v55 = vld [vmem:[#allocation2 + $0x38] sm:$0xe] }
  0x5f   : > { %v503_v10 = vld [vmem:[#allocation2 + $0x44] sm:$0x1]  ;;  %v2229_v39 = vrot.slane %v1346_v15, 9  ;;  %v1381_v41 = vrot.slane %v2794_v43, 5  ;;  %v1637_v17 = vshrl.u32 %v1620_v11, 16  ;;  %v1640_v46 = vshll.u32 %v1620_v11, 16 }
  0x60   : > { %v501_v13 = vsel %vm2600_vm9, %v438_v47, %v500_v34  ;;  %v504_v14 = vsel %vm2517_vm4, %v439_v51, %v503_v10  ;;  %v1426_v29 = vsel %vm665_vm0, %v2234_v8, 0  ;;  %v1651_v19 = vshrl.u32 %v1622_v21, 16  ;;  %v1621_v8 = vld [vmem:[#allocation2 + $0x14] sm:$0x1]  ;;  %v1623_v22 = vld [vmem:[#allocation2 + $0x1c] sm:$0x1] }
  0x61   : > { %502 = vst [vmem:[#allocation2 + $0x40] sm:$0xf] %v501_v13  ;;  %505 = vst [vmem:[#allocation2 + $0x44] sm:$0x1] %v504_v14  ;;  %v1654_v9 = vshll.u32 %v1622_v21, 16  ;;  %v1221_v30 = vrot.slane %v1220_v4, 4  ;;  %v2235_v52 = vcombine.low %v2876_v24, %v2880_v31  ;;  %v2893_v43 = vsel %vm2710_vm14, %v2228_v33, %v1377_v38 }
  0x62   : > { %v1225_v50 = vrot.slane %v1223_v5, 5  ;;  %v2899_v59 = vsel %vm2710_vm14, %v2229_v39, %v1381_v41  ;;  %v2230_v7 = vrot.slane %v1347_v44, 9  ;;  %v1385_v57 = vrot.slane %v2805_v61, 5  ;;  %v1850_v47 = vld [vmem:[#allocation2 + $0x10] sm:$0xe] }
  0x63   : > { %v1639_v37 = vrot.slane %v1637_v17, 4  ;;  %v1642_v60 = vrot.slane %v1640_v46, 5  ;;  %v1653_v54 = vrot.slane %v1651_v19, 4  ;;  %v1656_v1 = vrot.slane %v1654_v9, 5  ;;  %v1624_v53 = vld [vmem:[#allocation2 + $0x20] sm:$0xf] }
  0x64   : > { %2352 = vmatmul.mubr.msk.bf16.gmra.mxu1 %vm652_vm11, %v2186_v3  ;;  %v1226_v51 = vsel %vm2632_vm10, %v1221_v30, %v1225_v50  ;;  %v2236_v34 = vcombine.low %v2893_v43, %v2899_v59  ;;  %v2231_v18 = vrot.slane %v1348_v23, 9  ;;  %v1389_v61 = vrot.slane %v2809_v62, 5  ;;  %v1851_v3 = vld [vmem:[#allocation2 + $0x18] sm:$0xe]  ;;  %v1626_v5 = vld [vmem:[#allocation2 + $0x28] sm:$0xf] }
  0x65   : > { %2367 = vmatprep.mubr.msk.bf16.mxu1 %vm652_vm11, %v2449_v12  ;;  %v2232_v14 = vrot.slane %v1349_v55, 9  ;;  %v1393_v28 = vrot.slane %v2866_v25, 5  ;;  %v2915_v48 = vsel %vm2710_vm14, %v2230_v7, %v1385_v57  ;;  %v1646_v20 = vshll.u32 %v1621_v8, 16  ;;  %v2453_v39 = vld [vmem:[#allocation2 + $0x10] ss:$8 sps:$4 sm:$0xff]  }
  0x66   : > { %v1660_v6 = vshll.u32 %v1623_v22, 16  ;;  %v2261_v26 = vrot.slane %v1850_v47, 9  ;;  %v1643_v15 = vor.u32 %v1642_v60, %v1639_v37  ;;  %v1657_v11 = vor.u32 %v1656_v1, %v1653_v54  ;;  %v1628_v17 = vld [vmem:[#allocation2 + $0x30] sm:$0xf]  ;;  %v1630_v9 = vld [vmem:[#allocation2 + $0x38] sm:$0xf] }
  0x67   : > { %v1876_v4 = vrot.slane %v1621_v8, 5  ;;  %v2262_v21 = vrot.slane %v1851_v3, 9  ;;  %v2922_v41 = vsel %vm2710_vm14, %v2231_v18, %v1389_v61  ;;  %v1665_v44 = vshrl.u32 %v1624_v53, 16  ;;  %v2946_v7 = vld [vmem:[#allocation2 + $0x24] sm:$0x1] }
  0x68   : > { %v1127_v49 = vld [vmem:[#allocation2 + $0x40] sm:$0xf]  ;;  %v2895_v16 = vld [vmem:[#allocation2 + $0x44] sm:$0x1]  ;;  %v1679_v23 = vshrl.u32 %v1626_v5, 16  ;;  %v1682_v19 = vshll.u32 %v1626_v5, 16  ;;  %v2237_v3 = vcombine.low %v2915_v48, %v2922_v41 }
  0x69   : > { %v1228_v56 = vshrl.u32 %v1127_v49, 16  ;;  %v1231_v27 = vshll.u32 %v1127_v49, 16  ;;  %v1237_v35 = vshll.u32 %v2895_v16, 16  ;;  %v1350_v13 = vld [vmem:[#allocation2 + $0x40] sm:$0xe]  ;;  %v1397_v38 = vrot.slane %v2895_v16, 5 }
  0x6a   : > { %v2452_v2 = vld [vmem:[#allocation2 + $0x38] ss:$8 sps:$4 sm:$0xff]   ;;  %v2233_v33 = vrot.slane %v1350_v13, 9  ;;  %v1644_v49 = vrot.slane %v1643_v15, 4  ;;  %v1648_v30 = vrot.slane %v1646_v20, 5  ;;  %v1658_v50 = vrot.slane %v1657_v11, 4 }
  0x6b   : > { %v1230_v45 = vrot.slane %v1228_v56, 4  ;;  %v1233_v0 = vrot.slane %v1231_v27, 5  ;;  %v1239_v12 = vrot.slane %v1237_v35, 5  ;;  %v1662_v55 = vrot.slane %v1660_v6, 5  ;;  %v2948_v8 = vld [vmem:[#allocation2 + $0x2c] sm:$0x1] }
  0x6c   : > { %2368 = vmatmul.mubr.msk.bf16.vlgmr.msra.gmra.mxu1 %vm652_vm11, %v2450_v32  ;;  %v1880_v32 = vrot.slane %v1623_v22, 5  ;;  %v2936_v16 = vsel %vm2710_vm14, %v2233_v33, %v1397_v38  ;;  %v2940_v56 = vsel %vm2710_vm14, %v2261_v26, %v1876_v4  ;;  %v1693_v24 = vshrl.u32 %v1628_v17, 16  ;;  %v1629_v13 = vld [vmem:[#allocation2 + $0x34] sm:$0x1]  ;;  %v1632_v26 = vld [vmem:[#allocation2 + $0x40] sm:$0xf] }
  0x6d   : > { %2386 = vmatpush3.bf16.msra.mxu1 %v1426_v29  ;;  %2371 = vmatprep.mubr.msk.bf16.mxu1 %vm652_vm11, %v2451_v42  ;;  %v1234_v10 = vor.u32 %v1233_v0, %v1230_v45  ;;  %v2926_v42 = vsel %vm2710_vm14, %v2232_v14, %v1393_v28  ;;  %v1668_v29 = vshll.u32 %v1624_v53, 16  ;;  %v1696_v31 = vshll.u32 %v1628_v17, 16  ;;  %v2454_v45 = vld [vmem:[#allocation2 + $0x20] ss:$8 sps:$4 sm:$0xff]   ;;  %v2455_v53 = vld [vmem:[#allocation2 + $0x30] ss:$8 sps:$4 sm:$0xff]  }
  0x6e   : > { %2435 = vmatprep.subr.msk.bf16.mxu1 %vm665_vm0, %v2889_v36  ;;  %v2944_v27 = vsel %vm2710_vm14, %v2262_v21, %v1880_v32  ;;  %v1710_v22 = vshll.u32 %v1630_v9, 16  ;;  %v1667_v35 = vrot.slane %v1665_v44, 4  ;;  %v1681_v37 = vrot.slane %v1679_v23, 4  ;;  %v1853_v15 = vld [vmem:[#allocation2 + $0x28] sm:$0xe] }
  0x6f   : > { %v1235_v62 = vrot.slane %v1234_v10, 4  ;;  %v1670_v57 = vrot.slane %v1668_v29, 5  ;;  %v1684_v60 = vrot.slane %v1682_v19, 5  ;;  %v1649_v0 = vsel %vm2632_vm10, %v1644_v49, %v1648_v30  ;;  %v1631_v11 = vld [vmem:[#allocation2 + $0x3c] sm:$0x1] }
  0x70   : > { %v1663_v54 = vsel %vm2632_vm10, %v1658_v50, %v1662_v55  ;;  %v1674_v1 = vshll.u32 %v2946_v7, 16  ;;  %v1688_v47 = vshll.u32 %v2948_v8, 16  ;;  %v1775_v18 = vsel %vm665_vm0, %v2889_v36, 0  ;;  %v1854_v38 = vld [vmem:[#allocation2 + $0x30] sm:$0xe] }
  0x71   : > { %v1240_v25 = vsel %vm2632_vm10, %v1235_v62, %v1239_v12  ;;  %v1933_v61 = vsel %vm665_vm0, %v2840_v58, 0  ;;  %v2270_v10 = vcombine.low %v2940_v56, %v2944_v27  ;;  %v1852_v12 = vld [vmem:[#allocation2 + $0x20] sm:$0xe]  ;;  %v1695_v14 = vrot.slane %v1693_v24, 4  ;;  %v1855_v32 = vld [vmem:[#allocation2 + $0x38] sm:$0xe] }
  0x72   : > { %v2221_v46 = vcombine.low %v1226_v51, %v1240_v25  ;;  %v1634_v51 = vld [vmem:[#allocation2 + $0x48] sm:$0xf]  ;;  %v1698_v28 = vrot.slane %v1696_v31, 5  ;;  %v1712_v6 = vrot.slane %v1710_v22, 5  ;;  %v2238_v36 = vcombine.low %v2926_v42, %v2936_v16  ;;  %v1633_v50 = vld [vmem:[#allocation2 + $0x44] sm:$0x1] }
  0x73   : > { %v1671_v62 = vor.u32 %v1670_v57, %v1667_v35  ;;  %v1685_v58 = vor.u32 %v1684_v60, %v1681_v37  ;;  %v1676_v48 = vrot.slane %v1674_v1, 5  ;;  %v1690_v4 = vrot.slane %v1688_v47, 5  ;;  %v2456_v23 = vld [vmem:[#allocation2 + $0x40] ss:$8 sps:$4 sm:$0xff]   ;;  %v1635_v57 = vld [vmem:[#allocation2 + $0x4c] sm:$0x1] }
  0x74   : > { %2372 = vmatmul.mubr.msk.bf16.gmra.mxu1 %vm652_vm11, %v2452_v2  ;;  %2382 = vmatmul.mubr.msk.bf16.gmra.mxu0 %vm652_vm11, %v2221_v46  ;;  %v2253_v2 = vcombine.low %v1649_v0, %v1663_v54  ;;  %v2263_v5 = vrot.slane %v1852_v12, 9  ;;  %v1884_v33 = vrot.slane %v2946_v7, 5  ;;  %v1702_v21 = vshll.u32 %v1629_v13, 16  ;;  %v1856_v12 = vld [vmem:[#allocation2 + $0x40] sm:$0xe] }
  0x75   : > { %2387 = vmatprep.mubr.msk.bf16.mxu1 %vm652_vm11, %v2235_v52  ;;  %2397 = vmatprep.mubr.msk.bf16.mxu0 %vm652_vm11, %v2453_v39  ;;  %v1707_v52 = vshrl.u32 %v1630_v9, 16  ;;  %v1721_v25 = vshrl.u32 %v1632_v26, 16  ;;  %v1724_v39 = vshll.u32 %v1632_v26, 16  ;;  %v1735_v41 = vshrl.u32 %v1634_v51, 16 }
  0x76   : > { %v1699_v43 = vor.u32 %v1698_v28, %v1695_v14  ;;  %v1738_v42 = vshll.u32 %v1634_v51, 16  ;;  %v1672_v44 = vrot.slane %v1671_v62, 4  ;;  %v1686_v17 = vrot.slane %v1685_v58, 4 }
  0x77   : > { %v1709_v20 = vrot.slane %v1707_v52, 4  ;;  %v2264_v46 = vrot.slane %v1853_v15, 9  ;;  %v1888_v29 = vrot.slane %v2948_v8, 5  ;;  %v2265_v19 = vrot.slane %v1854_v38, 9 }
  0x78   : > { %v1892_v9 = vrot.slane %v1629_v13, 5  ;;  %v2266_v49 = vrot.slane %v1855_v32, 9  ;;  %v1896_v30 = vrot.slane %v1631_v11, 5  ;;  %v1723_v55 = vrot.slane %v1721_v25, 4  ;;  %v1857_v13 = vld [vmem:[#allocation2 + $0x48] sm:$0xe] }
  0x79   : > { %v1713_v59 = vor.u32 %v1712_v6, %v1709_v20  ;;  %v1726_v16 = vrot.slane %v1724_v39, 5  ;;  %v1737_v7 = vrot.slane %v1735_v41, 4  ;;  %v1740_v24 = vrot.slane %v1738_v42, 5 }
  0x7a   : > { %v1700_v31 = vrot.slane %v1699_v43, 4  ;;  %v1704_v52 = vrot.slane %v1702_v21, 5  ;;  %v1885_v37 = vsel %vm2710_vm14, %v2263_v5, %v1884_v33  ;;  %v1889_v8 = vsel %vm2710_vm14, %v2264_v46, %v1888_v29 }
  0x7b   : > { %v1714_v22 = vrot.slane %v1713_v59, 4  ;;  %v1677_v60 = vsel %vm2632_vm10, %v1672_v44, %v1676_v48  ;;  %v1893_v0 = vsel %vm2710_vm14, %v2265_v19, %v1892_v9  ;;  %v1730_v54 = vshll.u32 %v1633_v50, 16 }
  0x7c   : > { %2388 = vmatmul.mubr.msk.bf16.vlgmr.msra.gmra.mxu1 %vm652_vm11, %v2236_v34  ;;  %2398 = vmatmul.mubr.msk.bf16.vlgmr.msra.gmra.mxu0 %vm652_vm11, %v2454_v45  ;;  %v1716_v34 = vshll.u32 %v1631_v11, 16  ;;  %v1691_v45 = vsel %vm2632_vm10, %v1686_v17, %v1690_v4  ;;  %v1897_v1 = vsel %vm2710_vm14, %v2266_v49, %v1896_v30  ;;  %v1727_v47 = vor.u32 %v1726_v16, %v1723_v55 }
  0x7d   : > { %2406 = vmatpush3.bf16.msra.mxu1 %v1775_v18  ;;  %2416 = vmatpush3.bf16.msra.mxu0 %v1933_v61  ;;  %v1741_v51 = vor.u32 %v1740_v24, %v1737_v7  ;;  %v1744_v18 = vshll.u32 %v1635_v57, 16  ;;  %v1705_v61 = vsel %vm2632_vm10, %v1700_v31, %v1704_v52  ;;  %v2254_v14 = vcombine.low %v1677_v60, %v1691_v45 }
  0x7e   : > { %2391 = vmatprep.mubr.msk.bf16.mxu1 %vm652_vm11, %v2237_v3  ;;  %2401 = vmatprep.mubr.msk.bf16.mxu0 %vm652_vm11, %v2455_v53  ;;  %v1718_v35 = vrot.slane %v1716_v34, 5  ;;  %v2271_v28 = vcombine.low %v1885_v37, %v1889_v8  ;;  %v2272_v20 = vcombine.low %v1893_v0, %v1897_v1  ;;  %v1732_v6 = vrot.slane %v1730_v54, 5 }
  0x7f   : > { %v1728_v53 = vrot.slane %v1727_v47, 4  ;;  %v2267_v62 = vrot.slane %v1856_v12, 9  ;;  %v1900_v56 = vrot.slane %v1633_v50, 5  ;;  %v2268_v27 = vrot.slane %v1857_v13, 9 }
  0x80   : > { %v1719_v3 = vsel %vm2632_vm10, %v1714_v22, %v1718_v35 }
  0x81   : > { %v2255_v26 = vcombine.low %v1705_v61, %v1719_v3  ;;  %v1733_v58 = vsel %vm2632_vm10, %v1728_v53, %v1732_v6  ;;  %v1901_v11 = vsel %vm2710_vm14, %v2267_v62, %v1900_v56 }
  0x84   : > { %2392 = vmatmul.mubr.msk.bf16.gmra.mxu1 %vm652_vm11, %v2238_v36  ;;  %2402 = vmatmul.mubr.msk.bf16.gmra.mxu0 %vm652_vm11, %v2456_v23  ;;  %v1742_v36 = vrot.slane %v1741_v51, 4 }
  0x85   : > { %2407 = vmatprep.mubr.msk.bf16.mxu1 %vm652_vm11, %v2253_v2  ;;  %2417 = vmatprep.mubr.msk.bf16.mxu0 %vm652_vm11, %v2270_v10  ;;  %v1746_v2 = vrot.slane %v1744_v18, 5  ;;  %v1904_v10 = vrot.slane %v1635_v57, 5 }
  0x87   : > { %v1747_v15 = vsel %vm2632_vm10, %v1742_v36, %v1746_v2  ;;  %v1905_v48 = vsel %vm2710_vm14, %v2268_v27, %v1904_v10 }
  0x88   : > { %v2256_v4 = vcombine.low %v1733_v58, %v1747_v15  ;;  %v2273_v5 = vcombine.low %v1901_v11, %v1905_v48 }
  0x8c   : > { %2408 = vmatmul.mubr.msk.bf16.vlgmr.msra.gmra.mxu1 %vm652_vm11, %v2254_v14  ;;  %2418 = vmatmul.mubr.msk.bf16.vlgmr.msra.gmra.mxu0 %vm652_vm11, %v2271_v28 }
  0x8d   : > { %2411 = vmatprep.mubr.msk.bf16.mxu1 %vm652_vm11, %v2255_v26  ;;  %2421 = vmatprep.mubr.msk.bf16.mxu0 %vm652_vm11, %v2272_v20 }
  0x94   : > { %2412 = vmatmul.mubr.msk.bf16.gmra.mxu1 %vm652_vm11, %v2256_v4  ;;  %2422 = vmatmul.mubr.msk.bf16.gmra.mxu0 %vm652_vm11, %v2273_v5 }
 0x100   : > { %v2339_v33 = vpop.f32.mrf.mxu0 }
 0x102   : > { %v703_v38 = vpop.f32.mrf.mxu0 }
 0x104   : > { %v2340_v21 = vpop.f32.mrf.mxu0 }
 0x106   : > { %v706_v32 = vpop.f32.mrf.mxu0 }
 0x108   : > { %v2359_v63 = vpop.f32.mrf.mxu0 }
 0x10a   : > { %v956_v25 = vpop.f32.mrf.mxu0 }
 0x10c   : > { %v2360_v39 = vpop.f32.mrf.mxu0 }
 0x10e   : > { %v959_v41 = vpop.f32.mrf.mxu0 }
 0x110   : > { %v2363_v59 = vpop.f32.mrf.mxu0 }
 0x112   : > { %v972_v40 = vpop.f32.mrf.mxu0 }
 0x114   : > { %v2343_v43 = vpop.f32.mrf.mxu1  ;;  %v3013_v46 = vpop.f32.mrf.mxu0 }
 0x116   : > { %v719_v34 = vpop.f32.mrf.mxu1  ;;  %v3015_v19 = vpop.f32.mrf.mxu0 }
 0x118   : > { %v2344_v42 = vpop.f32.mrf.mxu1 }
 0x119   : > { %v2379_v30 = vpop.f32.mrf.mxu0 }
 0x11a   : > { %v722_v44 = vpop.f32.mrf.mxu1 }
 0x11b   : > { %v1304_v16 = vpop.f32.mrf.mxu0 }
 0x11c   : > { %v2349_v17 = vpop.f32.mrf.mxu1 }
 0x11d   : > { %v2380_v31 = vpop.f32.mrf.mxu0  ;;  %v812_v47 = vadd.f32 %v2349_v17, %v2339_v33 }
 0x11e   : > { %v803_v29 = vpop.f32.mrf.mxu1 }
 0x11f   : > { %v1307_v35 = vpop.f32.mrf.mxu0  ;;  %v804_v61 = vadd.f32 %v803_v29, %v703_v38  ;;  %v989_v13 = vadd.f32 %v2359_v63, %v812_v47 }
 0x120   : > { %v2350_v23 = vpop.f32.mrf.mxu1 }
 0x121   : > { %v815_v14 = vadd.f32 %v2350_v23, %v2340_v21  ;;  %v987_v6 = vadd.f32 %v956_v25, %v804_v61 }
 0x122   : > { %v806_v9 = vpop.f32.mrf.mxu1 }
 0x123   : > { %v807_v36 = vadd.f32 %v806_v9, %v706_v32  ;;  %v990_v62 = vadd.f32 %v2360_v39, %v815_v14 }
 0x124   : > { %v2353_v49 = vpop.f32.mrf.mxu1 }
 0x125   : > { %v828_v56 = vadd.f32 %v2353_v49, %v2343_v43  ;;  %v988_v5 = vadd.f32 %v959_v41, %v807_v36 }
 0x126   : > { %v819_v50 = vpop.f32.mrf.mxu1 }
 0x127   : > { %v820_v58 = vadd.f32 %v819_v50, %v719_v34  ;;  %v993_v38 = vadd.f32 %v2363_v59, %v828_v56 }
 0x128   : > { %v2354_v55 = vpop.f32.mrf.mxu1 }
 0x129   : > { %v991_v25 = vadd.f32 %v972_v40, %v820_v58  ;;  %v831_v29 = vadd.f32 %v2354_v55, %v2344_v42 }
 0x12a   : > { %v822_v7 = vpop.f32.mrf.mxu1 }
 0x12b   : > { %v823_v23 = vadd.f32 %v822_v7, %v722_v44  ;;  %v994_v59 = vadd.f32 %v3013_v46, %v831_v29 }
 0x12c   : > { %v2369_v24 = vpop.f32.mrf.mxu1 }
 0x12d   : > { %v1107_v26 = vadd.f32 %v2369_v24, %v989_v13 }
 0x12e   : > { %v1074_v52 = vpop.f32.mrf.mxu1 }
 0x12f   : > { %v1105_v27 = vadd.f32 %v1074_v52, %v987_v6  ;;  %v1337_v11 = vadd.f32 %v2379_v30, %v1107_v26 }
 0x130   : > { %v2370_v22 = vpop.f32.mrf.mxu1 }
 0x131   : > { %v1108_v48 = vadd.f32 %v2370_v22, %v990_v62  ;;  %v1335_v21 = vadd.f32 %v1304_v16, %v1105_v27  ;;  %v992_v16 = vadd.f32 %v3015_v19, %v823_v23 }
 0x132   : > { %v1077_v57 = vpop.f32.mrf.mxu1 }
 0x133   : > { %v1106_v32 = vadd.f32 %v1077_v57, %v988_v5  ;;  %v1338_v39 = vadd.f32 %v2380_v31, %v1108_v48 }
 0x134   : > { %v2373_v37 = vpop.f32.mrf.mxu1  ;;  %v2383_v8 = vpop.f32.mrf.mxu0 }
 0x135   : > { %v1111_v43 = vadd.f32 %v2373_v37, %v993_v38  ;;  %v1336_v22 = vadd.f32 %v1307_v35, %v1106_v32 }
 0x136   : > { %v1090_v60 = vpop.f32.mrf.mxu1  ;;  %v1320_v45 = vpop.f32.mrf.mxu0 }
 0x137   : > { %v1109_v34 = vadd.f32 %v1090_v60, %v991_v25  ;;  %v1341_v42 = vadd.f32 %v2383_v8, %v1111_v43 }
 0x138   : > { %v2374_v0 = vpop.f32.mrf.mxu1  ;;  %v3017_v54 = vpop.f32.mrf.mxu0 }
 0x139   : > { %v1339_v31 = vadd.f32 %v1320_v45, %v1109_v34  ;;  %v1112_v57 = vadd.f32 %v2374_v0, %v994_v59 }
 0x13a   : > { %v1093_v1 = vpop.f32.mrf.mxu1  ;;  %v3019_v51 = vpop.f32.mrf.mxu0 }
 0x13b   : > { %v1110_v37 = vadd.f32 %v1093_v1, %v992_v16 }
 0x13c   : > { %v2389_v18 = vpop.f32.mrf.mxu1  ;;  %v2399_v3 = vpop.f32.mrf.mxu0 }
 0x13d   : > { %v1495_v63 = vadd.f32 %v2389_v18, %v1337_v11 }
 0x13e   : > { %v1462_v12 = vpop.f32.mrf.mxu1  ;;  %v1581_v28 = vpop.f32.mrf.mxu0 }
 0x13f   : > { %v1493_v49 = vadd.f32 %v1462_v12, %v1335_v21  ;;  %v1614_v30 = vadd.f32 %v2399_v3, %v1495_v63  ;;  %v1342_v12 = vadd.f32 %v3017_v54, %v1112_v57 }
 0x140   : > { %v2390_v20 = vpop.f32.mrf.mxu1  ;;  %v2400_v53 = vpop.f32.mrf.mxu0 }
 0x141   : > { %v1496_v52 = vadd.f32 %v2390_v20, %v1338_v39  ;;  %v1612_v44 = vadd.f32 %v1581_v28, %v1493_v49  ;;  %v1340_v28 = vadd.f32 %v3019_v51, %v1110_v37 }
 0x142   : > { %v1465_v2 = vpop.f32.mrf.mxu1  ;;  %v1584_v10 = vpop.f32.mrf.mxu0 }
 0x143   : > { %v1494_v47 = vadd.f32 %v1465_v2, %v1336_v22  ;;  %v1615_v60 = vadd.f32 %v2400_v53, %v1496_v52 }
 0x144   : > { %v2393_v15 = vpop.f32.mrf.mxu1  ;;  %v2403_v4 = vpop.f32.mrf.mxu0 }
 0x145   : > { %v1499_v19 = vadd.f32 %v2393_v15, %v1341_v42  ;;  %v1613_v13 = vadd.f32 %v1584_v10, %v1494_v47 }
 0x146   : > { %v1478_v33 = vpop.f32.mrf.mxu1  ;;  %v1597_v17 = vpop.f32.mrf.mxu0 }
 0x147   : > { %v1497_v3 = vadd.f32 %v1478_v33, %v1339_v31  ;;  %v1618_v20 = vadd.f32 %v2403_v4, %v1499_v19 }
 0x148   : > { %v2394_v9 = vpop.f32.mrf.mxu1  ;;  %v2404_v24 = vpop.f32.mrf.mxu0 }
 0x149   : > { %v1500_v53 = vadd.f32 %v2394_v9, %v1342_v12  ;;  %v1616_v62 = vadd.f32 %v1597_v17, %v1497_v3 }
 0x14a   : > { %v1481_v50 = vpop.f32.mrf.mxu1  ;;  %v1600_v41 = vpop.f32.mrf.mxu0 }
 0x14b   : > { %v1498_v56 = vadd.f32 %v1481_v50, %v1340_v28  ;;  %v1619_v5 = vadd.f32 %v2404_v24, %v1500_v53 }
 0x14c   : > { %v2409_v40 = vpop.f32.mrf.mxu1  ;;  %v2419_v7 = vpop.f32.mrf.mxu0 }
 0x14d   : > { %v1844_v55 = vadd.f32 %v2409_v40, %v1614_v30  ;;  %v1617_v17 = vadd.f32 %v1600_v41, %v1498_v56 }
 0x14e   : > { %v1811_v46 = vpop.f32.mrf.mxu1  ;;  %v1969_v18 = vpop.f32.mrf.mxu0 }
 0x14f   : > { %v2002_v35 = vadd.f32 %v2419_v7, %v1844_v55  ;;  %v1842_v8 = vadd.f32 %v1811_v46, %v1612_v44 }
 0x150   : > { %v2410_v61 = vpop.f32.mrf.mxu1  ;;  %v2420_v1 = vpop.f32.mrf.mxu0 }
 0x151   : > { %2010 = vst.msk [vmem:[%s3028_s26 + $0x10] sm:$0xff] %vm652_vm11, %v2002_v35  ;;  %v2000_v45 = vadd.f32 %v1969_v18, %v1842_v8  ;;  %v1845_v0 = vadd.f32 %v2410_v61, %v1615_v60  ;;  %v2040_v51 = vmul.f32 %v2002_v35, %v2002_v35  ;;  %v2019_v25 = vsel %vm652_vm11, %v2002_v35, 0.0 }
 0x152   : > { %v1814_v14 = vpop.f32.mrf.mxu1  ;;  %v1972_v26 = vpop.f32.mrf.mxu0 }
 0x153   : > { %2008 = vst.msk [vmem:[%s3028_s26] sm:$0xff] %vm652_vm11, %v2000_v45  ;;  %v2003_v6 = vadd.f32 %v2420_v1, %v1845_v0  ;;  %v1843_v36 = vadd.f32 %v1814_v14, %v1613_v13  ;;  %v2038_v54 = vmul.f32 %v2000_v45, %v2000_v45  ;;  %v2016_v33 = vsel %vm652_vm11, %v2000_v45, 0.0 }
 0x154   : > { %v2413_v2 = vpop.f32.mrf.mxu1  ;;  %v2423_v58 = vpop.f32.mrf.mxu0  ;;  %v2049_v34 = vsel %vm652_vm11, %v2040_v51, 0.0 }
 0x155   : > { %2011 = vst.msk [vmem:[%s3028_s26 + $0x18] sm:$0xff] %vm652_vm11, %v2003_v6  ;;  %v1848_v27 = vadd.f32 %v2413_v2, %v1618_v20  ;;  %v2001_v10 = vadd.f32 %v1972_v26, %v1843_v36  ;;  %v2046_v9 = vsel %vm652_vm11, %v2038_v54, 0.0  ;;  %v2041_v39 = vmul.f32 %v2003_v6, %v2003_v6 }
 0x156   : > { %v1827_v15 = vpop.f32.mrf.mxu1  ;;  %v1985_v4 = vpop.f32.mrf.mxu0  ;;  %v2021_v52 = vsel %vm652_vm11, %v2003_v6, 0.0 }
 0x157   : > { %v2006_v11 = vadd.f32 %v2423_v58, %v1848_v27  ;;  %v1846_v48 = vadd.f32 %v1827_v15, %v1616_v62  ;;  %2009 = vst.msk [vmem:[%s3028_s26 + $0x8] sm:$0xff] %vm652_vm11, %v2001_v10  ;;  %v2017_v38 = vsel %vm652_vm11, %v2001_v10, 0.0  ;;  %v2039_v21 = vmul.f32 %v2001_v10, %v2001_v10 }
 0x158   : > { %v2414_v63 = vpop.f32.mrf.mxu1  ;;  %v2018_v29 = vadd.f32 %v2017_v38, %v2016_v33  ;;  %v2424_v32 = vpop.f32.mrf.mxu0  ;;  %v2051_v44 = vsel %vm652_vm11, %v2041_v39, 0.0 }
 0x159   : > { %2014 = vst.msk [vmem:[%s3028_s26 + $0x30] sm:$0xff] %vm652_vm11, %v2006_v11  ;;  %v2004_v23 = vadd.f32 %v1985_v4, %v1846_v48  ;;  %v2047_v43 = vsel %vm652_vm11, %v2039_v21, 0.0  ;;  %v1849_v49 = vadd.f32 %v2414_v63, %v1619_v5  ;;  %v2044_v37 = vmul.f32 %v2006_v11, %v2006_v11 }
 0x15a   : > { %v1830_v24 = vpop.f32.mrf.mxu1  ;;  %v2020_v50 = vadd.f32 %v2019_v25, %v2018_v29  ;;  %v2048_v30 = vadd.f32 %v2047_v43, %v2046_v9  ;;  %v1988_v42 = vpop.f32.mrf.mxu0  ;;  %v2027_v8 = vsel %vm652_vm11, %v2006_v11, 0.0 }
 0x15b   : > { %2012 = vst.msk [vmem:[%s3028_s26 + $0x20] sm:$0xff] %vm652_vm11, %v2004_v23  ;;  %v2042_v41 = vmul.f32 %v2004_v23, %v2004_v23  ;;  %v2007_v59 = vadd.f32 %v2424_v32, %v1849_v49  ;;  %v1847_v16 = vadd.f32 %v1830_v24, %v1617_v17  ;;  %v2023_v55 = vsel %vm652_vm11, %v2004_v23, 0.0 }
 0x15c   : > { %v2050_v22 = vadd.f32 %v2049_v34, %v2048_v30  ;;  %v2022_v40 = vadd.f32 %v2021_v52, %v2020_v50  ;;  %v2057_v0 = vsel %vm652_vm11, %v2044_v37, 0.0 }
 0x15d   : > { %2015 = vst.msk [vmem:[%s3028_s26 + $0x38] sm:$0xff] %vm652_vm11, %v2007_v59  ;;  %v2005_v7 = vadd.f32 %v1988_v42, %v1847_v16  ;;  %v2053_v47 = vsel %vm652_vm11, %v2042_v41, 0.0  ;;  %v2045_v18 = vmul.f32 %v2007_v59, %v2007_v59  ;;  %v2029_v1 = vsel %vm652_vm11, %v2007_v59, 0.0 }
 0x15e   : > { %v2024_v31 = vadd.f32 %v2023_v55, %v2022_v40  ;;  %v2052_v57 = vadd.f32 %v2051_v44, %v2050_v22 }
 0x15f   : > { %2013 = vst.msk [vmem:[%s3028_s26 + $0x28] sm:$0xff] %vm652_vm11, %v2005_v7  ;;  %v2025_v46 = vsel %vm652_vm11, %v2005_v7, 0.0  ;;  %v2043_v60 = vmul.f32 %v2005_v7, %v2005_v7  ;;  %v2059_v14 = vsel %vm652_vm11, %v2045_v18, 0.0 }
 0x160   : > { %v2054_v19 = vadd.f32 %v2053_v47, %v2052_v57  ;;  %v2026_v35 = vadd.f32 %v2025_v46, %v2024_v31 }
 0x161   : > { %v2055_v61 = vsel %vm652_vm11, %v2043_v60, 0.0 }
 0x162   : > { %v2028_v3 = vadd.f32 %v2027_v8, %v2026_v35  ;;  %v2056_v45 = vadd.f32 %v2055_v61, %v2054_v19 }
 0x164   : > { %v2030_v12 = vadd.f32 %v2029_v1, %v2028_v3  ;;  %v2058_v13 = vadd.f32 %v2057_v0, %v2056_v45 }
 0x166   : > { %v2031_v28 = vrot.slane %v2030_v12, 4  ;;  %v2060_v20 = vadd.f32 %v2059_v14, %v2058_v13 }
 0x168   : > { %v2032_v6 = vadd.f32 %v2031_v28, %v2030_v12  ;;  %v2061_v26 = vrot.slane %v2060_v20, 4 }
 0x16a   : > { %v2033_v53 = vrot.slane %v2032_v6, 2  ;;  %v2062_v36 = vadd.f32 %v2061_v26, %v2060_v20 }
 0x16c   : > { %v2034_v2 = vadd.f32 %v2033_v53, %v2032_v6  ;;  %v2063_v62 = vrot.slane %v2062_v36, 2 }
 0x16e   : > { %v2035_v56 = vrot.slane %v2034_v2, 1  ;;  %v2064_v27 = vadd.f32 %v2063_v62, %v2062_v36 }
 0x170   : > { %v2036_v58 = vadd.f32 %v2035_v56, %v2034_v2  ;;  %v2065_v54 = vrot.slane %v2064_v27, 1 }
 0x172   : > { %2037 = vst.msk [vmem:[%s235_s29] sm:$0x1] %vm285_vm2, %v2036_v58  ;;  %v2066_v10 = vadd.f32 %v2065_v54, %v2064_v27 }
 0x174   : > { %2067 = vst.msk [vmem:[%s235_s29 + $0x1] sm:$0x1] %vm285_vm2, %v2066_v10 }
 0x175 PF: > { %s16_s18 = sadd.s32 1, %s2463_s18  }
 0x176   : > { %p13_p4 = scmp.ge.s32.totalorder %s16_s18, 4  }
 0x178   :  { %15 = sbr.rel (!%p13_p4) target bundleno = 1 (0x1), region = 89 }

</bundles_post_ra>
